<compile_context>
chip_gen: v5e
topology: v5e:2x2
jax: 0.10.0
libtpu: 0.0.40
codegen_flags: <defaults>
</compile_context>

<pallas_src>
import functools

import numpy as np
import jax
import jax.numpy as jnp
from jax.experimental import pallas as pl
from jax.experimental.pallas import tpu as pltpu


def _round_up(n, m):
    return ((n + m - 1) // m) * m


def postnet_kernel(halo_ref, x_ref, w1_ref, sh1_ref, w2_ref, sh2_ref, w3_ref, b3_ref,
                   o_ref, xbuf, h1buf, h2buf, zbuf, *, K, use_bf16_act):
    Tt, Cm = x_ref.shape
    HALO = halo_ref.shape[0]
    Ch = w1_ref.shape[1]
    R1 = h1buf.shape[0]            # Tt + 2*HB rows of h1 (with causal halo)
    R2 = h2buf.shape[0]            # Tt + HB   rows of h2 (with causal halo)
    HB = R2 - Tt
    H = K - 1
    off1 = HALO - 2 * HB - H       # tap-0 offset into xbuf for layer 1
    off = HB - H                   # tap-0 offset into h1buf / h2buf for layers 2/3
    first_tile = pl.program_id(1) == 0

    def act(pre):
        if use_bf16_act:           # v6e / v7x: bf16 VPU/EUP path
            return jnp.tanh(pre.astype(jnp.bfloat16))
        return jnp.tanh(pre).astype(jnp.bfloat16)

    # --- assemble the causal input window: x rows [t0 - HALO, t0 + Tt) --------------
    xbuf[:HALO, :] = halo_ref[...]
    xbuf[HALO:, :] = x_ref[...]

    # --- layer 1: causal conv (im2col + one matmul) -> folded BN -> tanh ------------
    for k in range(K):             # static unroll over taps
        zbuf[:R1, k * Cm:(k + 1) * Cm] = xbuf[off1 + k: off1 + k + R1, :]
    pre1 = jnp.dot(zbuf[:R1, :K * Cm], w1_ref[...],
                   preferred_element_type=jnp.float32) + sh1_ref[...]
    h1buf[...] = act(pre1)

    # Rows of h1 before the start of the sequence are the conv's zero padding, not
    # recomputed values -> zero them on the first time tile only (megacore-safe:
    # gated on the grid index, no cross-step scratch state).
    @pl.when(first_tile)
    def _():
        h1buf[:2 * HB, :] = jnp.zeros((2 * HB, Ch), h1buf.dtype)

    # --- layer 2 ---------------------------------------------------------------------
    for k in range(K):
        zbuf[:R2, k * Ch:(k + 1) * Ch] = h1buf[off + k: off + k + R2, :]
    pre2 = jnp.dot(zbuf[:R2, :K * Ch], w2_ref[...],
                   preferred_element_type=jnp.float32) + sh2_ref[...]
    h2buf[...] = act(pre2)

    @pl.when(first_tile)
    def _():
        h2buf[:HB, :] = jnp.zeros((HB, Ch), h2buf.dtype)

    # --- layer 3: final projection back to (padded) n_mel, f32 output -----------------
    for k in range(K):
        zbuf[:Tt, k * Ch:(k + 1) * Ch] = h2buf[off + k: off + k + Tt, :]
    y = jnp.dot(zbuf[:Tt, :K * Ch], w3_ref[...],
                preferred_element_type=jnp.float32) + b3_ref[...]
    o_ref[...] = y.astype(o_ref.dtype)


def _build_postnet_call(*, B, nT, Tt, HALO, HB, Cm, Ch, K, use_bf16_act,
                        vmem_limit, single_buffer_weights):
    kern = functools.partial(postnet_kernel, K=K, use_bf16_act=use_bf16_act)
    # Grid-invariant params: single-buffer to halve their VMEM residency (v7x budget).
    wkw = {"pipeline_mode": pl.Buffered(1)} if single_buffer_weights else {}
    const = lambda b, t: (0, 0)
    Cz = K * max(Cm, Ch)

    grid_spec = pltpu.PrefetchScalarGridSpec(
        num_scalar_prefetch=0,
        grid=(B, nT),
        in_specs=[
            pl.BlockSpec((None, None, HALO, Cm), lambda b, t: (b, t, 0, 0)),  # halo rows
            pl.BlockSpec((None, Tt, Cm), lambda b, t: (b, t, 0)),             # time tile
            pl.BlockSpec((K * Cm, Ch), const, **wkw),                         # w1 (stacked, BN folded)
            pl.BlockSpec((1, Ch), const, **wkw),                              # shift1
            pl.BlockSpec((K * Ch, Ch), const, **wkw),                         # w2
            pl.BlockSpec((1, Ch), const, **wkw),                              # shift2
            pl.BlockSpec((K * Ch, Cm), const, **wkw),                         # w3
            pl.BlockSpec((1, Cm), const, **wkw),                              # b3
        ],
        out_specs=pl.BlockSpec((None, Tt, Cm), lambda b, t: (b, t, 0)),
        scratch_shapes=[
            pltpu.VMEM((HALO + Tt, Cm), jnp.bfloat16),     # assembled causal input window
            pltpu.VMEM((Tt + 2 * HB, Ch), jnp.bfloat16),   # h1 (incl. halo rows)
            pltpu.VMEM((Tt + HB, Ch), jnp.bfloat16),       # h2 (incl. halo rows)
            pltpu.VMEM((Tt + 2 * HB, Cz), jnp.bfloat16),   # shared im2col operand
        ],
    )
    return pl.pallas_call(
        kern,
        out_shape=jax.ShapeDtypeStruct((B, nT * Tt, Cm), jnp.float32),
        grid_spec=grid_spec,
        compiler_params=pltpu.CompilerParams(
            dimension_semantics=("parallel", "parallel"),
            vmem_limit_bytes=vmem_limit),
    )


def decoder_postnet(x_btc, raw, *, n_mel, d_hidden, kernel=5, t_tile=256):
    """x_btc: (B, T, n_mel) f32 (time-major). Returns (B, T, n_mel) f32 (eval forward)."""
    B, T, _ = x_btc.shape
    K = kernel
    H = K - 1
    assert 1 <= H <= 8, "kernel sizes 2..9 supported"
    HB = 8                     # per-layer halo rows (sublane aligned, >= K-1)
    HALO = 32                  # x-history rows carried per tile (>= 3*(K-1), bf16-tile aligned)
    Cm = _round_up(n_mel, 128)
    Ch = _round_up(d_hidden, 128)
    eps = 1e-5

    Tt = max(2 * HB, min(_round_up(t_tile, 16), _round_up(T, 16)))
    nT = -(-T // Tt)
    Tpad = nT * Tt

    # ---- fold BatchNorm (running stats) + conv bias into weights / shifts ----
    s1 = raw["gamma1"] * jax.lax.rsqrt(raw["var1"] + eps)
    s2 = raw["gamma2"] * jax.lax.rsqrt(raw["var2"] + eps)
    w1 = raw["w1"] * s1[None, None, :]
    sh1 = raw["beta1"] - raw["mean1"] * s1 + raw["b1"] * s1
    w2 = raw["w2"] * s2[None, None, :]
    sh2 = raw["beta2"] - raw["mean2"] * s2 + raw["b2"] * s2
    w3, b3 = raw["w3"], raw["b3"]

    # ---- lane-pad channels to 128, stack taps into the contraction, cast bf16 ----
    def stack_w(w, ci, co):
        wp = jnp.pad(w, ((0, 0), (0, ci - w.shape[1]), (0, co - w.shape[2])))
        return wp.reshape(K * ci, co).astype(jnp.bfloat16)

    w1p = stack_w(w1, Cm, Ch)
    w2p = stack_w(w2, Ch, Ch)
    w3p = stack_w(w3, Ch, Cm)
    sh1p = jnp.pad(sh1, (0, Ch - d_hidden)).reshape(1, Ch).astype(jnp.float32)
    sh2p = jnp.pad(sh2, (0, Ch - d_hidden)).reshape(1, Ch).astype(jnp.float32)
    b3p = jnp.pad(b3, (0, Cm - n_mel)).reshape(1, Cm).astype(jnp.float32)

    # ---- input: left halo + right tile pad + lane pad + bf16 cast (one fused pass) ----
    xl = jnp.pad(x_btc, ((0, 0), (HALO, Tpad - T), (0, Cm - n_mel))).astype(jnp.bfloat16)
    x_main = xl[:, HALO:, :]                                           # (B, Tpad, Cm)
    win = np.arange(nT)[:, None] * Tt + np.arange(HALO)[None, :]
    halo = xl[:, win, :]                                               # (B, nT, HALO, Cm)

    # ---- bf16 tanh only where the VPU/EUP have bf16 paths (v6e / v7x) ----
    kind = jax.devices()[0].device_kind.lower()
    use_bf16_act = ("v6" in kind) or ("v7" in kind)

    # ---- explicit VMEM budget (weights counted double-buffered = worst case) ----
    wbytes = 2 * K * (Cm * Ch + Ch * Ch + Ch * Cm) + 4 * (2 * Ch + Cm)
    blk = 2 * 2 * (HALO * Cm + Tt * Cm) + 2 * 4 * Tt * Cm
    scr = 2 * ((HALO + Tt) * Cm + (Tt + 2 * HB) * Ch + (Tt + HB) * Ch
               + (Tt + 2 * HB) * K * max(Cm, Ch))
    epi = 2 * 4 * (Tt + 2 * HB) * max(Cm, Ch)
    budget = 2 * wbytes + blk + scr + epi
    vmem_limit = int(min(max(budget * 3 // 2 + (8 << 20), 32 << 20), 48 << 20))

    args = (halo, x_main, w1p, sh1p, w2p, sh2p, w3p, b3p)
    build = functools.partial(
        _build_postnet_call, B=B, nT=nT, Tt=Tt, HALO=HALO, HB=HB, Cm=Cm, Ch=Ch,
        K=K, use_bf16_act=use_bf16_act, vmem_limit=vmem_limit)
    try:
        out_p = jax.block_until_ready(build(single_buffer_weights=True)(*args))
    except Exception:
        # pipeline_mode=pl.Buffered(1) unavailable -> default double buffering.
        out_p = jax.block_until_ready(build(single_buffer_weights=False)(*args))

    return out_p[:, :T, :n_mel]


def ref_forward(x_btc, raw, K=5):
    """Pure-JAX f32 reference with the ORIGINAL module semantics (conv+bias, BN, tanh)."""
    eps = 1e-5

    def cconv(x, w, b):
        T = x.shape[1]
        xpad = jnp.pad(x, ((0, 0), (K - 1, 0), (0, 0)))
        y = sum(jnp.einsum("bti,io->bto", xpad[:, k:k + T], w[k]) for k in range(K))
        return y + b

    def bn(h, g, beta, m, v):
        s = g * jax.lax.rsqrt(v + eps)
        return h * s + (beta - m * s)

    h = cconv(x_btc, raw["w1"], raw["b1"])
    h = jnp.tanh(bn(h, raw["gamma1"], raw["beta1"], raw["mean1"], raw["var1"]))
    h = cconv(h, raw["w2"], raw["b2"])
    h = jnp.tanh(bn(h, raw["gamma2"], raw["beta2"], raw["mean2"], raw["var2"]))
    return cconv(h, raw["w3"], raw["b3"])


if __name__ == "__main__":
    key = jax.random.PRNGKey(0)
    B, T = 2, 100
    n_mel, d_hidden, K = 8, 32, 5
    ks = jax.random.split(key, 16)

    # Torch-like parameters; Conv1d weight (O, I, K) is generated directly in (K, I, O).
    raw = {
        "w1": 0.1 * jax.random.normal(ks[0], (K, n_mel, d_hidden), jnp.float32),
        "b1": 0.1 * jax.random.normal(ks[1], (d_hidden,), jnp.float32),
        "gamma1": 1.0 + 0.1 * jax.random.normal(ks[2], (d_hidden,), jnp.float32),
        "beta1": 0.1 * jax.random.normal(ks[3], (d_hidden,), jnp.float32),
        "mean1": 0.1 * jax.random.normal(ks[4], (d_hidden,), jnp.float32),
        "var1": jax.random.uniform(ks[5], (d_hidden,), jnp.float32, 0.5, 1.5),
        "w2": 0.1 * jax.random.normal(ks[6], (K, d_hidden, d_hidden), jnp.float32),
        "b2": 0.1 * jax.random.normal(ks[7], (d_hidden,), jnp.float32),
        "gamma2": 1.0 + 0.1 * jax.random.normal(ks[8], (d_hidden,), jnp.float32),
        "beta2": 0.1 * jax.random.normal(ks[9], (d_hidden,), jnp.float32),
        "mean2": 0.1 * jax.random.normal(ks[10], (d_hidden,), jnp.float32),
        "var2": jax.random.uniform(ks[11], (d_hidden,), jnp.float32, 0.5, 1.5),
        "w3": 0.1 * jax.random.normal(ks[12], (K, d_hidden, n_mel), jnp.float32),
        "b3": 0.1 * jax.random.normal(ks[13], (n_mel,), jnp.float32),
    }

    # PyTorch-style NCW input (B, n_mel, T), transposed to the kernel layout (B, T, n_mel).
    x_nct = jax.random.normal(ks[14], (B, n_mel, T), jnp.float32)
    x_btc = jnp.transpose(x_nct, (0, 2, 1))

    ref = ref_forward(x_btc, raw, K=K)

    # Multi-tile path: T=100 split into 32-row time tiles with causal halo recompute.
    out = decoder_postnet(x_btc, raw, n_mel=n_mel, d_hidden=d_hidden, kernel=K, t_tile=32)
    out = jax.block_until_ready(out)
    assert out.shape == (B, T, n_mel)
    max_err = float(jnp.max(jnp.abs(out - ref)))
    # bf16 matmul operands vs. f32 reference -> loose-but-safe tolerance.
    assert jnp.allclose(out, ref, atol=5e-2, rtol=5e-2), max_err

    # Single-tile path (default tile covers the whole padded sequence).
    out1 = jax.block_until_ready(
        decoder_postnet(x_btc, raw, n_mel=n_mel, d_hidden=d_hidden, kernel=K))
    max_err1 = float(jnp.max(jnp.abs(out1 - ref)))
    assert jnp.allclose(out1, ref, atol=5e-2, rtol=5e-2), max_err1

    # Back to PyTorch NCW output layout (B, n_mel, T).
    out_nct = jax.block_until_ready(jnp.transpose(out, (0, 2, 1)))
    assert out_nct.shape == x_nct.shape
    print("KERNEL_OK")
</pallas_src>

<mosaic_0001>
module attributes {stable_mosaic.version = 11 : i64} {
  func.func @postnet_kernel(%arg0: i32, %arg1: i32, %arg2: memref<1x1x32x128xbf16, #tpu.memory_space<vmem>>, %arg3: memref<1x32x128xbf16, #tpu.memory_space<vmem>>, %arg4: memref<640x128xbf16, #tpu.memory_space<vmem>>, %arg5: memref<1x128xf32, #tpu.memory_space<vmem>>, %arg6: memref<640x128xbf16, #tpu.memory_space<vmem>>, %arg7: memref<1x128xf32, #tpu.memory_space<vmem>>, %arg8: memref<640x128xbf16, #tpu.memory_space<vmem>>, %arg9: memref<1x128xf32, #tpu.memory_space<vmem>>, %arg10: memref<1x32x128xf32, #tpu.memory_space<vmem>>, %arg11: memref<64x128xbf16, #tpu.memory_space<vmem>>, %arg12: memref<48x128xbf16, #tpu.memory_space<vmem>>, %arg13: memref<40x128xbf16, #tpu.memory_space<vmem>>, %arg14: memref<48x640xbf16, #tpu.memory_space<vmem>>) attributes {dimension_semantics = [#tpu.dimension_semantics<parallel>, #tpu.dimension_semantics<parallel>], iteration_bounds = array<i64: 2, 4>, scalar_prefetch = 0 : i64, scratch_operands = 4 : i64, tpu.core_type = #tpu.core_type<tc>, window_params = [{transform_indices = @transform_0, window_bounds = array<i64: 1, 1, 32, 128>}, {transform_indices = @transform_1, window_bounds = array<i64: 1, 32, 128>}, {pipeline_mode = #tpu.pipeline_mode<synchronous>, transform_indices = @transform_2, window_bounds = array<i64: 640, 128>}, {pipeline_mode = #tpu.pipeline_mode<synchronous>, transform_indices = @transform_3, window_bounds = array<i64: 1, 128>}, {pipeline_mode = #tpu.pipeline_mode<synchronous>, transform_indices = @transform_4, window_bounds = array<i64: 640, 128>}, {pipeline_mode = #tpu.pipeline_mode<synchronous>, transform_indices = @transform_5, window_bounds = array<i64: 1, 128>}, {pipeline_mode = #tpu.pipeline_mode<synchronous>, transform_indices = @transform_6, window_bounds = array<i64: 640, 128>}, {pipeline_mode = #tpu.pipeline_mode<synchronous>, transform_indices = @transform_7, window_bounds = array<i64: 1, 128>}, {transform_indices = @transform_8, window_bounds = array<i64: 1, 32, 128>}]} {
    %c0_i32 = arith.constant 0 : i32
    %0 = arith.cmpi eq, %arg1, %c0_i32 : i32
    %c0 = arith.constant 0 : index
    %c0_0 = arith.constant 0 : index
    %c0_1 = arith.constant 0 : index
    %c0_2 = arith.constant 0 : index
    %1 = vector.load %arg2[%c0, %c0_0, %c0_1, %c0_2] : memref<1x1x32x128xbf16, #tpu.memory_space<vmem>>, vector<1x1x32x128xbf16>
    %2 = vector.shape_cast %1 : vector<1x1x32x128xbf16> to vector<32x128xbf16>
    %c0_3 = arith.constant 0 : index
    %c0_4 = arith.constant 0 : index
    %3 = vector.load %arg11[%c0_3, %c0_4] : memref<64x128xbf16, #tpu.memory_space<vmem>>, vector<32x128xbf16>
    tpu.vector_store %arg11[%c0_3, %c0_4], %2 {strides = array<i32>} : memref<64x128xbf16, #tpu.memory_space<vmem>>, vector<32x128xbf16>,
    %c0_5 = arith.constant 0 : index
    %c0_6 = arith.constant 0 : index
    %c0_7 = arith.constant 0 : index
    %4 = vector.load %arg3[%c0_5, %c0_6, %c0_7] : memref<1x32x128xbf16, #tpu.memory_space<vmem>>, vector<1x32x128xbf16>
    %5 = vector.shape_cast %4 : vector<1x32x128xbf16> to vector<32x128xbf16>
    %c32 = arith.constant 32 : index
    %c0_8 = arith.constant 0 : index
    %6 = vector.load %arg11[%c32, %c0_8] : memref<64x128xbf16, #tpu.memory_space<vmem>>, vector<32x128xbf16>
    tpu.vector_store %arg11[%c32, %c0_8], %5 {strides = array<i32>} : memref<64x128xbf16, #tpu.memory_space<vmem>>, vector<32x128xbf16>,
    %c12 = arith.constant 12 : index
    %c0_9 = arith.constant 0 : index
    %7 = vector.load %arg11[%c12, %c0_9] : memref<64x128xbf16, #tpu.memory_space<vmem>>, vector<48x128xbf16>
    %c0_10 = arith.constant 0 : index
    %c0_11 = arith.constant 0 : index
    %8 = vector.load %arg14[%c0_10, %c0_11] : memref<48x640xbf16, #tpu.memory_space<vmem>>, vector<48x128xbf16>
    tpu.vector_store %arg14[%c0_10, %c0_11], %7 {strides = array<i32>} : memref<48x640xbf16, #tpu.memory_space<vmem>>, vector<48x128xbf16>,
    %c13 = arith.constant 13 : index
    %c0_12 = arith.constant 0 : index
    %9 = vector.load %arg11[%c13, %c0_12] : memref<64x128xbf16, #tpu.memory_space<vmem>>, vector<48x128xbf16>
    %c0_13 = arith.constant 0 : index
    %c128 = arith.constant 128 : index
    %10 = vector.load %arg14[%c0_13, %c128] : memref<48x640xbf16, #tpu.memory_space<vmem>>, vector<48x128xbf16>
    tpu.vector_store %arg14[%c0_13, %c128], %9 {strides = array<i32>} : memref<48x640xbf16, #tpu.memory_space<vmem>>, vector<48x128xbf16>,
    %c14 = arith.constant 14 : index
    %c0_14 = arith.constant 0 : index
    %11 = vector.load %arg11[%c14, %c0_14] : memref<64x128xbf16, #tpu.memory_space<vmem>>, vector<48x128xbf16>
    %c0_15 = arith.constant 0 : index
    %c256 = arith.constant 256 : index
    %12 = vector.load %arg14[%c0_15, %c256] : memref<48x640xbf16, #tpu.memory_space<vmem>>, vector<48x128xbf16>
    tpu.vector_store %arg14[%c0_15, %c256], %11 {strides = array<i32>} : memref<48x640xbf16, #tpu.memory_space<vmem>>, vector<48x128xbf16>,
    %c15 = arith.constant 15 : index
    %c0_16 = arith.constant 0 : index
    %13 = vector.load %arg11[%c15, %c0_16] : memref<64x128xbf16, #tpu.memory_space<vmem>>, vector<48x128xbf16>
    %c0_17 = arith.constant 0 : index
    %c384 = arith.constant 384 : index
    %14 = vector.load %arg14[%c0_17, %c384] : memref<48x640xbf16, #tpu.memory_space<vmem>>, vector<48x128xbf16>
    tpu.vector_store %arg14[%c0_17, %c384], %13 {strides = array<i32>} : memref<48x640xbf16, #tpu.memory_space<vmem>>, vector<48x128xbf16>,
    %c16 = arith.constant 16 : index
    %c0_18 = arith.constant 0 : index
    %15 = vector.load %arg11[%c16, %c0_18] : memref<64x128xbf16, #tpu.memory_space<vmem>>, vector<48x128xbf16>
    %c0_19 = arith.constant 0 : index
    %c512 = arith.constant 512 : index
    %16 = vector.load %arg14[%c0_19, %c512] : memref<48x640xbf16, #tpu.memory_space<vmem>>, vector<48x128xbf16>
    tpu.vector_store %arg14[%c0_19, %c512], %15 {strides = array<i32>} : memref<48x640xbf16, #tpu.memory_space<vmem>>, vector<48x128xbf16>,
    %c0_20 = arith.constant 0 : index
    %c0_21 = arith.constant 0 : index
    %17 = vector.load %arg14[%c0_20, %c0_21] : memref<48x640xbf16, #tpu.memory_space<vmem>>, vector<48x640xbf16>
    %c0_22 = arith.constant 0 : index
    %c0_23 = arith.constant 0 : index
    %18 = vector.load %arg4[%c0_22, %c0_23] : memref<640x128xbf16, #tpu.memory_space<vmem>>, vector<640x128xbf16>
    %cst = arith.constant dense<0.000000e+00> : vector<48x128xf32>
    %19 = tpu.matmul %17, %18, %cst {dimension_numbers = #tpu.dot_dimension_numbers<[1], [0], [0], [1], [0, 0, 1, 1], [], []>} : vector<48x640xbf16>, vector<640x128xbf16>, vector<48x128xf32> -> vector<48x128xf32>
    %c0_24 = arith.constant 0 : index
    %c0_25 = arith.constant 0 : index
    %20 = vector.load %arg5[%c0_24, %c0_25] : memref<1x128xf32, #tpu.memory_space<vmem>>, vector<1x128xf32>
    %21 = vector.broadcast %20 : vector<1x128xf32> to vector<48x128xf32>
    %22 = arith.addf %19, %21 : vector<48x128xf32>
    %23 = math.tanh %22 : vector<48x128xf32>
    %24 = arith.truncf %23 : vector<48x128xf32> to vector<48x128xbf16>
    %c0_26 = arith.constant 0 : index
    %c0_27 = arith.constant 0 : index
    %25 = vector.load %arg12[%c0_26, %c0_27] : memref<48x128xbf16, #tpu.memory_space<vmem>>, vector<48x128xbf16>
    tpu.vector_store %arg12[%c0_26, %c0_27], %24 {strides = array<i32>} : memref<48x128xbf16, #tpu.memory_space<vmem>>, vector<48x128xbf16>,
    %26 = arith.extui %0 : i1 to i32
    %c0_i32_28 = arith.constant 0 : i32
    %27 = arith.cmpi ne, %26, %c0_i32_28 : i32
    scf.if %27 {
      %cst_84 = arith.constant 0.000000e+00 : bf16
      %68 = vector.broadcast %cst_84 : bf16 to vector<16x128xbf16>
      %c0_85 = arith.constant 0 : index
      %c0_86 = arith.constant 0 : index
      %69 = vector.load %arg12[%c0_85, %c0_86] : memref<48x128xbf16, #tpu.memory_space<vmem>>, vector<16x128xbf16>
      tpu.vector_store %arg12[%c0_85, %c0_86], %68 {strides = array<i32>} : memref<48x128xbf16, #tpu.memory_space<vmem>>, vector<16x128xbf16>,
    } else {
    }
    %c4 = arith.constant 4 : index
    %c0_29 = arith.constant 0 : index
    %28 = vector.load %arg12[%c4, %c0_29] : memref<48x128xbf16, #tpu.memory_space<vmem>>, vector<40x128xbf16>
    %c0_30 = arith.constant 0 : index
    %c0_31 = arith.constant 0 : index
    %29 = vector.load %arg14[%c0_30, %c0_31] : memref<48x640xbf16, #tpu.memory_space<vmem>>, vector<40x128xbf16>
    tpu.vector_store %arg14[%c0_30, %c0_31], %28 {strides = array<i32>} : memref<48x640xbf16, #tpu.memory_space<vmem>>, vector<40x128xbf16>,
    %c5 = arith.constant 5 : index
    %c0_32 = arith.constant 0 : index
    %30 = vector.load %arg12[%c5, %c0_32] : memref<48x128xbf16, #tpu.memory_space<vmem>>, vector<40x128xbf16>
    %c0_33 = arith.constant 0 : index
    %c128_34 = arith.constant 128 : index
    %31 = vector.load %arg14[%c0_33, %c128_34] : memref<48x640xbf16, #tpu.memory_space<vmem>>, vector<40x128xbf16>
    tpu.vector_store %arg14[%c0_33, %c128_34], %30 {strides = array<i32>} : memref<48x640xbf16, #tpu.memory_space<vmem>>, vector<40x128xbf16>,
    %c6 = arith.constant 6 : index
    %c0_35 = arith.constant 0 : index
    %32 = vector.load %arg12[%c6, %c0_35] : memref<48x128xbf16, #tpu.memory_space<vmem>>, vector<40x128xbf16>
    %c0_36 = arith.constant 0 : index
    %c256_37 = arith.constant 256 : index
    %33 = vector.load %arg14[%c0_36, %c256_37] : memref<48x640xbf16, #tpu.memory_space<vmem>>, vector<40x128xbf16>
    tpu.vector_store %arg14[%c0_36, %c256_37], %32 {strides = array<i32>} : memref<48x640xbf16, #tpu.memory_space<vmem>>, vector<40x128xbf16>,
    %c7 = arith.constant 7 : index
    %c0_38 = arith.constant 0 : index
    %34 = vector.load %arg12[%c7, %c0_38] : memref<48x128xbf16, #tpu.memory_space<vmem>>, vector<40x128xbf16>
    %c0_39 = arith.constant 0 : index
    %c384_40 = arith.constant 384 : index
    %35 = vector.load %arg14[%c0_39, %c384_40] : memref<48x640xbf16, #tpu.memory_space<vmem>>, vector<40x128xbf16>
    tpu.vector_store %arg14[%c0_39, %c384_40], %34 {strides = array<i32>} : memref<48x640xbf16, #tpu.memory_space<vmem>>, vector<40x128xbf16>,
    %c8 = arith.constant 8 : index
    %c0_41 = arith.constant 0 : index
    %36 = vector.load %arg12[%c8, %c0_41] : memref<48x128xbf16, #tpu.memory_space<vmem>>, vector<40x128xbf16>
    %c0_42 = arith.constant 0 : index
    %c512_43 = arith.constant 512 : index
    %37 = vector.load %arg14[%c0_42, %c512_43] : memref<48x640xbf16, #tpu.memory_space<vmem>>, vector<40x128xbf16>
    tpu.vector_store %arg14[%c0_42, %c512_43], %36 {strides = array<i32>} : memref<48x640xbf16, #tpu.memory_space<vmem>>, vector<40x128xbf16>,
    %c0_44 = arith.constant 0 : index
    %c0_45 = arith.constant 0 : index
    %38 = vector.load %arg14[%c0_44, %c0_45] : memref<48x640xbf16, #tpu.memory_space<vmem>>, vector<40x640xbf16>
    %c0_46 = arith.constant 0 : index
    %c0_47 = arith.constant 0 : index
    %39 = vector.load %arg6[%c0_46, %c0_47] : memref<640x128xbf16, #tpu.memory_space<vmem>>, vector<640x128xbf16>
    %cst_48 = arith.constant dense<0.000000e+00> : vector<40x128xf32>
    %40 = tpu.matmul %38, %39, %cst_48 {dimension_numbers = #tpu.dot_dimension_numbers<[1], [0], [0], [1], [0, 0, 1, 1], [], []>} : vector<40x640xbf16>, vector<640x128xbf16>, vector<40x128xf32> -> vector<40x128xf32>
    %c0_49 = arith.constant 0 : index
    %c0_50 = arith.constant 0 : index
    %41 = vector.load %arg7[%c0_49, %c0_50] : memref<1x128xf32, #tpu.memory_space<vmem>>, vector<1x128xf32>
    %42 = vector.broadcast %41 : vector<1x128xf32> to vector<40x128xf32>
    %43 = arith.addf %40, %42 : vector<40x128xf32>
    %44 = math.tanh %43 : vector<40x128xf32>
    %45 = arith.truncf %44 : vector<40x128xf32> to vector<40x128xbf16>
    %c0_51 = arith.constant 0 : index
    %c0_52 = arith.constant 0 : index
    %46 = vector.load %arg13[%c0_51, %c0_52] : memref<40x128xbf16, #tpu.memory_space<vmem>>, vector<40x128xbf16>
    tpu.vector_store %arg13[%c0_51, %c0_52], %45 {strides = array<i32>} : memref<40x128xbf16, #tpu.memory_space<vmem>>, vector<40x128xbf16>,
    %47 = arith.extui %0 : i1 to i32
    %c0_i32_53 = arith.constant 0 : i32
    %48 = arith.cmpi ne, %47, %c0_i32_53 : i32
    scf.if %48 {
      %cst_84 = arith.constant 0.000000e+00 : bf16
      %68 = vector.broadcast %cst_84 : bf16 to vector<8x128xbf16>
      %c0_85 = arith.constant 0 : index
      %c0_86 = arith.constant 0 : index
      %69 = vector.load %arg13[%c0_85, %c0_86] : memref<40x128xbf16, #tpu.memory_space<vmem>>, vector<8x128xbf16>
      tpu.vector_store %arg13[%c0_85, %c0_86], %68 {strides = array<i32>} : memref<40x128xbf16, #tpu.memory_space<vmem>>, vector<8x128xbf16>,
    } else {
    }
    %c4_54 = arith.constant 4 : index
    %c0_55 = arith.constant 0 : index
    %49 = vector.load %arg13[%c4_54, %c0_55] : memref<40x128xbf16, #tpu.memory_space<vmem>>, vector<32x128xbf16>
    %c0_56 = arith.constant 0 : index
    %c0_57 = arith.constant 0 : index
    %50 = vector.load %arg14[%c0_56, %c0_57] : memref<48x640xbf16, #tpu.memory_space<vmem>>, vector<32x128xbf16>
    tpu.vector_store %arg14[%c0_56, %c0_57], %49 {strides = array<i32>} : memref<48x640xbf16, #tpu.memory_space<vmem>>, vector<32x128xbf16>,
    %c5_58 = arith.constant 5 : index
    %c0_59 = arith.constant 0 : index
    %51 = vector.load %arg13[%c5_58, %c0_59] : memref<40x128xbf16, #tpu.memory_space<vmem>>, vector<32x128xbf16>
    %c0_60 = arith.constant 0 : index
    %c128_61 = arith.constant 128 : index
    %52 = vector.load %arg14[%c0_60, %c128_61] : memref<48x640xbf16, #tpu.memory_space<vmem>>, vector<32x128xbf16>
    tpu.vector_store %arg14[%c0_60, %c128_61], %51 {strides = array<i32>} : memref<48x640xbf16, #tpu.memory_space<vmem>>, vector<32x128xbf16>,
    %c6_62 = arith.constant 6 : index
    %c0_63 = arith.constant 0 : index
    %53 = vector.load %arg13[%c6_62, %c0_63] : memref<40x128xbf16, #tpu.memory_space<vmem>>, vector<32x128xbf16>
    %c0_64 = arith.constant 0 : index
    %c256_65 = arith.constant 256 : index
    %54 = vector.load %arg14[%c0_64, %c256_65] : memref<48x640xbf16, #tpu.memory_space<vmem>>, vector<32x128xbf16>
    tpu.vector_store %arg14[%c0_64, %c256_65], %53 {strides = array<i32>} : memref<48x640xbf16, #tpu.memory_space<vmem>>, vector<32x128xbf16>,
    %c7_66 = arith.constant 7 : index
    %c0_67 = arith.constant 0 : index
    %55 = vector.load %arg13[%c7_66, %c0_67] : memref<40x128xbf16, #tpu.memory_space<vmem>>, vector<32x128xbf16>
    %c0_68 = arith.constant 0 : index
    %c384_69 = arith.constant 384 : index
    %56 = vector.load %arg14[%c0_68, %c384_69] : memref<48x640xbf16, #tpu.memory_space<vmem>>, vector<32x128xbf16>
    tpu.vector_store %arg14[%c0_68, %c384_69], %55 {strides = array<i32>} : memref<48x640xbf16, #tpu.memory_space<vmem>>, vector<32x128xbf16>,
    %c8_70 = arith.constant 8 : index
    %c0_71 = arith.constant 0 : index
    %57 = vector.load %arg13[%c8_70, %c0_71] : memref<40x128xbf16, #tpu.memory_space<vmem>>, vector<32x128xbf16>
    %c0_72 = arith.constant 0 : index
    %c512_73 = arith.constant 512 : index
    %58 = vector.load %arg14[%c0_72, %c512_73] : memref<48x640xbf16, #tpu.memory_space<vmem>>, vector<32x128xbf16>
    tpu.vector_store %arg14[%c0_72, %c512_73], %57 {strides = array<i32>} : memref<48x640xbf16, #tpu.memory_space<vmem>>, vector<32x128xbf16>,
    %c0_74 = arith.constant 0 : index
    %c0_75 = arith.constant 0 : index
    %59 = vector.load %arg14[%c0_74, %c0_75] : memref<48x640xbf16, #tpu.memory_space<vmem>>, vector<32x640xbf16>
    %c0_76 = arith.constant 0 : index
    %c0_77 = arith.constant 0 : index
    %60 = vector.load %arg8[%c0_76, %c0_77] : memref<640x128xbf16, #tpu.memory_space<vmem>>, vector<640x128xbf16>
    %cst_78 = arith.constant dense<0.000000e+00> : vector<32x128xf32>
    %61 = tpu.matmul %59, %60, %cst_78 {dimension_numbers = #tpu.dot_dimension_numbers<[1], [0], [0], [1], [0, 0, 1, 1], [], []>} : vector<32x640xbf16>, vector<640x128xbf16>, vector<32x128xf32> -> vector<32x128xf32>
    %c0_79 = arith.constant 0 : index
    %c0_80 = arith.constant 0 : index
    %62 = vector.load %arg9[%c0_79, %c0_80] : memref<1x128xf32, #tpu.memory_space<vmem>>, vector<1x128xf32>
    %63 = vector.broadcast %62 : vector<1x128xf32> to vector<32x128xf32>
    %64 = arith.addf %61, %63 : vector<32x128xf32>
    %c0_81 = arith.constant 0 : index
    %c0_82 = arith.constant 0 : index
    %c0_83 = arith.constant 0 : index
    %65 = vector.load %arg10[%c0_81, %c0_82, %c0_83] : memref<1x32x128xf32, #tpu.memory_space<vmem>>, vector<1x32x128xf32>
    %66 = vector.shape_cast %65 : vector<1x32x128xf32> to vector<32x128xf32>
    %67 = vector.shape_cast %64 : vector<32x128xf32> to vector<1x32x128xf32>
    tpu.vector_store %arg10[%c0_81, %c0_82, %c0_83], %67 {strides = array<i32>} : memref<1x32x128xf32, #tpu.memory_space<vmem>>, vector<1x32x128xf32>,
    return
  }
  func.func @transform_0(%arg0: i32, %arg1: i32) -> (i32, i32, i32, i32) {
    %c0_i32 = arith.constant 0 : i32
    %c0_i32_0 = arith.constant 0 : i32
    %c0_i32_1 = arith.constant 0 : i32
    return %arg0, %arg1, %c0_i32, %c0_i32_0 : i32, i32, i32, i32
  }
  func.func @transform_1(%arg0: i32, %arg1: i32) -> (i32, i32, i32) {
    %c0_i32 = arith.constant 0 : i32
    %c0_i32_0 = arith.constant 0 : i32
    return %arg0, %arg1, %c0_i32 : i32, i32, i32
  }
  func.func @transform_2(%arg0: i32, %arg1: i32) -> (i32, i32) {
    %c0_i32 = arith.constant 0 : i32
    %c0_i32_0 = arith.constant 0 : i32
    %c0_i32_1 = arith.constant 0 : i32
    return %c0_i32, %c0_i32_0 : i32, i32
  }
  func.func @transform_3(%arg0: i32, %arg1: i32) -> (i32, i32) {
    %c0_i32 = arith.constant 0 : i32
    %c0_i32_0 = arith.constant 0 : i32
    %c0_i32_1 = arith.constant 0 : i32
    return %c0_i32, %c0_i32_0 : i32, i32
  }
  func.func @transform_4(%arg0: i32, %arg1: i32) -> (i32, i32) {
    %c0_i32 = arith.constant 0 : i32
    %c0_i32_0 = arith.constant 0 : i32
    %c0_i32_1 = arith.constant 0 : i32
    return %c0_i32, %c0_i32_0 : i32, i32
  }
  func.func @transform_5(%arg0: i32, %arg1: i32) -> (i32, i32) {
    %c0_i32 = arith.constant 0 : i32
    %c0_i32_0 = arith.constant 0 : i32
    %c0_i32_1 = arith.constant 0 : i32
    return %c0_i32, %c0_i32_0 : i32, i32
  }
  func.func @transform_6(%arg0: i32, %arg1: i32) -> (i32, i32) {
    %c0_i32 = arith.constant 0 : i32
    %c0_i32_0 = arith.constant 0 : i32
    %c0_i32_1 = arith.constant 0 : i32
    return %c0_i32, %c0_i32_0 : i32, i32
  }
  func.func @transform_7(%arg0: i32, %arg1: i32) -> (i32, i32) {
    %c0_i32 = arith.constant 0 : i32
    %c0_i32_0 = arith.constant 0 : i32
    %c0_i32_1 = arith.constant 0 : i32
    return %c0_i32, %c0_i32_0 : i32, i32
  }
  func.func @transform_8(%arg0: i32, %arg1: i32) -> (i32, i32, i32) {
    %c0_i32 = arith.constant 0 : i32
    %c0_i32_0 = arith.constant 0 : i32
    return %arg0, %arg1, %c0_i32 : i32, i32, i32
  }
}

module attributes {stable_mosaic.version = 11 : i64} {
  func.func @postnet_kernel(%arg0: i32, %arg1: i32, %arg2: memref<1x1x32x128xbf16, #tpu.memory_space<vmem>>, %arg3: memref<1x32x128xbf16, #tpu.memory_space<vmem>>, %arg4: memref<640x128xbf16, #tpu.memory_space<vmem>>, %arg5: memref<1x128xf32, #tpu.memory_space<vmem>>, %arg6: memref<640x128xbf16, #tpu.memory_space<vmem>>, %arg7: memref<1x128xf32, #tpu.memory_space<vmem>>, %arg8: memref<640x128xbf16, #tpu.memory_space<vmem>>, %arg9: memref<1x128xf32, #tpu.memory_space<vmem>>, %arg10: memref<1x32x128xf32, #tpu.memory_space<vmem>>, %arg11: memref<64x128xbf16, #tpu.memory_space<vmem>>, %arg12: memref<48x128xbf16, #tpu.memory_space<vmem>>, %arg13: memref<40x128xbf16, #tpu.memory_space<vmem>>, %arg14: memref<48x640xbf16, #tpu.memory_space<vmem>>) attributes {dimension_semantics = [#tpu.dimension_semantics<parallel>, #tpu.dimension_semantics<parallel>], iteration_bounds = array<i64: 2, 4>, scalar_prefetch = 0 : i64, scratch_operands = 4 : i64, tpu.core_type = #tpu.core_type<tc>, window_params = [{transform_indices = @transform_0, window_bounds = array<i64: 1, 1, 32, 128>}, {transform_indices = @transform_1, window_bounds = array<i64: 1, 32, 128>}, {pipeline_mode = #tpu.pipeline_mode<synchronous>, transform_indices = @transform_2, window_bounds = array<i64: 640, 128>}, {pipeline_mode = #tpu.pipeline_mode<synchronous>, transform_indices = @transform_3, window_bounds = array<i64: 1, 128>}, {pipeline_mode = #tpu.pipeline_mode<synchronous>, transform_indices = @transform_4, window_bounds = array<i64: 640, 128>}, {pipeline_mode = #tpu.pipeline_mode<synchronous>, transform_indices = @transform_5, window_bounds = array<i64: 1, 128>}, {pipeline_mode = #tpu.pipeline_mode<synchronous>, transform_indices = @transform_6, window_bounds = array<i64: 640, 128>}, {pipeline_mode = #tpu.pipeline_mode<synchronous>, transform_indices = @transform_7, window_bounds = array<i64: 1, 128>}, {transform_indices = @transform_8, window_bounds = array<i64: 1, 32, 128>}]} {
    %c0_i32 = arith.constant 0 : i32
    %0 = arith.cmpi eq, %arg1, %c0_i32 : i32
    %c0 = arith.constant 0 : index
    %c0_0 = arith.constant 0 : index
    %c0_1 = arith.constant 0 : index
    %c0_2 = arith.constant 0 : index
    %1 = vector.load %arg2[%c0, %c0_0, %c0_1, %c0_2] : memref<1x1x32x128xbf16, #tpu.memory_space<vmem>>, vector<1x1x32x128xbf16>
    %2 = vector.shape_cast %1 : vector<1x1x32x128xbf16> to vector<32x128xbf16>
    %c0_3 = arith.constant 0 : index
    %c0_4 = arith.constant 0 : index
    %3 = vector.load %arg11[%c0_3, %c0_4] : memref<64x128xbf16, #tpu.memory_space<vmem>>, vector<32x128xbf16>
    tpu.vector_store %arg11[%c0_3, %c0_4], %2 {strides = array<i32>} : memref<64x128xbf16, #tpu.memory_space<vmem>>, vector<32x128xbf16>,
    %c0_5 = arith.constant 0 : index
    %c0_6 = arith.constant 0 : index
    %c0_7 = arith.constant 0 : index
    %4 = vector.load %arg3[%c0_5, %c0_6, %c0_7] : memref<1x32x128xbf16, #tpu.memory_space<vmem>>, vector<1x32x128xbf16>
    %5 = vector.shape_cast %4 : vector<1x32x128xbf16> to vector<32x128xbf16>
    %c32 = arith.constant 32 : index
    %c0_8 = arith.constant 0 : index
    %6 = vector.load %arg11[%c32, %c0_8] : memref<64x128xbf16, #tpu.memory_space<vmem>>, vector<32x128xbf16>
    tpu.vector_store %arg11[%c32, %c0_8], %5 {strides = array<i32>} : memref<64x128xbf16, #tpu.memory_space<vmem>>, vector<32x128xbf16>,
    %c12 = arith.constant 12 : index
    %c0_9 = arith.constant 0 : index
    %7 = vector.load %arg11[%c12, %c0_9] : memref<64x128xbf16, #tpu.memory_space<vmem>>, vector<48x128xbf16>
    %c0_10 = arith.constant 0 : index
    %c0_11 = arith.constant 0 : index
    %8 = vector.load %arg14[%c0_10, %c0_11] : memref<48x640xbf16, #tpu.memory_space<vmem>>, vector<48x128xbf16>
    tpu.vector_store %arg14[%c0_10, %c0_11], %7 {strides = array<i32>} : memref<48x640xbf16, #tpu.memory_space<vmem>>, vector<48x128xbf16>,
    %c13 = arith.constant 13 : index
    %c0_12 = arith.constant 0 : index
    %9 = vector.load %arg11[%c13, %c0_12] : memref<64x128xbf16, #tpu.memory_space<vmem>>, vector<48x128xbf16>
    %c0_13 = arith.constant 0 : index
    %c128 = arith.constant 128 : index
    %10 = vector.load %arg14[%c0_13, %c128] : memref<48x640xbf16, #tpu.memory_space<vmem>>, vector<48x128xbf16>
    tpu.vector_store %arg14[%c0_13, %c128], %9 {strides = array<i32>} : memref<48x640xbf16, #tpu.memory_space<vmem>>, vector<48x128xbf16>,
    %c14 = arith.constant 14 : index
    %c0_14 = arith.constant 0 : index
    %11 = vector.load %arg11[%c14, %c0_14] : memref<64x128xbf16, #tpu.memory_space<vmem>>, vector<48x128xbf16>
    %c0_15 = arith.constant 0 : index
    %c256 = arith.constant 256 : index
    %12 = vector.load %arg14[%c0_15, %c256] : memref<48x640xbf16, #tpu.memory_space<vmem>>, vector<48x128xbf16>
    tpu.vector_store %arg14[%c0_15, %c256], %11 {strides = array<i32>} : memref<48x640xbf16, #tpu.memory_space<vmem>>, vector<48x128xbf16>,
    %c15 = arith.constant 15 : index
    %c0_16 = arith.constant 0 : index
    %13 = vector.load %arg11[%c15, %c0_16] : memref<64x128xbf16, #tpu.memory_space<vmem>>, vector<48x128xbf16>
    %c0_17 = arith.constant 0 : index
    %c384 = arith.constant 384 : index
    %14 = vector.load %arg14[%c0_17, %c384] : memref<48x640xbf16, #tpu.memory_space<vmem>>, vector<48x128xbf16>
    tpu.vector_store %arg14[%c0_17, %c384], %13 {strides = array<i32>} : memref<48x640xbf16, #tpu.memory_space<vmem>>, vector<48x128xbf16>,
    %c16 = arith.constant 16 : index
    %c0_18 = arith.constant 0 : index
    %15 = vector.load %arg11[%c16, %c0_18] : memref<64x128xbf16, #tpu.memory_space<vmem>>, vector<48x128xbf16>
    %c0_19 = arith.constant 0 : index
    %c512 = arith.constant 512 : index
    %16 = vector.load %arg14[%c0_19, %c512] : memref<48x640xbf16, #tpu.memory_space<vmem>>, vector<48x128xbf16>
    tpu.vector_store %arg14[%c0_19, %c512], %15 {strides = array<i32>} : memref<48x640xbf16, #tpu.memory_space<vmem>>, vector<48x128xbf16>,
    %c0_20 = arith.constant 0 : index
    %c0_21 = arith.constant 0 : index
    %17 = vector.load %arg14[%c0_20, %c0_21] : memref<48x640xbf16, #tpu.memory_space<vmem>>, vector<48x640xbf16>
    %c0_22 = arith.constant 0 : index
    %c0_23 = arith.constant 0 : index
    %18 = vector.load %arg4[%c0_22, %c0_23] : memref<640x128xbf16, #tpu.memory_space<vmem>>, vector<640x128xbf16>
    %cst = arith.constant dense<0.000000e+00> : vector<48x128xf32>
    %19 = tpu.matmul %17, %18, %cst {dimension_numbers = #tpu.dot_dimension_numbers<[1], [0], [0], [1], [0, 0, 1, 1], [], []>} : vector<48x640xbf16>, vector<640x128xbf16>, vector<48x128xf32> -> vector<48x128xf32>
    %c0_24 = arith.constant 0 : index
    %c0_25 = arith.constant 0 : index
    %20 = vector.load %arg5[%c0_24, %c0_25] : memref<1x128xf32, #tpu.memory_space<vmem>>, vector<1x128xf32>
    %21 = vector.broadcast %20 : vector<1x128xf32> to vector<48x128xf32>
    %22 = arith.addf %19, %21 : vector<48x128xf32>
    %23 = math.tanh %22 : vector<48x128xf32>
    %24 = arith.truncf %23 : vector<48x128xf32> to vector<48x128xbf16>
    %c0_26 = arith.constant 0 : index
    %c0_27 = arith.constant 0 : index
    %25 = vector.load %arg12[%c0_26, %c0_27] : memref<48x128xbf16, #tpu.memory_space<vmem>>, vector<48x128xbf16>
    tpu.vector_store %arg12[%c0_26, %c0_27], %24 {strides = array<i32>} : memref<48x128xbf16, #tpu.memory_space<vmem>>, vector<48x128xbf16>,
    %26 = arith.extui %0 : i1 to i32
    %c0_i32_28 = arith.constant 0 : i32
    %27 = arith.cmpi ne, %26, %c0_i32_28 : i32
    scf.if %27 {
      %cst_84 = arith.constant 0.000000e+00 : bf16
      %68 = vector.broadcast %cst_84 : bf16 to vector<16x128xbf16>
      %c0_85 = arith.constant 0 : index
      %c0_86 = arith.constant 0 : index
      %69 = vector.load %arg12[%c0_85, %c0_86] : memref<48x128xbf16, #tpu.memory_space<vmem>>, vector<16x128xbf16>
      tpu.vector_store %arg12[%c0_85, %c0_86], %68 {strides = array<i32>} : memref<48x128xbf16, #tpu.memory_space<vmem>>, vector<16x128xbf16>,
    } else {
    }
    %c4 = arith.constant 4 : index
    %c0_29 = arith.constant 0 : index
    %28 = vector.load %arg12[%c4, %c0_29] : memref<48x128xbf16, #tpu.memory_space<vmem>>, vector<40x128xbf16>
    %c0_30 = arith.constant 0 : index
    %c0_31 = arith.constant 0 : index
    %29 = vector.load %arg14[%c0_30, %c0_31] : memref<48x640xbf16, #tpu.memory_space<vmem>>, vector<40x128xbf16>
    tpu.vector_store %arg14[%c0_30, %c0_31], %28 {strides = array<i32>} : memref<48x640xbf16, #tpu.memory_space<vmem>>, vector<40x128xbf16>,
    %c5 = arith.constant 5 : index
    %c0_32 = arith.constant 0 : index
    %30 = vector.load %arg12[%c5, %c0_32] : memref<48x128xbf16, #tpu.memory_space<vmem>>, vector<40x128xbf16>
    %c0_33 = arith.constant 0 : index
    %c128_34 = arith.constant 128 : index
    %31 = vector.load %arg14[%c0_33, %c128_34] : memref<48x640xbf16, #tpu.memory_space<vmem>>, vector<40x128xbf16>
    tpu.vector_store %arg14[%c0_33, %c128_34], %30 {strides = array<i32>} : memref<48x640xbf16, #tpu.memory_space<vmem>>, vector<40x128xbf16>,
    %c6 = arith.constant 6 : index
    %c0_35 = arith.constant 0 : index
    %32 = vector.load %arg12[%c6, %c0_35] : memref<48x128xbf16, #tpu.memory_space<vmem>>, vector<40x128xbf16>
    %c0_36 = arith.constant 0 : index
    %c256_37 = arith.constant 256 : index
    %33 = vector.load %arg14[%c0_36, %c256_37] : memref<48x640xbf16, #tpu.memory_space<vmem>>, vector<40x128xbf16>
    tpu.vector_store %arg14[%c0_36, %c256_37], %32 {strides = array<i32>} : memref<48x640xbf16, #tpu.memory_space<vmem>>, vector<40x128xbf16>,
    %c7 = arith.constant 7 : index
    %c0_38 = arith.constant 0 : index
    %34 = vector.load %arg12[%c7, %c0_38] : memref<48x128xbf16, #tpu.memory_space<vmem>>, vector<40x128xbf16>
    %c0_39 = arith.constant 0 : index
    %c384_40 = arith.constant 384 : index
    %35 = vector.load %arg14[%c0_39, %c384_40] : memref<48x640xbf16, #tpu.memory_space<vmem>>, vector<40x128xbf16>
    tpu.vector_store %arg14[%c0_39, %c384_40], %34 {strides = array<i32>} : memref<48x640xbf16, #tpu.memory_space<vmem>>, vector<40x128xbf16>,
    %c8 = arith.constant 8 : index
    %c0_41 = arith.constant 0 : index
    %36 = vector.load %arg12[%c8, %c0_41] : memref<48x128xbf16, #tpu.memory_space<vmem>>, vector<40x128xbf16>
    %c0_42 = arith.constant 0 : index
    %c512_43 = arith.constant 512 : index
    %37 = vector.load %arg14[%c0_42, %c512_43] : memref<48x640xbf16, #tpu.memory_space<vmem>>, vector<40x128xbf16>
    tpu.vector_store %arg14[%c0_42, %c512_43], %36 {strides = array<i32>} : memref<48x640xbf16, #tpu.memory_space<vmem>>, vector<40x128xbf16>,
    %c0_44 = arith.constant 0 : index
    %c0_45 = arith.constant 0 : index
    %38 = vector.load %arg14[%c0_44, %c0_45] : memref<48x640xbf16, #tpu.memory_space<vmem>>, vector<40x640xbf16>
    %c0_46 = arith.constant 0 : index
    %c0_47 = arith.constant 0 : index
    %39 = vector.load %arg6[%c0_46, %c0_47] : memref<640x128xbf16, #tpu.memory_space<vmem>>, vector<640x128xbf16>
    %cst_48 = arith.constant dense<0.000000e+00> : vector<40x128xf32>
    %40 = tpu.matmul %38, %39, %cst_48 {dimension_numbers = #tpu.dot_dimension_numbers<[1], [0], [0], [1], [0, 0, 1, 1], [], []>} : vector<40x640xbf16>, vector<640x128xbf16>, vector<40x128xf32> -> vector<40x128xf32>
    %c0_49 = arith.constant 0 : index
    %c0_50 = arith.constant 0 : index
    %41 = vector.load %arg7[%c0_49, %c0_50] : memref<1x128xf32, #tpu.memory_space<vmem>>, vector<1x128xf32>
    %42 = vector.broadcast %41 : vector<1x128xf32> to vector<40x128xf32>
    %43 = arith.addf %40, %42 : vector<40x128xf32>
    %44 = math.tanh %43 : vector<40x128xf32>
    %45 = arith.truncf %44 : vector<40x128xf32> to vector<40x128xbf16>
    %c0_51 = arith.constant 0 : index
    %c0_52 = arith.constant 0 : index
    %46 = vector.load %arg13[%c0_51, %c0_52] : memref<40x128xbf16, #tpu.memory_space<vmem>>, vector<40x128xbf16>
    tpu.vector_store %arg13[%c0_51, %c0_52], %45 {strides = array<i32>} : memref<40x128xbf16, #tpu.memory_space<vmem>>, vector<40x128xbf16>,
    %47 = arith.extui %0 : i1 to i32
    %c0_i32_53 = arith.constant 0 : i32
    %48 = arith.cmpi ne, %47, %c0_i32_53 : i32
    scf.if %48 {
      %cst_84 = arith.constant 0.000000e+00 : bf16
      %68 = vector.broadcast %cst_84 : bf16 to vector<8x128xbf16>
      %c0_85 = arith.constant 0 : index
      %c0_86 = arith.constant 0 : index
      %69 = vector.load %arg13[%c0_85, %c0_86] : memref<40x128xbf16, #tpu.memory_space<vmem>>, vector<8x128xbf16>
      tpu.vector_store %arg13[%c0_85, %c0_86], %68 {strides = array<i32>} : memref<40x128xbf16, #tpu.memory_space<vmem>>, vector<8x128xbf16>,
    } else {
    }
    %c4_54 = arith.constant 4 : index
    %c0_55 = arith.constant 0 : index
    %49 = vector.load %arg13[%c4_54, %c0_55] : memref<40x128xbf16, #tpu.memory_space<vmem>>, vector<32x128xbf16>
    %c0_56 = arith.constant 0 : index
    %c0_57 = arith.constant 0 : index
    %50 = vector.load %arg14[%c0_56, %c0_57] : memref<48x640xbf16, #tpu.memory_space<vmem>>, vector<32x128xbf16>
    tpu.vector_store %arg14[%c0_56, %c0_57], %49 {strides = array<i32>} : memref<48x640xbf16, #tpu.memory_space<vmem>>, vector<32x128xbf16>,
    %c5_58 = arith.constant 5 : index
    %c0_59 = arith.constant 0 : index
    %51 = vector.load %arg13[%c5_58, %c0_59] : memref<40x128xbf16, #tpu.memory_space<vmem>>, vector<32x128xbf16>
    %c0_60 = arith.constant 0 : index
    %c128_61 = arith.constant 128 : index
    %52 = vector.load %arg14[%c0_60, %c128_61] : memref<48x640xbf16, #tpu.memory_space<vmem>>, vector<32x128xbf16>
    tpu.vector_store %arg14[%c0_60, %c128_61], %51 {strides = array<i32>} : memref<48x640xbf16, #tpu.memory_space<vmem>>, vector<32x128xbf16>,
    %c6_62 = arith.constant 6 : index
    %c0_63 = arith.constant 0 : index
    %53 = vector.load %arg13[%c6_62, %c0_63] : memref<40x128xbf16, #tpu.memory_space<vmem>>, vector<32x128xbf16>
    %c0_64 = arith.constant 0 : index
    %c256_65 = arith.constant 256 : index
    %54 = vector.load %arg14[%c0_64, %c256_65] : memref<48x640xbf16, #tpu.memory_space<vmem>>, vector<32x128xbf16>
    tpu.vector_store %arg14[%c0_64, %c256_65], %53 {strides = array<i32>} : memref<48x640xbf16, #tpu.memory_space<vmem>>, vector<32x128xbf16>,
    %c7_66 = arith.constant 7 : index
    %c0_67 = arith.constant 0 : index
    %55 = vector.load %arg13[%c7_66, %c0_67] : memref<40x128xbf16, #tpu.memory_space<vmem>>, vector<32x128xbf16>
    %c0_68 = arith.constant 0 : index
    %c384_69 = arith.constant 384 : index
    %56 = vector.load %arg14[%c0_68, %c384_69] : memref<48x640xbf16, #tpu.memory_space<vmem>>, vector<32x128xbf16>
    tpu.vector_store %arg14[%c0_68, %c384_69], %55 {strides = array<i32>} : memref<48x640xbf16, #tpu.memory_space<vmem>>, vector<32x128xbf16>,
    %c8_70 = arith.constant 8 : index
    %c0_71 = arith.constant 0 : index
    %57 = vector.load %arg13[%c8_70, %c0_71] : memref<40x128xbf16, #tpu.memory_space<vmem>>, vector<32x128xbf16>
    %c0_72 = arith.constant 0 : index
    %c512_73 = arith.constant 512 : index
    %58 = vector.load %arg14[%c0_72, %c512_73] : memref<48x640xbf16, #tpu.memory_space<vmem>>, vector<32x128xbf16>
    tpu.vector_store %arg14[%c0_72, %c512_73], %57 {strides = array<i32>} : memref<48x640xbf16, #tpu.memory_space<vmem>>, vector<32x128xbf16>,
    %c0_74 = arith.constant 0 : index
    %c0_75 = arith.constant 0 : index
    %59 = vector.load %arg14[%c0_74, %c0_75] : memref<48x640xbf16, #tpu.memory_space<vmem>>, vector<32x640xbf16>
    %c0_76 = arith.constant 0 : index
    %c0_77 = arith.constant 0 : index
    %60 = vector.load %arg8[%c0_76, %c0_77] : memref<640x128xbf16, #tpu.memory_space<vmem>>, vector<640x128xbf16>
    %cst_78 = arith.constant dense<0.000000e+00> : vector<32x128xf32>
    %61 = tpu.matmul %59, %60, %cst_78 {dimension_numbers = #tpu.dot_dimension_numbers<[1], [0], [0], [1], [0, 0, 1, 1], [], []>} : vector<32x640xbf16>, vector<640x128xbf16>, vector<32x128xf32> -> vector<32x128xf32>
    %c0_79 = arith.constant 0 : index
    %c0_80 = arith.constant 0 : index
    %62 = vector.load %arg9[%c0_79, %c0_80] : memref<1x128xf32, #tpu.memory_space<vmem>>, vector<1x128xf32>
    %63 = vector.broadcast %62 : vector<1x128xf32> to vector<32x128xf32>
    %64 = arith.addf %61, %63 : vector<32x128xf32>
    %c0_81 = arith.constant 0 : index
    %c0_82 = arith.constant 0 : index
    %c0_83 = arith.constant 0 : index
    %65 = vector.load %arg10[%c0_81, %c0_82, %c0_83] : memref<1x32x128xf32, #tpu.memory_space<vmem>>, vector<1x32x128xf32>
    %66 = vector.shape_cast %65 : vector<1x32x128xf32> to vector<32x128xf32>
    %67 = vector.shape_cast %64 : vector<32x128xf32> to vector<1x32x128xf32>
    tpu.vector_store %arg10[%c0_81, %c0_82, %c0_83], %67 {strides = array<i32>} : memref<1x32x128xf32, #tpu.memory_space<vmem>>, vector<1x32x128xf32>,
    return
  }
  func.func @transform_0(%arg0: i32, %arg1: i32) -> (i32, i32, i32, i32) {
    %c0_i32 = arith.constant 0 : i32
    %c0_i32_0 = arith.constant 0 : i32
    %c0_i32_1 = arith.constant 0 : i32
    return %arg0, %arg1, %c0_i32, %c0_i32_0 : i32, i32, i32, i32
  }
  func.func @transform_1(%arg0: i32, %arg1: i32) -> (i32, i32, i32) {
    %c0_i32 = arith.constant 0 : i32
    %c0_i32_0 = arith.constant 0 : i32
    return %arg0, %arg1, %c0_i32 : i32, i32, i32
  }
  func.func @transform_2(%arg0: i32, %arg1: i32) -> (i32, i32) {
    %c0_i32 = arith.constant 0 : i32
    %c0_i32_0 = arith.constant 0 : i32
    %c0_i32_1 = arith.constant 0 : i32
    return %c0_i32, %c0_i32_0 : i32, i32
  }
  func.func @transform_3(%arg0: i32, %arg1: i32) -> (i32, i32) {
    %c0_i32 = arith.constant 0 : i32
    %c0_i32_0 = arith.constant 0 : i32
    %c0_i32_1 = arith.constant 0 : i32
    return %c0_i32, %c0_i32_0 : i32, i32
  }
  func.func @transform_4(%arg0: i32, %arg1: i32) -> (i32, i32) {
    %c0_i32 = arith.constant 0 : i32
    %c0_i32_0 = arith.constant 0 : i32
    %c0_i32_1 = arith.constant 0 : i32
    return %c0_i32, %c0_i32_0 : i32, i32
  }
  func.func @transform_5(%arg0: i32, %arg1: i32) -> (i32, i32) {
    %c0_i32 = arith.constant 0 : i32
    %c0_i32_0 = arith.constant 0 : i32
    %c0_i32_1 = arith.constant 0 : i32
    return %c0_i32, %c0_i32_0 : i32, i32
  }
  func.func @transform_6(%arg0: i32, %arg1: i32) -> (i32, i32) {
    %c0_i32 = arith.constant 0 : i32
    %c0_i32_0 = arith.constant 0 : i32
    %c0_i32_1 = arith.constant 0 : i32
    return %c0_i32, %c0_i32_0 : i32, i32
  }
  func.func @transform_7(%arg0: i32, %arg1: i32) -> (i32, i32) {
    %c0_i32 = arith.constant 0 : i32
    %c0_i32_0 = arith.constant 0 : i32
    %c0_i32_1 = arith.constant 0 : i32
    return %c0_i32, %c0_i32_0 : i32, i32
  }
  func.func @transform_8(%arg0: i32, %arg1: i32) -> (i32, i32, i32) {
    %c0_i32 = arith.constant 0 : i32
    %c0_i32_0 = arith.constant 0 : i32
    return %arg0, %arg1, %c0_i32 : i32, i32, i32
  }
}

</mosaic_0001>

<bundles_post_ra>
// kernel: tpu_custom_call.1
= control target key start
LH: loop header
LB: loop body
LE: loop exit
PB: predicated region body
PF: predicated region fallthrough
CT: control target
= control target key end

     0   :  { %s4685_s0 = inlined_call_operand.hbm [shape: bf16[2,4,32,128], index: 0, kind: input, shape index: {}]   ;;  %s4686_s1 = inlined_call_operand.hbm [shape: bf16[2,128,128], index: 1, kind: input, shape index: {}]   ;;  %s4687_s2 = inlined_call_operand.hbm [shape: bf16[640,128], index: 2, kind: input, shape index: {}]   ;;  %s4688_s3 = inlined_call_operand.vmem [shape: f32[1,128], index: 3, kind: input, shape index: {}]   ;;  %s4689_s4 = inlined_call_operand.hbm [shape: bf16[640,128], index: 4, kind: input, shape index: {}]   ;;  %s4690_s5 = inlined_call_operand.vmem [shape: f32[1,128], index: 5, kind: input, shape index: {}]   ;;  %s4691_s6 = inlined_call_operand.hbm [shape: bf16[640,128], index: 6, kind: input, shape index: {}]   ;;  %s4692_s7 = inlined_call_operand.vmem [shape: f32[1,128], index: 7, kind: input, shape index: {}]   ;;  %s4693_s8 = inlined_call_operand.hbm [shape: f32[2,128,128], index: 8, kind: output, shape index: {}]  }
   0x1   :  { %4707 = sst [smem:[#allocation29_spill]] %s4687_s2 }
   0x2   :  { %4708 = sst [smem:[#allocation30_spill]] %s4689_s4 }
   0x3   :  { %4709 = sst [smem:[#allocation31_spill]] %s4691_s6 }
   0x4   :  { %4710 = sst [smem:[#allocation32_spill]] %s4693_s8 }
   0x5   :  { %13 = vsyncpa [#allocation7], 0 }
   0x6   :  { %15 = vsyncpa [#allocation7 + $0x1], 0 }
   0x7   :  { %16 = vsyncpa [#allocation10], 0 }
   0x8   :  { %18 = vsyncpa [#allocation10 + $0x1], 0 }
   0x9   :  { %19 = vsyncpa [#allocation13], 0 }
   0xa   :  { %20 = vsyncpa [#allocation8], 0 }
   0xb   :  { %22 = vsyncpa [#allocation8 + $0x1], 0  ;;  %s4212_s27 = smov 0   ;;  %s4214_s28 = smov 0  }
   0xc   :  { %s4216_s29 = smov 0   ;;  %s4218_s30 = smov 0  }
   0xd   :  { %s4220_s9 = smov 0   ;;  %s4222_s10 = smov 0  }
   0xe   :  { %s4224_s11 = smov 0   ;;  %s4226_s12 = smov 0  }
   0xf LB: > { %4711 = sst [smem:[#allocation21_spill]] %s4128_s27  ;;  %s4253_s13 = sadd.s32 4294967295, %s4156_s12   ;;  %s4156_s12 = sphi %s4226_s12, %s28_s12   ;;  %s4152_s11 = sphi %s4224_s11, %s4747_s11   ;;  %s4148_s10 = sphi %s4222_s10, %s4746_s10   ;;  %s4144_s9 = sphi %s4220_s9, %s4745_s9   ;;  %s4140_s30 = sphi %s4218_s30, %s4744_s30   ;;  %s4136_s29 = sphi %s4216_s29, %s4750_s29   ;;  %s4132_s28 = sphi %s4214_s28, %s4749_s28   ;;  %s4128_s27 = sphi %s4212_s27, %s4748_s27  }
  0x10   : > { %4712 = sst [smem:[#allocation22_spill]] %s4148_s10  ;;  %s2902_s14 = sadd.s32 4294967294, %s4156_s12  }
  0x11   : > { %4713 = sst [smem:[#allocation23_spill]] %s4152_s11  ;;  %p62_p0 = scmp.ne.s32.totalorder %s4132_s28, %s4128_s27 }
  0x12   : > { %p63_p1 = scmp.eq.s32.totalorder %s4253_s13, 0  ;;  %p242_p2 = scmp.eq.s32.totalorder %s4253_s13, 7 }
  0x13   : > { %p248_p3 = scmp.eq.s32.totalorder %s2902_s14, 7  ;;  %p2903_p5 = scmp.ge.s32.totalorder %s4156_s12, 1 }
  0x14   : > { %p4262_p4 = por %p63_p1, %p62_p0  ;;  %p255_p7 = scmp.lt.s32.totalorder %s4156_s12, 9 }
  0x15   : > { %p4267_p6 = por %p248_p3, %p62_p0  ;;  %s4717_s2 = sld [smem:[#allocation29_spill]] }
  0x16   : > { %p4275_p8 = pnand %p2903_p5, %p255_p7  ;;  %s4158_s21 = smov [#allocation11]  }
  0x17   : > { %s4715_s16 = scalar_select %p4267_p6, 1, 0 }
  0x18   : > { %p3769_p9 = pneg %p4275_p8  ;;  %s268_s22 = sshll.u32 %s4158_s21, 4  ;;  %s269_s22 = int_to_ptr.vmem [resolvable:$true] %s268_s22 }
  0x19   : > { %4716 = sst [smem:[#allocation24_spill]] %s4715_s16  ;;  %s4694_s14 = smov 64  }
  0x1a   : > { %p4283_p10 = pnand %p3769_p9, %p63_p1  ;;  %s4720_s4 = sld [smem:[#allocation30_spill]] }
  0x1b   : > { %s266_s19 = sshll.u32 %s4717_s2, 4  ;;  %s4696_s17 = smov 4   ;;  %s267_s19 = int_to_ptr.hbm [resolvable:$true] %s266_s19 }
  0x1c   : > { %3772 = dma.hbm_to_vmem [thread:$0]  (!%p4283_p10), %s267_s19, 5120, %s269_s22, [#allocation10], %s4694_s14, %s4694_s14, %s4696_s17  }
  0x1d   : > { %s4161_s18 = smov [#allocation12]   ;;  %s4721_s6 = sld [smem:[#allocation31_spill]] }
  0x1e   : > { %s285_s21 = sshll.u32 %s4161_s18, 4  ;;  %s37_s22 = sadd.s32 1, %s4148_s10  ;;  %s286_s21 = int_to_ptr.vmem [resolvable:$true] %s285_s21 }
  0x1f   : > { %p38_p11 = scmp.ge.s32.totalorder %s37_s22, 4  ;;  %s40_s18 = sadd.s32 1, %s4152_s11 }
  0x20   : > { %s283_s26 = sshll.u32 %s4720_s4, 4  ;;  %s4162_s4 = smov [#allocation14]   ;;  %s284_s26 = int_to_ptr.hbm [resolvable:$true] %s283_s26 }
  0x21   : > { %3775 = dma.hbm_to_vmem [thread:$0]  (!%p4283_p10), %s284_s26, 5120, %s286_s21, [#allocation13], %s4694_s14, %s4694_s14, %s4696_s17  }
  0x22   : > { %s302_s19 = sshll.u32 %s4162_s4, 4  ;;  %s49_s24 = sadd.s32 1, %s4136_s29  ;;  %s303_s19 = int_to_ptr.vmem [resolvable:$true] %s302_s19 }
  0x23   : > { %s300_s2 = sshll.u32 %s4721_s6, 4  ;;  %p56_p12 = scmp.ne.s32.totalorder %s4136_s29, %s4132_s28  ;;  %s301_s2 = int_to_ptr.hbm [resolvable:$true] %s300_s2 }
  0x24   : > { %3778 = dma.hbm_to_vmem [thread:$0]  (!%p4283_p10), %s301_s2, 5120, %s303_s19, [#allocation13], %s4694_s14, %s4694_s14, %s4696_s17  }
  0x25   : > { %s4752_s22 = smov (%p38_p11, %s37_s22), 0  ;;  %s4754_s18 = smov (!%p38_p11, %s40_s18), %s4152_s11 }
  0x26   : > { %4722 = sst [smem:[#allocation25_spill]] %s4752_s22  ;;  %s45_s4 = ssub.s32 %s4148_s10, %s4752_s22 }
  0x27   : > { %p57_p13 = scmp.eq.s32.totalorder %s4156_s12, 0  ;;  %p42_p0 = scmp.ge.s32.totalorder %s4754_s18, 2 }
  0x28   : > { %p4321_p3 = por %p242_p2, %p56_p12  ;;  %p3793_p7 = scmp.lt.s32.totalorder %s4156_s12, 8 }
  0x29   : > { %p4325_p5 = por %p57_p13, %p56_p12  ;;  %s4756_s18 = smov (%p42_p0, %s4754_s18), 0 }
  0x2a   : > { %s4723_s23 = scalar_select %p4321_p3, 1, 0 }
  0x2b   : > { %4726 = sst [smem:[#allocation27_spill]] %s4756_s18  ;;  %s319_s26 = sand.u32 1, %s4136_s29  }
  0x2c   : > { %4724 = sst [smem:[#allocation26_spill]] %s4723_s23  ;;  %s2909_s21 = sshll.u32 %s4148_s10, 2 }
  0x2d   : > { %s44_s25 = ssub.s32 %s4152_s11, %s4756_s18  ;;  %s2908_s14 = sshll.u32 %s319_s26, 4 }
  0x2e   : > { %s46_s19 = sor.u32 %s45_s4, %s44_s25  ;;  %s2910_s17 = sshll.u32 %s4152_s11, 4 }
  0x2f   : > { %p47_p9 = scmp.eq.s32.totalorder %s46_s19, 0  ;;  %s323_s6 = scalar_lea.vmem [#allocation6], %s2908_s14 }
  0x30   : > { %s333_s22 = sshll.u32 %s323_s6, 4  ;;  %s328_s27 = sadd.s32 %s2910_s17, %s2909_s21  ;;  %s334_s22 = int_to_ptr.vmem [resolvable:$true] %s333_s22 }
  0x31   : > { %s4338_s16 = scalar_select %p47_p9, %s4136_s29, %s49_s24  }
  0x32   : > { %s2911_s23 = sshll.u32 %s328_s27, 2  ;;  %p4344_p2 = pnand %p3793_p7, %p4325_p5 }
  0x33   : > { %4727 = sst [smem:[#allocation28_spill]] %s4338_s16  ;;  %s330_s4 = scalar_lea.hbm %s4685_s0, %s2911_s23 }
  0x34   : > { %s331_s25 = sshll.u32 %s330_s4, 4  ;;  %s354_s17 = scalar_lea.hbm %s4686_s1, %s2911_s23  ;;  %s332_s25 = int_to_ptr.hbm [resolvable:$true] %s331_s25 }
  0x35   : > { %s320_s21 = scalar_lea.sflag [#allocation7], %s319_s26  ;;  %s4729_s27 = smov 4  }
  0x36   : > { %s4730_s2 = smov 64   ;;  %s355_s19 = sshll.u32 %s354_s17, 4  ;;  %s356_s19 = int_to_ptr.hbm [resolvable:$true] %s355_s19 }
  0x37   : > { %3782 = dma.hbm_to_vmem [thread:$0]  (!%p4344_p2), %s332_s25, 256, %s334_s22, %s320_s21, %s4730_s2, %s4730_s2, %s4729_s27  }
  0x38   : > { %s347_s11 = scalar_lea.vmem [#allocation9], %s2908_s14  ;;  %s343_s10 = sand.u32 1, %s4156_s12  }
  0x39   : > { %s357_s16 = sshll.u32 %s347_s11, 4  ;;  %s344_s18 = scalar_lea.sflag [#allocation10], %s343_s10  ;;  %s358_s16 = int_to_ptr.vmem [resolvable:$true] %s357_s16 }
  0x3a   : > { %3785 = dma.hbm_to_vmem [thread:$0]  (!%p4344_p2), %s356_s19, 256, %s358_s16, %s344_s18, %s4730_s2, %s4730_s2, %s4729_s27  }
  0x3b   : > { %369 = sbr.rel (%p4275_p8) target bundleno = 815 (0x32f), region = 52  ;;  %s4368_s23 = sand.u32 (!%p4275_p8), 1, %s4132_s28  }
  0x3c   : > { %s2917_s14 = sshll.u32 (!%p4275_p8), %s4368_s23, 4  ;;  %s372_s11 = scalar_lea.sflag (!%p4275_p8), [#allocation7], %s4368_s23 }
  0x3d   : > { %s4372_s22 = scalar_lea.vmem (!%p4275_p8), [#allocation6], %s2917_s14 }
  0x40   : > { %4107 = dma.done.wait (%p4262_p4), %s372_s11, 256  }
  0x41   : > { %4109 = vsyncadd (%p4262_p4), %s372_s11, 4294967040  ;;  %s381_s8 = sand.u32 1, %s4253_s13   ;;  %s4379_s20 = scalar_lea.vmem [#allocation9], %s2917_s14 }
  0x42   : > { %s382_s16 = scalar_lea.sflag [#allocation10], %s381_s8 }
  0x43   : > { %4111 = dma.done.wait (%p4262_p4), %s382_s16, 256  }
  0x44   : > { %4113 = vsyncadd (%p4262_p4), %s382_s16, 4294967040 }
  0x45   : > { %4115 = dma.done.wait (%p63_p1), [#allocation10], 5120  }
  0x46   : > { %4117 = vsyncadd (%p63_p1), [#allocation10], 4294962176 }
  0x47   : > { %4119 = dma.done.wait (%p63_p1), [#allocation13], 10240  }
  0x48   : > { %4121 = vsyncadd (%p63_p1), [#allocation13], 4294957056  ;;  %s2922_s26 = sshll.u32 %s4368_s23, 5  ;;  %v443_v0 = vld [vmem:[%s4372_s22] sm:$0xff]   ;;  %v3582_v1 = vld [vmem:[#allocation11 + $0x38] sm:$0xff]  ;;  %vm473_vm0 = vcmask 1041408  }
  0x49   : > { %v3598_v2 = vld [vmem:[#allocation11 + $0xb8] sm:$0xff]  ;;  %447 = vst [vmem:[#allocation2] sm:$0xff] %v443_v0   ;;  %1157 = vmatpush.bf16.msra.mxu0 %v3582_v1  ;;  %v3581_v5 = vld [vmem:[#allocation11 + $0x30] sm:$0xff]  ;;  %v3580_v9 = vld [vmem:[#allocation11 + $0x28] sm:$0xff]  ;;  %vm474_vm1 = vcmask 1045508   ;;  %vm611_vm2 = vcmask 1040384  }
  0x4a   : > { %v3590_v3 = vld [vmem:[#allocation11 + $0x78] sm:$0xff]  ;;  %1205 = vmatpush.bf16.msra.mxu2 %v3598_v2  ;;  %v3597_v6 = vld [vmem:[#allocation11 + $0xb0] sm:$0xff]  ;;  %v3596_v10 = vld [vmem:[#allocation11 + $0xa8] sm:$0xff]  ;;  %vm612_vm3 = vcmask 1044484   ;;  %vm514_vm5 = vsmask.f32 1280 }
  0x4b   : > { %v3606_v4 = vld [vmem:[#allocation11 + $0xf8] sm:$0xff]  ;;  %1181 = vmatpush.bf16.msra.mxu1 %v3590_v3  ;;  %v3589_v7 = vld [vmem:[#allocation11 + $0x70] sm:$0xff]  ;;  %v3588_v11 = vld [vmem:[#allocation11 + $0x68] sm:$0xff]  ;;  %vm515_vm6 = vsmask.f32 5392  ;;  %s4508_s4 = scalar_lea.vmem [#allocation15], %s2922_s26 }
  0x4c   : > { %1229 = vmatpush.bf16.msra.mxu3 %v3606_v4  ;;  %v3605_v8 = vld [vmem:[#allocation11 + $0xf0] sm:$0xff]  ;;  %v3604_v12 = vld [vmem:[#allocation11 + $0xe8] sm:$0xff]  ;;  %v3579_v13 = vld [vmem:[#allocation11 + $0x20] sm:$0xff]  ;;  %vm652_vm8 = vsmask.f32 256  ;;  %p3146_p1 = scmp.ne.s32.totalorder %s4140_s30, 0 }
  0x4d   : > { %1158 = vmatpush.bf16.msra.mxu0 %v3581_v5  ;;  %v3595_v14 = vld [vmem:[#allocation11 + $0xa0] sm:$0xff]  ;;  %v445_v17 = vld [vmem:[%s4372_s22 + $0x8] sm:$0xff]   ;;  %vm4400_vm4 = vmor %vm473_vm0, %vm474_vm1  ;;  %vm653_vm9 = vsmask.f32 4368 }
  0x4e   : > { %1206 = vmatpush.bf16.msra.mxu2 %v3597_v6  ;;  %v3587_v15 = vld [vmem:[#allocation11 + $0x60] sm:$0xff]  ;;  %v3578_v18 = vld [vmem:[#allocation11 + $0x18] sm:$0xff]  ;;  %449 = vst [vmem:[#allocation2 + $0x8] sm:$0xff] %v445_v17   ;;  %v3577_v34 = vld [vmem:[#allocation11 + $0x10] sm:$0xff] }
  0x4f   : > { %1182 = vmatpush.bf16.msra.mxu1 %v3589_v7  ;;  %v3603_v16 = vld [vmem:[#allocation11 + $0xe0] sm:$0xff]  ;;  %v3594_v19 = vld [vmem:[#allocation11 + $0x98] sm:$0xff]  ;;  %vm4406_vm7 = vmor %vm611_vm2, %vm612_vm3 }
  0x50   : > { %1230 = vmatpush.bf16.msra.mxu3 %v3605_v8  ;;  %v507_v20 = vld [vmem:[#allocation2 + $0x4] sm:$0xc]  ;;  %v3586_v21 = vld [vmem:[#allocation11 + $0x58] sm:$0xff]  ;;  %v3593_v37 = vld [vmem:[#allocation11 + $0x90] sm:$0xff] }
  0x51   : > { %1159 = vmatpush.bf16.msra.mxu0 %v3580_v9  ;;  %v3602_v22 = vld [vmem:[#allocation11 + $0xd8] sm:$0xff]  ;;  %v518_v23 = vshrl.u32 %v507_v20, 16  ;;  %v521_v24 = vshll.u32 %v507_v20, 16  ;;  %v645_v25 = vld [vmem:[#allocation2 + $0x4] sm:$0x8]  ;;  %v3585_v38 = vld [vmem:[#allocation11 + $0x50] sm:$0xff] }
  0x52   : > { %1207 = vmatpush.bf16.msra.mxu2 %v3596_v10  ;;  %v459_v26 = vld [vmem:[#allocation2 + $0x4] sm:$0xc]  ;;  %v453_v31 = vld [vmem:[%s4379_s20 + $0x8] sm:$0xff]   ;;  %v656_v33 = vshrl.u32 %v645_v25, 16  ;;  %v3601_v39 = vld [vmem:[#allocation11 + $0xd0] sm:$0xff] }
  0x53   : > { %1183 = vmatpush.bf16.msra.mxu1 %v3588_v11  ;;  %v451_v27 = vld [vmem:[%s4379_s20] sm:$0xff]   ;;  %v520_v29 = vrot.slane %v518_v23, 6  ;;  %v523_v30 = vrot.slane %v521_v24, 7  ;;  %457 = vst [vmem:[#allocation2 + $0x18] sm:$0xff] %v453_v31   ;;  %v2923_v40 = vrot.slane %v459_v26, 10  ;;  %v3576_v45 = vld [vmem:[#allocation11 + $0x8] sm:$0xff]  ;;  %vm4422_vm10 = vmor %vm514_vm5, %vm515_vm6 }
  0x54   : > { %1231 = vmatpush.bf16.msra.mxu3 %v3604_v12  ;;  %v597_v28 = vld [vmem:[#allocation2 + $0x4] sm:$0x8]  ;;  %455 = vst [vmem:[#allocation2 + $0x10] sm:$0xff] %v451_v27   ;;  %v3592_v46 = vld [vmem:[#allocation11 + $0x88] sm:$0xff]  ;;  %v4410_v51 = vrot.slane %v656_v33, 11  ;;  %vm4430_vm11 = vmor %vm652_vm8, %vm653_vm9 }
  0x55   : > { %1160 = vmatpush.bf16.msra.mxu0 %v3579_v13  ;;  %v524_v36 = vor.u32 %v523_v30, %v520_v29  ;;  %v2924_v41 = vrot.slane %v597_v28, 11  ;;  %v460_v42 = vld [vmem:[#allocation2 + $0x8] sm:$0xf]  ;;  %v461_v43 = vld [vmem:[#allocation2 + $0xc] sm:$0xf]  ;;  %v3614_v29 = vld [vmem:[#allocation11 + $0x138] sm:$0xff] }
  0x56   : > { %1208 = vmatpush.bf16.msra.mxu2 %v3595_v14  ;;  %v598_v44 = vld [vmem:[#allocation2 + $0x8] sm:$0xf]  ;;  %v478_v47 = vrot.slane %v460_v42, 6  ;;  %v481_v48 = vrot.slane %v461_v43, 6  ;;  %v599_v49 = vld [vmem:[#allocation2 + $0xc] sm:$0xf] }
  0x57   : > { %1184 = vmatpush.bf16.msra.mxu1 %v3587_v15  ;;  %v616_v50 = vrot.slane %v598_v44, 7  ;;  %v3584_v52 = vld [vmem:[#allocation11 + $0x48] sm:$0xff]  ;;  %v619_v54 = vrot.slane %v599_v49, 7  ;;  %v508_v55 = vld [vmem:[#allocation2 + $0x8] sm:$0xf]  ;;  %v525_v57 = vrot.slane %v524_v36, 4 }
  0x58   : > { %1232 = vmatpush.bf16.msra.mxu3 %v3603_v16  ;;  %v3600_v53 = vld [vmem:[#allocation11 + $0xc8] sm:$0xff]  ;;  %v479_v58 = vsel %vm4400_vm4, %v2923_v40, %v478_v47  ;;  %v480_v59 = vrot.slane %v478_v47, 4  ;;  %v646_v62 = vld [vmem:[#allocation2 + $0x8] sm:$0xf]  ;;  %v527_v0 = vshrl.u32 %v508_v55, 16  ;;  %v530_v1 = vshll.u32 %v508_v55, 16 }
  0x59   : > { %1161 = vmatpush.bf16.msra.mxu0 %v3578_v18  ;;  %v509_v56 = vld [vmem:[#allocation2 + $0xc] sm:$0xf]  ;;  %v617_v60 = vsel %vm4406_vm7, %v2924_v41, %v616_v50  ;;  %v618_v61 = vrot.slane %v616_v50, 4  ;;  %501 = vst [vmem:[#allocation5] sm:$0xf] %v479_v58  ;;  %v3575_v4 = vld [vmem:[#allocation11] sm:$0xff] }
  0x5a   : > { %1209 = vmatpush.bf16.msra.mxu2 %v3594_v19  ;;  %v647_v63 = vld [vmem:[#allocation2 + $0xc] sm:$0xf]  ;;  %v537_v2 = vshrl.u32 %v509_v56, 16  ;;  %v540_v3 = vshll.u32 %v509_v56, 16  ;;  %v3591_v5 = vld [vmem:[#allocation11 + $0x80] sm:$0xff]  ;;  %v482_v6 = vsel %vm4400_vm4, %v480_v59, %v481_v48  ;;  %v661_v8 = vshrl.u32 %v646_v62, 16 }
  0x5b   : > { %1185 = vmatpush.bf16.msra.mxu1 %v3586_v21  ;;  %v620_v7 = vsel %vm4406_vm7, %v618_v61, %v619_v54  ;;  %639 = vst [vmem:[#allocation5 + $0x8] sm:$0xf] %v617_v60  ;;  %v664_v9 = vshll.u32 %v646_v62, 16  ;;  %v462_v10 = vld [vmem:[#allocation2 + $0x10] sm:$0xf]  ;;  %v3583_v11 = vld [vmem:[#allocation11 + $0x40] sm:$0xff] }
  0x5c   : > { %1233 = vmatpush.bf16.msra.mxu3 %v3602_v22  ;;  %v3599_v12 = vld [vmem:[#allocation11 + $0xc0] sm:$0xff]  ;;  %502 = vst [vmem:[#allocation5 + $0x14] sm:$0xf] %v482_v6  ;;  %v529_v13 = vrot.slane %v527_v0, 6  ;;  %v532_v14 = vrot.slane %v530_v1, 7  ;;  %v539_v15 = vrot.slane %v537_v2, 6 }
  0x5d   : > { %1162 = vmatpush.bf16.msra.mxu0 %v3577_v34  ;;  %v542_v16 = vrot.slane %v540_v3, 7  ;;  %640 = vst [vmem:[#allocation5 + $0x1c] sm:$0xf] %v620_v7  ;;  %v663_v18 = vrot.slane %v661_v8, 7  ;;  %v670_v19 = vshrl.u32 %v647_v63, 16  ;;  %v673_v20 = vshll.u32 %v647_v63, 16 }
  0x5e   : > { %1210 = vmatpush.bf16.msra.mxu2 %v3593_v37  ;;  %v483_v21 = vrot.slane %v481_v48, 4  ;;  %v533_v22 = vor.u32 %v532_v14, %v529_v13  ;;  %v4434_v25 = vld [vmem:[#allocation2 + $0x14] sm:$0xf]  ;;  %v484_v26 = vrot.slane %v462_v10, 6  ;;  %v600_v27 = vld [vmem:[#allocation2 + $0x10] sm:$0xf] }
  0x5f   : > { %1186 = vmatpush.bf16.msra.mxu1 %v3585_v38  ;;  %v4426_v23 = vor.u32 %v542_v16, %v539_v15  ;;  %v621_v28 = vrot.slane %v619_v54, 4  ;;  %v666_v30 = vor.u32 %v664_v9, %v663_v18  ;;  %v668_v31 = vrot.slane %v663_v18, 4  ;;  %v4439_v36 = vld [vmem:[#allocation2 + $0x14] sm:$0xf]  ;;  %v510_v40 = vld [vmem:[#allocation2 + $0x10] sm:$0xf] }
  0x60   : > { %1234 = vmatpush.bf16.msra.mxu3 %v3601_v39  ;;  %v4436_v33 = vrot.slane %v670_v19, 7  ;;  %v487_v34 = vrot.slane %v4434_v25, 6  ;;  %v534_v37 = vsel %vm4422_vm10, %v525_v57, %v533_v22  ;;  %v535_v38 = vrot.slane %v533_v22, 4  ;;  %v511_v41 = vld [vmem:[#allocation2 + $0x14] sm:$0xf]  ;;  %v3612_v7 = vld [vmem:[#allocation11 + $0x128] sm:$0xff] }
  0x61   : > { %1163 = vmatpush.bf16.msra.mxu0 %v3576_v45  ;;  %v486_v39 = vrot.slane %v484_v26, 4  ;;  %v2928_v42 = vld [vmem:[#allocation5] sm:$0xf]  ;;  %591 = vst [vmem:[#allocation5 + $0x4] sm:$0xf] %v534_v37  ;;  %v667_v43 = vsel %vm4430_vm11, %v4410_v51, %v666_v30  ;;  %v3613_v45 = vld [vmem:[#allocation11 + $0x130] sm:$0xff]  ;;  %v485_v50 = vsel %vm4400_vm4, %v483_v21, %v484_v26 }
  0x62   : > { %1211 = vmatpush.bf16.msra.mxu2 %v3592_v46  ;;  %v675_v44 = vor.u32 %v673_v20, %v4436_v33  ;;  %v622_v46 = vrot.slane %v600_v27, 7  ;;  %v625_v47 = vrot.slane %v4439_v36, 7  ;;  %v2936_v48 = vld [vmem:[#allocation5 + $0x8] sm:$0xf]  ;;  %v544_v49 = vsel %vm4422_vm10, %v535_v38, %v4426_v23  ;;  %719 = vst [vmem:[#allocation5 + $0xc] sm:$0xf] %v667_v43 }
  0x63   : > { %1187 = vmatpush.bf16.msra.mxu1 %v3584_v52  ;;  %v545_v52 = vrot.slane %v4426_v23, 4  ;;  %v547_v51 = vshrl.u32 %v510_v40, 16  ;;  %592 = vst [vmem:[#allocation5 + $0x18] sm:$0xf] %v544_v49  ;;  %v488_v55 = vsel %vm4400_vm4, %v486_v39, %v487_v34  ;;  %v550_v57 = vshll.u32 %v510_v40, 16  ;;  %v3609_v36 = vld [vmem:[#allocation11 + $0x110] sm:$0xff] }
  0x64   : > { %1235 = vmatpush.bf16.msra.mxu3 %v3600_v53  ;;  %v3562_v53 = vld [vmem:[#allocation5 + $0x10] sm:$0xf0]  ;;  %v676_v54 = vsel %vm4430_vm11, %v668_v31, %v675_v44  ;;  %v624_v56 = vrot.slane %v622_v46, 4  ;;  %v3563_v59 = vld [vmem:[#allocation5 + $0x18] sm:$0xf0]  ;;  %v623_v60 = vsel %vm4406_vm7, %v621_v28, %v622_v46  ;;  %v557_v62 = vshrl.u32 %v511_v41, 16 }
  0x65   : > { %1164 = vmatpush.bf16.msra.mxu0 %v3575_v4  ;;  %v2929_v58 = vor.u32 %v3562_v53, %v2928_v42  ;;  %720 = vst [vmem:[#allocation5 + $0x20] sm:$0xf] %v676_v54  ;;  %v549_v61 = vrot.slane %v547_v51, 6  ;;  %v2937_v63 = vor.u32 %v3563_v59, %v2936_v48  ;;  %v552_v1 = vrot.slane %v550_v57, 7  ;;  %v648_v3 = vld [vmem:[#allocation2 + $0x10] sm:$0xf] }
  0x66   : > { %1212 = vmatpush.bf16.msra.mxu2 %v3591_v5  ;;  %503 = vst [vmem:[#allocation5 + $0x28] sm:$0xf] %v485_v50  ;;  %v626_v0 = vsel %vm4406_vm7, %v624_v56, %v625_v47  ;;  %v560_v2 = vshll.u32 %v511_v41, 16  ;;  %v559_v4 = vrot.slane %v557_v62, 6  ;;  %v649_v5 = vld [vmem:[#allocation2 + $0x14] sm:$0xf] }
  0x67   : > { %1188 = vmatpush.bf16.msra.mxu1 %v3583_v11  ;;  %504 = vst [vmem:[#allocation5 + $0x3c] sm:$0xf] %v488_v55  ;;  %v677_v6 = vrot.slane %v4436_v33, 4  ;;  %v553_v8 = vor.u32 %v552_v1, %v549_v61  ;;  %v679_v10 = vshrl.u32 %v648_v3, 16  ;;  %v682_v11 = vshll.u32 %v648_v3, 16  ;;  %v3611_v31 = vld [vmem:[#allocation11 + $0x120] sm:$0xff] }
  0x68   : > { %1236 = vmatpush.bf16.msra.mxu3 %v3599_v12  ;;  %1165 = vmatmul.bf16.vlgmr.msra.gmra.mxu0 %v2929_v58  ;;  %641 = vst [vmem:[#allocation5 + $0x30] sm:$0xf] %v623_v60  ;;  %v562_v9 = vrot.slane %v560_v2, 7  ;;  %v3560_v12 = vld [vmem:[#allocation5 + $0x4] sm:$0xf]  ;;  %v688_v13 = vshrl.u32 %v649_v5, 16 }
  0x69   : > { %1253 = vmatpush.bf16.msrb.mxu0 %v3614_v29  ;;  %1213 = vmatmul.bf16.vlgmr.msra.gmra.mxu2 %v2937_v63  ;;  %642 = vst [vmem:[#allocation5 + $0x44] sm:$0xf] %v626_v0  ;;  %v691_v14 = vshll.u32 %v649_v5, 16  ;;  %v3561_v15 = vld [vmem:[#allocation5 + $0xc] sm:$0xf]  ;;  %v554_v16 = vsel %vm4422_vm10, %v545_v52, %v553_v8  ;;  %v555_v18 = vrot.slane %v553_v8, 4 }
  0x6a   : > { %v4469_v19 = vor.u32 %v562_v9, %v559_v4  ;;  %v681_v20 = vrot.slane %v679_v10, 7  ;;  %v2930_v21 = vld [vmem:[#allocation5 + $0x14] sm:$0xf0]  ;;  %593 = vst [vmem:[#allocation5 + $0x2c] sm:$0xf] %v554_v16  ;;  %v4471_v22 = vrot.slane %v688_v13, 7 }
  0x6b   : > { %v489_v23 = vrot.slane %v487_v34, 4  ;;  %v2933_v26 = vor.u32 %v3560_v12, %v2930_v21  ;;  %v464_v33 = vld [vmem:[#allocation2 + $0x18] sm:$0xf]  ;;  %v465_v40 = vld [vmem:[#allocation2 + $0x1c] sm:$0x3]  ;;  %v627_v51 = vrot.slane %v625_v47, 4 }
  0x6c   : > { %v2938_v27 = vld [vmem:[#allocation5 + $0x1c] sm:$0xf0]  ;;  %v564_v28 = vsel %vm4422_vm10, %v555_v18, %v4469_v19  ;;  %v684_v29 = vor.u32 %v682_v11, %v681_v20  ;;  %v686_v30 = vrot.slane %v681_v20, 4  ;;  %v693_v39 = vor.u32 %v691_v14, %v4471_v22  ;;  %v3610_v41 = vld [vmem:[#allocation11 + $0x118] sm:$0xff]  ;;  %v602_v44 = vld [vmem:[#allocation2 + $0x18] sm:$0xf] }
  0x6d   : > { %1254 = vmatpush.bf16.msrb.mxu0 %v3613_v45  ;;  %v2941_v37 = vor.u32 %v3561_v15, %v2938_v27  ;;  %v2948_v38 = vld [vmem:[#allocation5 + $0x28] sm:$0xf]  ;;  %594 = vst [vmem:[#allocation5 + $0x40] sm:$0xf] %v564_v28  ;;  %1189 = vmatmul.bf16.vlgmr.msra.gmra.mxu1 %v2933_v26  ;;  %v490_v42 = vrot.slane %v464_v33, 6  ;;  %v493_v43 = vrot.slane %v465_v40, 6 }
  0x6e   : > { %v3567_v25 = vld [vmem:[#allocation5 + $0x38] sm:$0xf0]  ;;  %v685_v34 = vsel %vm4430_vm11, %v677_v6, %v684_v29  ;;  %v694_v46 = vsel %vm4430_vm11, %v686_v30, %v693_v39  ;;  %v603_v48 = vld [vmem:[#allocation2 + $0x1c] sm:$0x7]  ;;  %v628_v53 = vrot.slane %v602_v44, 7  ;;  %v565_v47 = vrot.slane %v4469_v19, 4 }
  0x6f   : > { %1237 = vmatmul.bf16.vlgmr.msra.gmra.mxu3 %v2941_v37  ;;  %v2956_v45 = vld [vmem:[#allocation5 + $0x30] sm:$0xf]  ;;  %721 = vst [vmem:[#allocation5 + $0x34] sm:$0xf] %v685_v34  ;;  %v491_v50 = vsel %vm4400_vm4, %v489_v23, %v490_v42  ;;  %v492_v52 = vrot.slane %v490_v42, 4  ;;  %v631_v54 = vrot.slane %v603_v48, 7  ;;  %v2949_v56 = vor.u32 %v3567_v25, %v2948_v38 }
  0x70   : > { %v3568_v49 = vld [vmem:[#allocation5 + $0x40] sm:$0xf0]  ;;  %722 = vst [vmem:[#allocation5 + $0x48] sm:$0xf] %v694_v46  ;;  %v512_v55 = vld [vmem:[#allocation2 + $0x18] sm:$0xf]  ;;  %v629_v60 = vsel %vm4406_vm7, %v627_v51, %v628_v53 }
  0x71   : > { %1255 = vmatpush.bf16.msrb.mxu0 %v3612_v7  ;;  %505 = vst [vmem:[#allocation5 + $0x50] sm:$0xf] %v491_v50  ;;  %v494_v57 = vsel %vm4400_vm4, %v492_v52, %v493_v43  ;;  %v513_v58 = vld [vmem:[#allocation2 + $0x1c] sm:$0x7]  ;;  %v567_v59 = vshrl.u32 %v512_v55, 16  ;;  %v630_v61 = vrot.slane %v628_v53, 4  ;;  %v2957_v0 = vor.u32 %v3568_v49, %v2956_v45 }
  0x72   : > { %506 = vst [vmem:[#allocation5 + $0x64] sm:$0xf] %v494_v57  ;;  %v570_v62 = vshll.u32 %v512_v55, 16  ;;  %v577_v63 = vshrl.u32 %v513_v58, 16  ;;  %v580_v2 = vshll.u32 %v513_v58, 16  ;;  %v3608_v16 = vld [vmem:[#allocation11 + $0x108] sm:$0xff] }
  0x73   : > { %643 = vst [vmem:[#allocation5 + $0x58] sm:$0xf] %v629_v60  ;;  %v569_v1 = vrot.slane %v567_v59, 6  ;;  %v3565_v3 = vld [vmem:[#allocation5 + $0x2c] sm:$0xf]  ;;  %v632_v4 = vsel %vm4406_vm7, %v630_v61, %v631_v54  ;;  %v695_v20 = vrot.slane %v4471_v22, 4 }
  0x74   : > { %v572_v5 = vrot.slane %v570_v62, 7  ;;  %v579_v6 = vrot.slane %v577_v63, 6  ;;  %v650_v7 = vld [vmem:[#allocation2 + $0x18] sm:$0xf]  ;;  %v651_v8 = vld [vmem:[#allocation2 + $0x1c] sm:$0xf] }
  0x75   : > { %1256 = vmatpush.bf16.msrb.mxu0 %v3611_v31  ;;  %v2950_v9 = vld [vmem:[#allocation5 + $0x3c] sm:$0xf0]  ;;  %644 = vst [vmem:[#allocation5 + $0x6c] sm:$0xf] %v632_v4  ;;  %v582_v10 = vrot.slane %v580_v2, 7  ;;  %v697_v13 = vshrl.u32 %v650_v7, 16 }
  0x76   : > { %v3566_v11 = vld [vmem:[#allocation5 + $0x34] sm:$0xf]  ;;  %v573_v12 = vor.u32 %v572_v5, %v569_v1  ;;  %v700_v14 = vshll.u32 %v650_v7, 16  ;;  %v706_v15 = vshrl.u32 %v651_v8, 16  ;;  %v709_v21 = vshll.u32 %v651_v8, 16  ;;  %v3607_v40 = vld [vmem:[#allocation11 + $0x100] sm:$0xff] }
  0x77   : > { %v2958_v18 = vld [vmem:[#allocation5 + $0x44] sm:$0xf0]  ;;  %v583_v19 = vor.u32 %v582_v10, %v579_v6  ;;  %v725_v23 = vld [vmem:[#allocation2 + $0x8] sm:$0xf]  ;;  %v699_v28 = vrot.slane %v697_v13, 7  ;;  %v2953_v30 = vor.u32 %v3565_v3, %v2950_v9 }
  0x78   : > { %1170 = vmatmul.bf16.gmra.mxu0 %v2949_v56  ;;  %v574_v26 = vsel %vm4422_vm10, %v565_v47, %v573_v12  ;;  %v575_v27 = vrot.slane %v573_v12, 4  ;;  %v708_v29 = vrot.slane %v706_v15, 7  ;;  %v726_v31 = vld [vmem:[#allocation2 + $0xc] sm:$0xf]  ;;  %v2961_v33 = vor.u32 %v3566_v11, %v2958_v18  ;;  %731 = vst [vmem:[#allocation5 + $0x10] sm:$0xf] %v725_v23 }
  0x79   : > { %1257 = vmatpush.bf16.msrb.mxu0 %v3610_v41  ;;  %1218 = vmatmul.bf16.gmra.mxu2 %v2957_v0  ;;  %595 = vst [vmem:[#allocation5 + $0x54] sm:$0xf] %v574_v26  ;;  %v702_v38 = vor.u32 %v700_v14, %v699_v28  ;;  %v704_v39 = vrot.slane %v699_v28, 4  ;;  %v727_v34 = vld [vmem:[#allocation2 + $0x10] sm:$0xf] }
  0x7a   : > { %v584_v37 = vsel %vm4422_vm10, %v575_v27, %v583_v19  ;;  %v711_v22 = vor.u32 %v709_v21, %v708_v29  ;;  %732 = vst [vmem:[#allocation5 + $0x24] sm:$0xf] %v726_v31  ;;  %v728_v42 = vld [vmem:[#allocation2 + $0x14] sm:$0xf]  ;;  %v2968_v43 = vld [vmem:[#allocation5 + $0x50] sm:$0xf] }
  0x7b   : > { %596 = vst [vmem:[#allocation5 + $0x68] sm:$0xf] %v584_v37  ;;  %v703_v25 = vsel %vm4430_vm11, %v695_v20, %v702_v38  ;;  %v3572_v44 = vld [vmem:[#allocation5 + $0x60] sm:$0xf0]  ;;  %v2976_v45 = vld [vmem:[#allocation5 + $0x58] sm:$0xf] }
  0x7c   : > { %v712_v41 = vsel %vm4430_vm11, %v704_v39, %v711_v22  ;;  %723 = vst [vmem:[#allocation5 + $0x5c] sm:$0xf] %v703_v25  ;;  %v3573_v46 = vld [vmem:[#allocation5 + $0x68] sm:$0xf0]  ;;  %v2969_v48 = vor.u32 %v3572_v44, %v2968_v43  ;;  %v730_v53 = vld [vmem:[#allocation2 + $0x1c] sm:$0xf] }
  0x7d   : > { %1258 = vmatpush.bf16.msrb.mxu0 %v3609_v36  ;;  %1194 = vmatmul.bf16.gmra.mxu1 %v2953_v30  ;;  %724 = vst [vmem:[#allocation5 + $0x70] sm:$0xf] %v712_v41  ;;  %v2977_v49 = vor.u32 %v3573_v46, %v2976_v45  ;;  %v729_v51 = vld [vmem:[#allocation2 + $0x18] sm:$0xf]  ;;  %v3871_v9 = vld [vmem:[%s4688_s3] ss:$0 sm:$0xff] }
  0x7e   : > { %733 = vst [vmem:[#allocation5 + $0x38] sm:$0xf] %v727_v34 }
  0x7f   : > { %1242 = vmatmul.bf16.gmra.mxu3 %v2961_v33  ;;  %734 = vst [vmem:[#allocation5 + $0x4c] sm:$0xf] %v728_v42  ;;  %v2944_v58 = vld [vmem:[#allocation5 + $0x10] sm:$0xf] }
  0x80   : > { %v3570_v50 = vld [vmem:[#allocation5 + $0x54] sm:$0xf]  ;;  %735 = vst [vmem:[#allocation5 + $0x60] sm:$0xf] %v729_v51 }
  0x81   : > { %1259 = vmatpush.bf16.msrb.mxu0 %v3608_v16  ;;  %736 = vst [vmem:[#allocation5 + $0x74] sm:$0xf] %v730_v53  ;;  %v3564_v59 = vld [vmem:[#allocation5 + $0x20] sm:$0xf0] }
  0x82   : > { %v2970_v52 = vld [vmem:[#allocation5 + $0x64] sm:$0xf0]  ;;  %v2945_v60 = vor.u32 %v3564_v59, %v2944_v58 }
  0x83   : > { %v3571_v54 = vld [vmem:[#allocation5 + $0x5c] sm:$0xf]  ;;  %v2973_v56 = vor.u32 %v3570_v50, %v2970_v52 }
  0x84   : > { %v2978_v55 = vld [vmem:[#allocation5 + $0x6c] sm:$0xf0] }
  0x85   : > { %1260 = vmatpush.bf16.msrb.mxu0 %v3607_v40  ;;  %v2981_v57 = vor.u32 %v3571_v54, %v2978_v55  ;;  %v2964_v61 = vld [vmem:[#allocation5 + $0x38] sm:$0xf] }
  0x86   : > { %v3569_v62 = vld [vmem:[#allocation5 + $0x48] sm:$0xf0] }
  0x87   : > { %v2965_v63 = vor.u32 %v3569_v62, %v2964_v61  ;;  %v2984_v0 = vld [vmem:[#allocation5 + $0x60] sm:$0xf] }
  0x88   : > { %1175 = vmatmul.bf16.gmra.mxu0 %v2969_v48  ;;  %v3574_v36 = vld [vmem:[#allocation5 + $0x70] sm:$0xf0] }
  0x89   : > { %1223 = vmatmul.bf16.gmra.mxu2 %v2977_v49  ;;  %v2985_v47 = vor.u32 %v3574_v36, %v2984_v0 }
  0x8d   : > { %1199 = vmatmul.bf16.gmra.mxu1 %v2973_v56 }
  0x8f   : > { %1247 = vmatmul.bf16.gmra.mxu3 %v2981_v57 }
  0x98   : > { %1261 = vmatmul.bf16.vlgmr.msrb.gmra.mxu0 %v2945_v60 }
  0xa8   : > { %1266 = vmatmul.bf16.gmra.mxu0 %v2965_v63 }
  0xb8   : > { %1271 = vmatmul.bf16.gmra.mxu0 %v2985_v47 }
  0xe5   : > { %v1166_v1 = vpop.f32.mrf.mxu0 }
  0xe6   : > { %v1167_v13 = vadd.f32 %v3871_v9, %v1166_v1 }
  0xea   : > { %v1190_v5 = vpop.f32.mrf.mxu1 }
  0xeb   : > { %v1191_v16 = vadd.f32 %v1190_v5, %v1167_v13 }
  0xec   : > { %v1214_v6 = vpop.f32.mrf.mxu2 }
  0xed   : > { %v1168_v2 = vpop.f32.mrf.mxu0  ;;  %v1215_v18 = vadd.f32 %v1214_v6, %v1191_v16 }
  0xee   : > { %v1169_v15 = vadd.f32 %v3871_v9, %v1168_v2 }
  0xf2   : > { %v1238_v8 = vpop.f32.mrf.mxu3  ;;  %v1192_v10 = vpop.f32.mrf.mxu1 }
  0xf3   : > { %v1193_v21 = vadd.f32 %v1192_v10, %v1169_v15  ;;  %v1239_v27 = vadd.f32 %v1238_v8, %v1215_v18 }
  0xf4   : > { %v1216_v11 = vpop.f32.mrf.mxu2 }
  0xf5   : > { %v1171_v3 = vpop.f32.mrf.mxu0  ;;  %v1217_v26 = vadd.f32 %v1216_v11, %v1193_v21 }
  0xf6   : > { %v1172_v37 = vadd.f32 %v3871_v9, %v1171_v3 }
  0xfa   : > { %v1240_v14 = vpop.f32.mrf.mxu3  ;;  %v1195_v19 = vpop.f32.mrf.mxu1 }
  0xfb   : > { %v1241_v30 = vadd.f32 %v1240_v14, %v1217_v26  ;;  %v1196_v40 = vadd.f32 %v1195_v19, %v1172_v37 }
  0xfc   : > { %v1219_v23 = vpop.f32.mrf.mxu2 }
  0xfd   : > { %v1173_v4 = vpop.f32.mrf.mxu0  ;;  %v1220_v34 = vadd.f32 %v1219_v23, %v1196_v40 }
  0xfe   : > { %v1174_v22 = vadd.f32 %v3871_v9, %v1173_v4 }
 0x102   : > { %v1243_v28 = vpop.f32.mrf.mxu3  ;;  %v1197_v38 = vpop.f32.mrf.mxu1 }
 0x103   : > { %v1198_v44 = vadd.f32 %v1197_v38, %v1174_v22  ;;  %v1244_v48 = vadd.f32 %v1243_v28, %v1220_v34 }
 0x104   : > { %v1221_v39 = vpop.f32.mrf.mxu2 }
 0x105   : > { %v1176_v7 = vpop.f32.mrf.mxu0  ;;  %v1222_v46 = vadd.f32 %v1221_v39, %v1198_v44 }
 0x106   : > { %v1177_v55 = vadd.f32 %v3871_v9, %v1176_v7 }
 0x10a   : > { %v1245_v41 = vpop.f32.mrf.mxu3  ;;  %v1200_v49 = vpop.f32.mrf.mxu1 }
 0x10b   : > { %v1246_v51 = vadd.f32 %v1245_v41, %v1222_v46  ;;  %v1201_v58 = vadd.f32 %v1200_v49, %v1177_v55 }
 0x10c   : > { %v1224_v50 = vpop.f32.mrf.mxu2 }
 0x10d   : > { %v1178_v12 = vpop.f32.mrf.mxu0  ;;  %v1225_v61 = vadd.f32 %v1224_v50, %v1201_v58 }
 0x10e   : > { %v1179_v57 = vadd.f32 %v3871_v9, %v1178_v12 }
 0x112   : > { %v1248_v56 = vpop.f32.mrf.mxu3  ;;  %v1202_v59 = vpop.f32.mrf.mxu1 }
 0x113   : > { %v1203_v36 = vadd.f32 %v1202_v59, %v1179_v57  ;;  %v1249_v2 = vadd.f32 %v1248_v56, %v1225_v61 }
 0x114   : > { %v1226_v62 = vpop.f32.mrf.mxu2 }
 0x115   : > { %v1262_v20 = vpop.f32.mrf.mxu0  ;;  %v1227_v1 = vadd.f32 %v1226_v62, %v1203_v36 }
 0x116   : > { %v1263_v29 = vadd.f32 %v1262_v20, %v1239_v27 }
 0x118   : > { %3872 = vtanh.f32 %v1263_v29 }
 0x11a   : > { %v1250_v3 = vpop.f32.mrf.mxu3 }
 0x11b   : > { %v1251_v5 = vadd.f32 %v1250_v3, %v1227_v1 }
 0x11d   : > { %v1264_v31 = vpop.f32.mrf.mxu0 }
 0x11e   : > { %v1265_v33 = vadd.f32 %v1264_v31, %v1241_v30  ;;  %v3873_v25 = vpop.eup %3872 }
 0x120   : > { %3874 = vtanh.f32 %v1265_v33 }
 0x125   : > { %v1267_v42 = vpop.f32.mrf.mxu0 }
 0x126   : > { %v3875_v43 = vpop.eup %3874  ;;  %v1268_v52 = vadd.f32 %v1267_v42, %v1244_v48 }
 0x127   : > { %v3718_v45 = vpack.c.bf16 %v3875_v43, %v3873_v25 }
 0x128   : > { %3876 = vtanh.f32 %v1268_v52 }
 0x129   : > { %3719 = vst [vmem:[#allocation3] sm:$0xff] %v3718_v45  }
 0x12d   : > { %v1269_v53 = vpop.f32.mrf.mxu0 }
 0x12e   : > { %v1270_v54 = vadd.f32 %v1269_v53, %v1246_v51  ;;  %v3877_v60 = vpop.eup %3876 }
 0x130   : > { %3878 = vtanh.f32 %v1270_v54 }
 0x135   : > { %v1272_v63 = vpop.f32.mrf.mxu0 }
 0x136   : > { %v3879_v0 = vpop.eup %3878  ;;  %v1273_v4 = vadd.f32 %v1272_v63, %v1249_v2 }
 0x137   : > { %v3723_v47 = vpack.c.bf16 %v3879_v0, %v3877_v60 }
 0x138   : > { %3880 = vtanh.f32 %v1273_v4 }
 0x139   : > { %3740 = vst [vmem:[#allocation3 + $0x8] sm:$0xff] %v3723_v47  }
 0x13d   : > { %v1274_v6 = vpop.f32.mrf.mxu0 }
 0x13e   : > { %v1275_v7 = vadd.f32 %v1274_v6, %v1251_v5  ;;  %v3881_v8 = vpop.eup %3880 }
 0x140   : > { %3882 = vtanh.f32 %v1275_v7 }
 0x145   : > { %1297 = sbr.rel (%p3146_p1) target bundleno = 333 (0x14d), region = 76 }
 0x146   : > { %v3883_v9 = vpop.eup %3882 }
 0x147   : > { %v3728_v10 = vpack.c.bf16 %v3883_v9, %v3881_v8 }
 0x149   : > { %3741 = vst [vmem:[#allocation3 + $0x10] sm:$0xff] %v3728_v10  }
 0x14a   : > { %v4163_v11 = vmov 0  }
 0x14b   : > { %1298 = vst [vmem:[#allocation3] sm:$0xf] %v4163_v11 }
 0x14c   : > { %1299 = vst [vmem:[#allocation3 + $0x4] sm:$0xf] %v4163_v11 }
 0x14d PF: > { %v3632_v12 = vld [vmem:[#allocation12 + $0x38] sm:$0xff]  ;;  %v3631_v15 = vld [vmem:[#allocation12 + $0x30] sm:$0xff]  ;;  %v3630_v21 = vld [vmem:[#allocation12 + $0x28] sm:$0xff] }
 0x14e   : > { %v3640_v13 = vld [vmem:[#allocation12 + $0x78] sm:$0xff]  ;;  %1934 = vmatpush.bf16.msrb.mxu1 %v3632_v12  ;;  %v3639_v16 = vld [vmem:[#allocation12 + $0x70] sm:$0xff]  ;;  %v3638_v23 = vld [vmem:[#allocation12 + $0x68] sm:$0xff] }
 0x14f   : > { %v3648_v14 = vld [vmem:[#allocation12 + $0xb8] sm:$0xff]  ;;  %1957 = vmatpush.bf16.msrb.mxu2 %v3640_v13  ;;  %v3647_v18 = vld [vmem:[#allocation12 + $0xb0] sm:$0xff]  ;;  %v3646_v26 = vld [vmem:[#allocation12 + $0xa8] sm:$0xff] }
 0x150   : > { %1980 = vmatpush.bf16.msrb.mxu3 %v3648_v14  ;;  %v3656_v19 = vld [vmem:[#allocation12 + $0xf8] sm:$0xff]  ;;  %v3655_v20 = vld [vmem:[#allocation12 + $0xf0] sm:$0xff]  ;;  %v3629_v27 = vld [vmem:[#allocation12 + $0x20] sm:$0xff] }
 0x151   : > { %2003 = vmatpush.bf16.msra.mxu0 %v3656_v19  ;;  %v3637_v28 = vld [vmem:[#allocation12 + $0x60] sm:$0xff]  ;;  %v3654_v29 = vld [vmem:[#allocation12 + $0xe8] sm:$0xff]  ;;  %v3628_v25 = vld [vmem:[#allocation12 + $0x18] sm:$0xff] }
 0x152   : > { %1935 = vmatpush.bf16.msrb.mxu1 %v3631_v15  ;;  %v1300_v30 = vld [vmem:[#allocation3] sm:$0xc]  ;;  %v4513_v33 = vld [vmem:[#allocation3 + $0x8] sm:$0xf]  ;;  %v3627_v62 = vld [vmem:[#allocation12 + $0x10] sm:$0xff] }
 0x153   : > { %1958 = vmatpush.bf16.msrb.mxu2 %v3639_v16  ;;  %v1301_v31 = vld [vmem:[#allocation3 + $0x4] sm:$0xf]  ;;  %v3147_v38 = vrot.slane %v1300_v30, 10  ;;  %v1317_v22 = vrot.slane %v4513_v33, 6  ;;  %v1338_v40 = vld [vmem:[#allocation3] sm:$0xc] }
 0x154   : > { %1981 = vmatpush.bf16.msrb.mxu3 %v3647_v18  ;;  %v3645_v37 = vld [vmem:[#allocation12 + $0xa0] sm:$0xff]  ;;  %v1314_v39 = vrot.slane %v1301_v31, 6  ;;  %v3636_v34 = vld [vmem:[#allocation12 + $0x58] sm:$0xff]  ;;  %v1345_v43 = vshrl.u32 %v1338_v40, 16  ;;  %v1348_v44 = vshll.u32 %v1338_v40, 16  ;;  %v3635_v1 = vld [vmem:[#allocation12 + $0x50] sm:$0xff] }
 0x155   : > { %2004 = vmatpush.bf16.msra.mxu0 %v3655_v20  ;;  %v1339_v41 = vld [vmem:[#allocation3 + $0x4] sm:$0xf]  ;;  %v1340_v42 = vld [vmem:[#allocation3 + $0x8] sm:$0xf]  ;;  %v3644_v45 = vld [vmem:[#allocation12 + $0x98] sm:$0xff]  ;;  %v1319_v40 = vrot.slane %v1317_v22, 4 }
 0x156   : > { %1936 = vmatpush.bf16.msrb.mxu1 %v3630_v21  ;;  %v3653_v46 = vld [vmem:[#allocation12 + $0xe0] sm:$0xff]  ;;  %v1315_v48 = vsel %vm4400_vm4, %v3147_v38, %v1314_v39  ;;  %v1316_v49 = vrot.slane %v1314_v39, 4  ;;  %v1354_v50 = vshrl.u32 %v1339_v41, 16  ;;  %v1357_v52 = vshll.u32 %v1339_v41, 16  ;;  %v1412_v51 = vld [vmem:[#allocation3] sm:$0x8] }
 0x157   : > { %1959 = vmatpush.bf16.msrb.mxu2 %v3638_v23  ;;  %1333 = vst [vmem:[#allocation5] sm:$0xf] %v1315_v48  ;;  %v1347_v53 = vrot.slane %v1345_v43, 6  ;;  %v1350_v54 = vrot.slane %v1348_v44, 7  ;;  %v1364_v55 = vshrl.u32 %v1340_v42, 16  ;;  %v1367_v56 = vshll.u32 %v1340_v42, 16 }
 0x158   : > { %1982 = vmatpush.bf16.msrb.mxu3 %v3646_v26  ;;  %v1318_v57 = vsel %vm4400_vm4, %v1316_v49, %v1317_v22  ;;  %v1356_v58 = vrot.slane %v1354_v50, 6  ;;  %v1359_v59 = vrot.slane %v1357_v52, 7  ;;  %v1413_v60 = vld [vmem:[#allocation3 + $0x4] sm:$0xf]  ;;  %v4522_v61 = vld [vmem:[#allocation3 + $0x8] sm:$0xf] }
 0x159   : > { %2005 = vmatpush.bf16.msra.mxu0 %v3654_v29  ;;  %1334 = vst [vmem:[#allocation5 + $0x14] sm:$0xf] %v1318_v57  ;;  %v1351_v63 = vor.u32 %v1350_v54, %v1347_v53  ;;  %v1366_v0 = vrot.slane %v1364_v55, 6  ;;  %v1369_v36 = vrot.slane %v1367_v56, 7  ;;  %v3148_v47 = vrot.slane %v1412_v51, 11  ;;  %v3652_v2 = vld [vmem:[#allocation12 + $0xd8] sm:$0xff] }
 0x15a   : > { %1937 = vmatpush.bf16.msrb.mxu1 %v3629_v27  ;;  %v1360_v3 = vor.u32 %v1359_v59, %v1356_v58  ;;  %v1426_v4 = vrot.slane %v1413_v60, 7  ;;  %v1429_v5 = vrot.slane %v4522_v61, 7  ;;  %v1450_v6 = vld [vmem:[#allocation3] sm:$0x8]  ;;  %v1451_v9 = vld [vmem:[#allocation3 + $0x4] sm:$0xf] }
 0x15b   : > { %1960 = vmatpush.bf16.msrb.mxu2 %v3637_v28  ;;  %v1352_v7 = vrot.slane %v1351_v63, 4  ;;  %v4525_v8 = vor.u32 %v1369_v36, %v1366_v0  ;;  %v1452_v10 = vld [vmem:[#allocation3 + $0x8] sm:$0xf]  ;;  %v1457_v11 = vshrl.u32 %v1450_v6, 16  ;;  %v3643_v12 = vld [vmem:[#allocation12 + $0x90] sm:$0xff]  ;;  %v1462_v16 = vshrl.u32 %v1451_v9, 16 }
 0x15c   : > { %1983 = vmatpush.bf16.msrb.mxu3 %v3645_v37  ;;  %v1362_v13 = vrot.slane %v1360_v3, 4  ;;  %v1427_v14 = vsel %vm4406_vm7, %v3148_v47, %v1426_v4  ;;  %v1428_v15 = vrot.slane %v1426_v4, 4  ;;  %v1303_v18 = vld [vmem:[#allocation3 + $0xc] sm:$0xf]  ;;  %v1465_v23 = vshll.u32 %v1451_v9, 16  ;;  %v3651_v28 = vld [vmem:[#allocation12 + $0xd0] sm:$0xff] }
 0x15d   : > { %2006 = vmatpush.bf16.msra.mxu0 %v3653_v46  ;;  %v3626_v19 = vld [vmem:[#allocation12 + $0x8] sm:$0xff]  ;;  %v1361_v20 = vsel %vm4422_vm10, %v1352_v7, %v1360_v3  ;;  %1445 = vst [vmem:[#allocation5 + $0x8] sm:$0xf] %v1427_v14  ;;  %v3149_v21 = vrot.slane %v1457_v11, 11  ;;  %v1471_v26 = vshrl.u32 %v1452_v10, 16  ;;  %v1464_v31 = vrot.slane %v1462_v16, 7 }
 0x15e   : > { %1938 = vmatpush.bf16.msrb.mxu1 %v3628_v25  ;;  %v3634_v27 = vld [vmem:[#allocation12 + $0x48] sm:$0xff]  ;;  %v1371_v29 = vsel %vm4422_vm10, %v1362_v13, %v4525_v8  ;;  %1407 = vst [vmem:[#allocation5 + $0x4] sm:$0xf] %v1361_v20  ;;  %v1430_v30 = vsel %vm4406_vm7, %v1428_v15, %v1429_v5  ;;  %v1474_v37 = vshll.u32 %v1452_v10, 16  ;;  %v1320_v43 = vrot.slane %v1303_v18, 6  ;;  %v3625_v44 = vld [vmem:[#allocation12] sm:$0xff] }
 0x15f   : > { %1961 = vmatpush.bf16.msrb.mxu2 %v3636_v34  ;;  %1408 = vst [vmem:[#allocation5 + $0x18] sm:$0xf] %v1371_v29  ;;  %v4538_v38 = vrot.slane %v1471_v26, 7  ;;  %v4540_v39 = vld [vmem:[#allocation3 + $0x10] sm:$0xf]  ;;  %v1467_v41 = vor.u32 %v1465_v23, %v1464_v31  ;;  %v1469_v42 = vrot.slane %v1464_v31, 4 }
 0x160   : > { %1984 = vmatpush.bf16.msrb.mxu3 %v3644_v45  ;;  %v3642_v25 = vld [vmem:[#allocation12 + $0x88] sm:$0xff]  ;;  %1446 = vst [vmem:[#allocation5 + $0x1c] sm:$0xf] %v1430_v30  ;;  %v3633_v45 = vld [vmem:[#allocation12 + $0x40] sm:$0xff]  ;;  %v3617_v48 = vld [vmem:[#allocation5 + $0x10] sm:$0xf0]  ;;  %v1321_v54 = vsel %vm4400_vm4, %v1319_v40, %v1320_v43 }
 0x161   : > { %2007 = vmatpush.bf16.msra.mxu0 %v3652_v2  ;;  %v3650_v34 = vld [vmem:[#allocation12 + $0xc8] sm:$0xff]  ;;  %v1476_v49 = vor.u32 %v1474_v37, %v4538_v38  ;;  %v1323_v50 = vrot.slane %v4540_v39, 6  ;;  %v1372_v33 = vrot.slane %v4525_v8, 4  ;;  %v3641_v22 = vld [vmem:[#allocation12 + $0x80] sm:$0xff]  ;;  %v1468_v53 = vsel %vm4430_vm11, %v3149_v21, %v1467_v41  ;;  %v3664_v59 = vld [vmem:[#allocation12 + $0x138] sm:$0xff] }
 0x162   : > { %1939 = vmatpush.bf16.msrb.mxu1 %v3627_v62  ;;  %v3152_v46 = vld [vmem:[#allocation5] sm:$0xf]  ;;  %v1342_v51 = vld [vmem:[#allocation3 + $0x10] sm:$0xf]  ;;  %v1322_v55 = vrot.slane %v1320_v43, 4  ;;  %v1431_v2 = vrot.slane %v1429_v5, 4 }
 0x163   : > { %1962 = vmatpush.bf16.msrb.mxu2 %v3635_v1  ;;  %v1341_v52 = vld [vmem:[#allocation3 + $0xc] sm:$0xf]  ;;  %v4551_v58 = vld [vmem:[#allocation3 + $0x10] sm:$0xf]  ;;  %v1477_v60 = vsel %vm4430_vm11, %v1469_v42, %v1476_v49  ;;  %1510 = vst [vmem:[#allocation5 + $0xc] sm:$0xf] %v1468_v53  ;;  %v3153_v8 = vor.u32 %v3617_v48, %v3152_v46 }
 0x164   : > { %1985 = vmatpush.bf16.msrb.mxu3 %v3643_v12  ;;  %v1374_v56 = vshrl.u32 %v1341_v52, 16  ;;  %v1415_v57 = vld [vmem:[#allocation3 + $0xc] sm:$0xf]  ;;  %v1377_v62 = vshll.u32 %v1341_v52, 16  ;;  %v1384_v63 = vshrl.u32 %v1342_v51, 16  ;;  %v1387_v0 = vshll.u32 %v1342_v51, 16 }
 0x165   : > { %2008 = vmatpush.bf16.msra.mxu0 %v3651_v28  ;;  %v3160_v36 = vld [vmem:[#allocation5 + $0x8] sm:$0xf]  ;;  %1511 = vst [vmem:[#allocation5 + $0x20] sm:$0xf] %v1477_v60  ;;  %v1324_v47 = vsel %vm4400_vm4, %v1322_v55, %v1323_v50  ;;  %v3615_v3 = vld [vmem:[#allocation5 + $0x4] sm:$0xf] }
 0x166   : > { %1940 = vmatpush.bf16.msrb.mxu1 %v3626_v19  ;;  %v1376_v1 = vrot.slane %v1374_v56, 6  ;;  %v3649_v4 = vld [vmem:[#allocation12 + $0xc0] sm:$0xff]  ;;  %1335 = vst [vmem:[#allocation5 + $0x28] sm:$0xf] %v1321_v54  ;;  %v1379_v6 = vrot.slane %v1377_v62, 7  ;;  %v1386_v7 = vrot.slane %v1384_v63, 6 }
 0x167   : > { %1963 = vmatpush.bf16.msrb.mxu2 %v3634_v27  ;;  %v3154_v9 = vld [vmem:[#allocation5 + $0x14] sm:$0xf0]  ;;  %1336 = vst [vmem:[#allocation5 + $0x3c] sm:$0xf] %v1324_v47  ;;  %v1389_v10 = vrot.slane %v1387_v0, 7  ;;  %v1432_v11 = vrot.slane %v1415_v57, 7 }
 0x168   : > { %1986 = vmatpush.bf16.msrb.mxu3 %v3642_v25  ;;  %v3157_v12 = vor.u32 %v3615_v3, %v3154_v9  ;;  %v3618_v13 = vld [vmem:[#allocation5 + $0x18] sm:$0xf0]  ;;  %v1380_v14 = vor.u32 %v1379_v6, %v1376_v1  ;;  %v1435_v15 = vrot.slane %v4551_v58, 7  ;;  %v1453_v61 = vld [vmem:[#allocation3 + $0xc] sm:$0xf]  ;;  %v1478_v5 = vrot.slane %v4538_v38, 4 }
 0x169   : > { %2009 = vmatpush.bf16.msra.mxu0 %v3650_v34  ;;  %v3161_v16 = vor.u32 %v3618_v13, %v3160_v36  ;;  %v3663_v18 = vld [vmem:[#allocation12 + $0x130] sm:$0xff]  ;;  %v4563_v19 = vor.u32 %v1389_v10, %v1386_v7  ;;  %v1433_v20 = vsel %vm4406_vm7, %v1431_v2, %v1432_v11  ;;  %v1434_v21 = vrot.slane %v1432_v11, 4  ;;  %v1454_v23 = vld [vmem:[#allocation3 + $0x10] sm:$0xf]  ;;  %v3661_v57 = vld [vmem:[#allocation12 + $0x120] sm:$0xff] }
 0x16a   : > { %1941 = vmatpush.bf16.msrb.mxu1 %v3625_v44  ;;  %v1305_v26 = vld [vmem:[#allocation3 + $0x14] sm:$0x3]  ;;  %v1381_v27 = vsel %vm4422_vm10, %v1372_v33, %v1380_v14  ;;  %v1382_v28 = vrot.slane %v1380_v14, 4  ;;  %1447 = vst [vmem:[#allocation5 + $0x30] sm:$0xf] %v1433_v20  ;;  %v1480_v29 = vshrl.u32 %v1453_v61, 16 }
 0x16b   : > { %1964 = vmatpush.bf16.msrb.mxu2 %v3633_v45  ;;  %v1483_v30 = vshll.u32 %v1453_v61, 16  ;;  %v3616_v31 = vld [vmem:[#allocation5 + $0xc] sm:$0xf]  ;;  %1409 = vst [vmem:[#allocation5 + $0x2c] sm:$0xf] %v1381_v27  ;;  %v1436_v37 = vsel %vm4406_vm7, %v1434_v21, %v1435_v15  ;;  %v1489_v38 = vshrl.u32 %v1454_v23, 16 }
 0x16c   : > { %1987 = vmatpush.bf16.msrb.mxu3 %v3641_v22  ;;  %v1492_v40 = vshll.u32 %v1454_v23, 16  ;;  %v3162_v25 = vld [vmem:[#allocation5 + $0x1c] sm:$0xf0]  ;;  %v1391_v34 = vsel %vm4422_vm10, %v1382_v28, %v4563_v19  ;;  %1448 = vst [vmem:[#allocation5 + $0x44] sm:$0xf] %v1436_v37  ;;  %v1482_v41 = vrot.slane %v1480_v29, 7 }
 0x16d   : > { %1942 = vmatmul.bf16.vlgmr.msrb.gmra.mxu1 %v3153_v8  ;;  %2010 = vmatpush.bf16.msra.mxu0 %v3649_v4  ;;  %v1325_v42 = vrot.slane %v1323_v50, 4  ;;  %v3165_v43 = vor.u32 %v3616_v31, %v3162_v25  ;;  %v3662_v44 = vld [vmem:[#allocation12 + $0x128] sm:$0xff]  ;;  %1410 = vst [vmem:[#allocation5 + $0x40] sm:$0xf] %v1391_v34  ;;  %v1491_v45 = vrot.slane %v1489_v38, 7  ;;  %v1326_v46 = vrot.slane %v1305_v26, 6 }
 0x16e   : > { %2026 = vmatpush.bf16.msra.mxu1 %v3664_v59  ;;  %1965 = vmatmul.bf16.vlgmr.msrb.gmra.mxu2 %v3157_v12  ;;  %v1485_v48 = vor.u32 %v1483_v30, %v1482_v41  ;;  %v1487_v49 = vrot.slane %v1482_v41, 4  ;;  %v1343_v52 = vld [vmem:[#allocation3 + $0x14] sm:$0x7]  ;;  %v1437_v55 = vrot.slane %v1435_v15, 4  ;;  %v1392_v59 = vrot.slane %v4563_v19, 4  ;;  %v3660_v4 = vld [vmem:[#allocation12 + $0x118] sm:$0xff] }
 0x16f   : > { %1988 = vmatmul.bf16.vlgmr.msrb.gmra.mxu3 %v3161_v16  ;;  %v1494_v51 = vor.u32 %v1492_v40, %v1491_v45  ;;  %v1327_v33 = vsel %vm4400_vm4, %v1325_v42, %v1326_v46  ;;  %v1394_v22 = vshrl.u32 %v1343_v52, 16  ;;  %v1417_v53 = vld [vmem:[#allocation3 + $0x14] sm:$0x7]  ;;  %v1397_v50 = vshll.u32 %v1343_v52, 16  ;;  %v3622_v63 = vld [vmem:[#allocation5 + $0x38] sm:$0xf0] }
 0x170   : > { %2011 = vmatmul.bf16.vlgmr.msra.gmra.mxu0 %v3165_v43  ;;  %v1455_v54 = vld [vmem:[#allocation3 + $0x14] sm:$0xf]  ;;  %v1486_v39 = vsel %vm4430_vm11, %v1478_v5, %v1485_v48  ;;  %1337 = vst [vmem:[#allocation5 + $0x50] sm:$0xf] %v1327_v33  ;;  %v1438_v56 = vrot.slane %v1417_v53, 7  ;;  %v1496_v9 = vrot.slane %v1491_v45, 4 }
 0x171   : > { %v1495_v58 = vsel %vm4430_vm11, %v1487_v49, %v1494_v51  ;;  %1512 = vst [vmem:[#allocation5 + $0x34] sm:$0xf] %v1486_v39  ;;  %v1396_v60 = vrot.slane %v1394_v22, 6  ;;  %v3172_v62 = vld [vmem:[#allocation5 + $0x28] sm:$0xf]  ;;  %v1399_v36 = vrot.slane %v1397_v50, 7 }
 0x172   : > { %2027 = vmatpush.bf16.msra.mxu1 %v3663_v18  ;;  %v3620_v0 = vld [vmem:[#allocation5 + $0x2c] sm:$0xf]  ;;  %1513 = vst [vmem:[#allocation5 + $0x48] sm:$0xf] %v1495_v58  ;;  %v1439_v47 = vsel %vm4406_vm7, %v1437_v55, %v1438_v56  ;;  %v1498_v1 = vshrl.u32 %v1455_v54, 16  ;;  %v1501_v6 = vshll.u32 %v1455_v54, 16  ;;  %v3173_v15 = vor.u32 %v3622_v63, %v3172_v62 }
 0x173   : > { %v3180_v2 = vld [vmem:[#allocation5 + $0x30] sm:$0xf]  ;;  %v3623_v3 = vld [vmem:[#allocation5 + $0x40] sm:$0xf0]  ;;  %1449 = vst [vmem:[#allocation5 + $0x58] sm:$0xf] %v1439_v47  ;;  %v1400_v8 = vor.u32 %v1399_v36, %v1396_v60 }
 0x174   : > { %v3174_v7 = vld [vmem:[#allocation5 + $0x3c] sm:$0xf0]  ;;  %v1500_v10 = vrot.slane %v1498_v1, 7  ;;  %v1515_v11 = vld [vmem:[#allocation3 + $0x4] sm:$0xf]  ;;  %v3181_v5 = vor.u32 %v3623_v3, %v3180_v2  ;;  %v3659_v20 = vld [vmem:[#allocation12 + $0x110] sm:$0xff] }
 0x175   : > { %v1516_v12 = vld [vmem:[#allocation3 + $0x8] sm:$0xf]  ;;  %1520 = vst [vmem:[#allocation5 + $0x10] sm:$0xf] %v1515_v11  ;;  %v1401_v13 = vsel %vm4422_vm10, %v1392_v59, %v1400_v8  ;;  %v3177_v61 = vor.u32 %v3620_v0, %v3174_v7  ;;  %v1517_v23 = vld [vmem:[#allocation3 + $0xc] sm:$0xf] }
 0x176   : > { %2028 = vmatpush.bf16.msra.mxu1 %v3662_v44  ;;  %v1503_v14 = vor.u32 %v1501_v6, %v1500_v10  ;;  %1521 = vst [vmem:[#allocation5 + $0x24] sm:$0xf] %v1516_v12  ;;  %v1518_v26 = vld [vmem:[#allocation3 + $0x10] sm:$0xf]  ;;  %v3657_v30 = vld [vmem:[#allocation12 + $0x100] sm:$0xff] }
 0x177   : > { %1411 = vst [vmem:[#allocation5 + $0x54] sm:$0xf] %v1401_v13  ;;  %v3658_v27 = vld [vmem:[#allocation12 + $0x108] sm:$0xff]  ;;  %v1519_v43 = vld [vmem:[#allocation3 + $0x14] sm:$0xf] }
 0x178   : > { %v3621_v16 = vld [vmem:[#allocation5 + $0x34] sm:$0xf]  ;;  %v1504_v18 = vsel %vm4430_vm11, %v1496_v9, %v1503_v14  ;;  %1522 = vst [vmem:[#allocation5 + $0x38] sm:$0xf] %v1517_v23 }
 0x179   : > { %v3182_v19 = vld [vmem:[#allocation5 + $0x44] sm:$0xf0]  ;;  %1514 = vst [vmem:[#allocation5 + $0x5c] sm:$0xf] %v1504_v18 }
 0x17a   : > { %2029 = vmatpush.bf16.msra.mxu1 %v3661_v57  ;;  %v3185_v21 = vor.u32 %v3621_v16, %v3182_v19  ;;  %1523 = vst [vmem:[#allocation5 + $0x4c] sm:$0xf] %v1518_v26 }
 0x17b   : > { %1524 = vst [vmem:[#allocation5 + $0x60] sm:$0xf] %v1519_v43 }
 0x17c   : > { %v3168_v44 = vld [vmem:[#allocation5 + $0x10] sm:$0xf] }
 0x17d   : > { %1947 = vmatmul.bf16.gmra.mxu1 %v3173_v15  ;;  %v3619_v45 = vld [vmem:[#allocation5 + $0x20] sm:$0xf0] }
 0x17e   : > { %2030 = vmatpush.bf16.msra.mxu1 %v3660_v4  ;;  %1970 = vmatmul.bf16.gmra.mxu2 %v3177_v61  ;;  %v1537_v28 = vld [vmem:[#allocation5 + $0x50] sm:$0xff]  ;;  %v3169_v46 = vor.u32 %v3619_v45, %v3168_v44 }
 0x17f   : > { %1993 = vmatmul.bf16.gmra.mxu3 %v3181_v5  ;;  %v1659_v31 = vunpack.c.l.b16 %v1537_v28  ;;  %v1660_v37 = vunpack.c.h.b16 %v1537_v28  ;;  %v3188_v48 = vld [vmem:[#allocation5 + $0x38] sm:$0xf]  ;;  %v3884_v4 = vld [vmem:[%s4690_s5] ss:$0 sm:$0xff] }
 0x180   : > { %2016 = vmatmul.bf16.gmra.mxu0 %v3185_v21  ;;  %v1538_v29 = vld [vmem:[#allocation5 + $0x58] sm:$0xff] }
 0x181   : > { %v1661_v38 = vunpack.c.l.b16 %v1538_v29  ;;  %v1674_v40 = vpack.c.b16 %v1659_v31, %v1659_v31  ;;  %v1675_v25 = vpack.c.b16 %v1660_v37, %v1660_v37  ;;  %v1662_v34 = vunpack.c.h.b16 %v1538_v29  ;;  %v3624_v49 = vld [vmem:[#allocation5 + $0x48] sm:$0xf0] }
 0x182   : > { %2031 = vmatpush.bf16.msra.mxu1 %v3659_v20  ;;  %v3189_v52 = vor.u32 %v3624_v49, %v3188_v48  ;;  %v1539_v51 = vld [vmem:[#allocation5 + $0x60] sm:$0xf] }
 0x183   : > { %v1676_v41 = vpack.c.b16 %v1661_v38, %v1661_v38  ;;  %v1677_v42 = vpack.c.b16 %v1662_v34, %v1662_v34  ;;  %v1663_v33 = vunpack.c.l.b16 %v1539_v51 }
 0x185   : > { %v1678_v22 = vpack.c.b16 %v1663_v33, %v1663_v33 }
 0x186   : > { %2032 = vmatpush.bf16.msra.mxu1 %v3658_v27 }
 0x18a   : > { %2033 = vmatpush.bf16.msra.mxu1 %v3657_v30 }
 0x18d   : > { %1952 = vmatmul.bf16.gmra.mxu1 %v1674_v40 }
 0x18e   : > { %1975 = vmatmul.bf16.gmra.mxu2 %v1675_v25 }
 0x18f   : > { %1998 = vmatmul.bf16.gmra.mxu3 %v1676_v41 }
 0x190   : > { %2021 = vmatmul.bf16.gmra.mxu0 %v1677_v42 }
 0x19d   : > { %2034 = vmatmul.bf16.vlgmr.msra.gmra.mxu1 %v3169_v46 }
 0x1ad   : > { %2039 = vmatmul.bf16.gmra.mxu1 %v3189_v52 }
 0x1bd   : > { %2044 = vmatmul.bf16.gmra.mxu1 %v1678_v22 }
 0x1ea   : > { %v1943_v53 = vpop.f32.mrf.mxu1 }
 0x1eb   : > { %v1944_v9 = vadd.f32 %v3884_v4, %v1943_v53 }
 0x1ed   : > { %v2012_v54 = vpop.f32.mrf.mxu0 }
 0x1f1   : > { %v1966_v39 = vpop.f32.mrf.mxu2 }
 0x1f2   : > { %v1989_v50 = vpop.f32.mrf.mxu3  ;;  %v1945_v55 = vpop.f32.mrf.mxu1  ;;  %v1967_v10 = vadd.f32 %v1966_v39, %v1944_v9 }
 0x1f3   : > { %v1946_v12 = vadd.f32 %v3884_v4, %v1945_v55 }
 0x1f4   : > { %v1990_v61 = vadd.f32 %v1989_v50, %v1967_v10 }
 0x1f5   : > { %v2014_v56 = vpop.f32.mrf.mxu0 }
 0x1f6   : > { %v2013_v18 = vadd.f32 %v2012_v54, %v1990_v61 }
 0x1f9   : > { %v1968_v57 = vpop.f32.mrf.mxu2 }
 0x1fa   : > { %v1991_v58 = vpop.f32.mrf.mxu3  ;;  %v1948_v59 = vpop.f32.mrf.mxu1  ;;  %v1969_v14 = vadd.f32 %v1968_v57, %v1946_v12 }
 0x1fb   : > { %v1949_v26 = vadd.f32 %v3884_v4, %v1948_v59 }
 0x1fc   : > { %v1992_v16 = vadd.f32 %v1991_v58, %v1969_v14 }
 0x1fd   : > { %v2017_v60 = vpop.f32.mrf.mxu0 }
 0x1fe   : > { %v2015_v20 = vadd.f32 %v2014_v56, %v1992_v16 }
 0x201   : > { %v1971_v62 = vpop.f32.mrf.mxu2 }
 0x202   : > { %v1994_v63 = vpop.f32.mrf.mxu3  ;;  %v1950_v0 = vpop.f32.mrf.mxu1  ;;  %v1972_v27 = vadd.f32 %v1971_v62, %v1949_v26 }
 0x203   : > { %v1951_v28 = vadd.f32 %v3884_v4, %v1950_v0 }
 0x204   : > { %v1995_v31 = vadd.f32 %v1994_v63, %v1972_v27 }
 0x205   : > { %v2019_v36 = vpop.f32.mrf.mxu0 }
 0x206   : > { %v2018_v34 = vadd.f32 %v2017_v60, %v1995_v31 }
 0x209   : > { %v1973_v47 = vpop.f32.mrf.mxu2 }
 0x20a   : > { %v1996_v1 = vpop.f32.mrf.mxu3  ;;  %v1953_v2 = vpop.f32.mrf.mxu1  ;;  %v1974_v29 = vadd.f32 %v1973_v47, %v1951_v28 }
 0x20b   : > { %v1954_v41 = vadd.f32 %v3884_v4, %v1953_v2 }
 0x20c   : > { %v1997_v25 = vadd.f32 %v1996_v1, %v1974_v29 }
 0x20d   : > { %v2022_v3 = vpop.f32.mrf.mxu0 }
 0x20e   : > { %v2020_v43 = vadd.f32 %v2019_v36, %v1997_v25 }
 0x211   : > { %v1976_v6 = vpop.f32.mrf.mxu2 }
 0x212   : > { %v1999_v7 = vpop.f32.mrf.mxu3  ;;  %v1955_v8 = vpop.f32.mrf.mxu1  ;;  %v1977_v44 = vadd.f32 %v1976_v6, %v1954_v41 }
 0x214   : > { %v2000_v48 = vadd.f32 %v1999_v7, %v1977_v44 }
 0x215   : > { %v2024_v11 = vpop.f32.mrf.mxu0 }
 0x216   : > { %v2023_v49 = vadd.f32 %v2022_v3, %v2000_v48 }
 0x219   : > { %v1978_v13 = vpop.f32.mrf.mxu2 }
 0x21a   : > { %v2001_v15 = vpop.f32.mrf.mxu3  ;;  %v2035_v5 = vpop.f32.mrf.mxu1 }
 0x21b   : > { %v2036_v19 = vadd.f32 %v2035_v5, %v2013_v18 }
 0x21d   : > { %3885 = vtanh.f32 %v2036_v19 }
 0x222   : > { %v2037_v21 = vpop.f32.mrf.mxu1 }
 0x223   : > { %v2038_v23 = vadd.f32 %v2037_v21, %v2015_v20  ;;  %v3886_v30 = vpop.eup %3885 }
 0x225   : > { %3887 = vtanh.f32 %v2038_v23 }
 0x22a   : > { %v2040_v37 = vpop.f32.mrf.mxu1 }
 0x22b   : > { %v3888_v38 = vpop.eup %3887  ;;  %v2041_v42 = vadd.f32 %v2040_v37, %v2018_v34 }
 0x22c   : > { %v3733_v40 = vpack.c.bf16 %v3888_v38, %v3886_v30 }
 0x22d   : > { %3889 = vtanh.f32 %v2041_v42 }
 0x22e   : > { %3734 = vst [vmem:[#allocation4] sm:$0xff] %v3733_v40  }
 0x232   : > { %v2042_v45 = vpop.f32.mrf.mxu1 }
 0x233   : > { %v2043_v46 = vadd.f32 %v2042_v45, %v2020_v43  ;;  %v3890_v52 = vpop.eup %3889 }
 0x235   : > { %3891 = vtanh.f32 %v2043_v46 }
 0x23a   : > { %v2045_v51 = vpop.f32.mrf.mxu1 }
 0x23b   : > { %v3892_v33 = vpop.eup %3891  ;;  %v2046_v22 = vadd.f32 %v2045_v51, %v2023_v49 }
 0x23c   : > { %v3738_v53 = vpack.c.bf16 %v3892_v33, %v3890_v52 }
 0x23d   : > { %3893 = vtanh.f32 %v2046_v22 }
 0x23e   : > { %3742 = vst [vmem:[#allocation4 + $0x8] sm:$0xff] %v3738_v53  }
 0x242   : > { %v2047_v54 = vpop.f32.mrf.mxu1  ;;  %2066 = sbr.rel (%p3146_p1) target bundleno = 585 (0x249), region = 80 }
 0x243   : > { %v3894_v39 = vpop.eup %3893 }
 0x244   : > { %v2058_v50 = vpack.c.bf16 %v3894_v39, %v3894_v39 }
 0x246   : > { %2063 = vst [vmem:[#allocation4 + $0x10] sm:$0xf] %v2058_v50 }
 0x247   : > { %v4164_v55 = vmov 0  }
 0x248   : > { %2067 = vst [vmem:[#allocation4] sm:$0xf] %v4164_v55 }
 0x249 PF: > { %v3682_v56 = vld [vmem:[#allocation14 + $0x38] sm:$0xff]  ;;  %v3681_v58 = vld [vmem:[#allocation14 + $0x30] sm:$0xff]  ;;  %v3680_v60 = vld [vmem:[#allocation14 + $0x28] sm:$0xff]  ;;  %s3555_s21 = sshll.u32 %s4140_s30, 2  ;;  %s3556_s27 = sshll.u32 %s4144_s9, 4 }
 0x24a   : > { %v3690_v57 = vld [vmem:[#allocation14 + $0x78] sm:$0xff]  ;;  %2640 = vmatpush.bf16.msra.mxu2 %v3682_v56  ;;  %v3689_v59 = vld [vmem:[#allocation14 + $0x70] sm:$0xff]  ;;  %v3688_v62 = vld [vmem:[#allocation14 + $0x68] sm:$0xff]  ;;  %s2751_s2 = sadd.s32 %s3556_s27, %s3555_s21  ;;  %s4739_s14 = sld [smem:[#allocation32_spill]] }
 0x24b   : > { %2659 = vmatpush.bf16.msra.mxu3 %v3690_v57  ;;  %v2069_v0 = vld [vmem:[#allocation4 + $0x4] sm:$0xf]  ;;  %v2070_v36 = vld [vmem:[#allocation4 + $0x8] sm:$0xf]  ;;  %v3679_v61 = vld [vmem:[#allocation14 + $0x20] sm:$0xff]  ;;  %s3557_s19 = sshll.u32 %s2751_s2, 3 }
 0x24c   : > { %v2080_v1 = vrot.slane %v2069_v0, 6  ;;  %v2083_v3 = vrot.slane %v2070_v36, 6  ;;  %v2100_v4 = vld [vmem:[#allocation4 + $0x4] sm:$0xf]  ;;  %v2101_v6 = vld [vmem:[#allocation4 + $0x8] sm:$0xf] }
 0x24d   : > { %v2114_v11 = vshrl.u32 %v2100_v4, 16  ;;  %v2117_v13 = vshll.u32 %v2100_v4, 16  ;;  %v2124_v14 = vshrl.u32 %v2101_v6, 16  ;;  %v2127_v15 = vshll.u32 %v2101_v6, 16  ;;  %v3687_v5 = vld [vmem:[#allocation14 + $0x60] sm:$0xff]  ;;  %v3714_v26 = vld [vmem:[#allocation14 + $0x138] sm:$0xff] }
 0x24e   : > { %2641 = vmatpush.bf16.msra.mxu2 %v3681_v58  ;;  %v2082_v9 = vrot.slane %v2080_v1, 4  ;;  %v3678_v27 = vld [vmem:[#allocation14 + $0x18] sm:$0xff]  ;;  %v3713_v30 = vld [vmem:[#allocation14 + $0x130] sm:$0xff]  ;;  %v2085_v31 = vrot.slane %v2083_v3, 4  ;;  %2716 = vmatpush.bf16.msrb.mxu0 %v3714_v26  ;;  %v2071_v40 = vld [vmem:[#allocation4 + $0xc] sm:$0xf] }
 0x24f   : > { %v2068_v63 = vld [vmem:[#allocation4] sm:$0xc]  ;;  %2660 = vmatpush.bf16.msra.mxu3 %v3689_v59  ;;  %v2116_v19 = vrot.slane %v2114_v11, 6  ;;  %v2119_v20 = vrot.slane %v2117_v13, 7  ;;  %v2126_v21 = vrot.slane %v2124_v14, 6  ;;  %v2129_v23 = vrot.slane %v2127_v15, 7  ;;  %3743 = vmatpush.bf16.msrb.mxu1 %v3714_v26 }
 0x250   : > { %v3351_v47 = vrot.slane %v2068_v63, 10  ;;  %v2099_v2 = vld [vmem:[#allocation4] sm:$0xc]  ;;  %v2084_v16 = vsel %vm4400_vm4, %v2082_v9, %v2083_v3  ;;  %v3686_v28 = vld [vmem:[#allocation14 + $0x58] sm:$0xff]  ;;  %v2072_v25 = vld [vmem:[#allocation4 + $0x10] sm:$0x3]  ;;  %s2753_s11 = scalar_lea.hbm %s4739_s14, %s3557_s19 }
 0x251   : > { %v2105_v7 = vshrl.u32 %v2099_v2, 16  ;;  %v2108_v10 = vshll.u32 %v2099_v2, 16  ;;  %2096 = vst [vmem:[#allocation5 + $0x14] sm:$0xf] %v2084_v16  ;;  %v2120_v37 = vor.u32 %v2119_v20, %v2116_v19  ;;  %v2130_v38 = vor.u32 %v2129_v23, %v2126_v21  ;;  %v2102_v34 = vld [vmem:[#allocation4 + $0xc] sm:$0xf] }
 0x252   : > { %v2081_v8 = vsel %vm4400_vm4, %v3351_v47, %v2080_v1  ;;  %2642 = vmatpush.bf16.msra.mxu2 %v3680_v60  ;;  %v2086_v42 = vrot.slane %v2071_v40, 6  ;;  %v2089_v43 = vrot.slane %v2072_v25, 6  ;;  %v2103_v44 = vld [vmem:[#allocation4 + $0x10] sm:$0x7]  ;;  %v2134_v45 = vshrl.u32 %v2102_v34, 16  ;;  %2717 = vmatpush.bf16.msrb.mxu0 %v3713_v30  ;;  %v3712_v57 = vld [vmem:[#allocation14 + $0x128] sm:$0xff] }
 0x253   : > { %2095 = vst [vmem:[#allocation5] sm:$0xf] %v2081_v8  ;;  %v2107_v12 = vrot.slane %v2105_v7, 6  ;;  %2661 = vmatpush.bf16.msra.mxu3 %v3688_v62  ;;  %v2110_v18 = vrot.slane %v2108_v10, 7  ;;  %v2122_v46 = vrot.slane %v2120_v37, 4  ;;  %v2132_v48 = vrot.slane %v2130_v38, 4  ;;  %3744 = vmatpush.bf16.msrb.mxu1 %v3713_v30 }
 0x254   : > { %v2137_v49 = vshll.u32 %v2102_v34, 16  ;;  %v2144_v52 = vshrl.u32 %v2103_v44, 16  ;;  %v2087_v33 = vsel %vm4400_vm4, %v2085_v31, %v2086_v42  ;;  %v2088_v22 = vrot.slane %v2086_v42, 4  ;;  %v2192_v54 = vld [vmem:[#allocation4 + $0x4] sm:$0xf]  ;;  %v3677_v58 = vld [vmem:[#allocation14 + $0x10] sm:$0xff] }
 0x255   : > { %v2111_v29 = vor.u32 %v2110_v18, %v2107_v12  ;;  %v2136_v53 = vrot.slane %v2134_v45, 6  ;;  %v2131_v39 = vsel %vm4422_vm10, %v2122_v46, %v2130_v38  ;;  %v2147_v56 = vshll.u32 %v2103_v44, 16  ;;  %v3685_v59 = vld [vmem:[#allocation14 + $0x50] sm:$0xff]  ;;  %2097 = vst [vmem:[#allocation5 + $0x28] sm:$0xf] %v2087_v33  ;;  %v3711_v0 = vld [vmem:[#allocation14 + $0x120] sm:$0xff] }
 0x256   : > { %2643 = vmatpush.bf16.msra.mxu2 %v3679_v61  ;;  %v2139_v50 = vrot.slane %v2137_v49, 7  ;;  %v2146_v55 = vrot.slane %v2144_v52, 6  ;;  %2157 = vst [vmem:[#allocation5 + $0x18] sm:$0xf] %v2131_v39  ;;  %v2090_v60 = vsel %vm4400_vm4, %v2088_v22, %v2089_v43  ;;  %v2202_v36 = vshrl.u32 %v2192_v54, 16  ;;  %v3676_v47 = vld [vmem:[#allocation14 + $0x8] sm:$0xff]  ;;  %2718 = vmatpush.bf16.msrb.mxu0 %v3712_v57 }
 0x257   : > { %2662 = vmatpush.bf16.msra.mxu3 %v3687_v5  ;;  %v2112_v41 = vrot.slane %v2111_v29, 4  ;;  %v2149_v63 = vrot.slane %v2147_v56, 7  ;;  %v3684_v1 = vld [vmem:[#allocation14 + $0x48] sm:$0xff]  ;;  %2098 = vst [vmem:[#allocation5 + $0x3c] sm:$0xf] %v2090_v60  ;;  %3745 = vmatpush.bf16.msrb.mxu1 %v3712_v57  ;;  %v2205_v61 = vshll.u32 %v2192_v54, 16 }
 0x258   : > { %v2140_v62 = vor.u32 %v2139_v50, %v2136_v53  ;;  %v2160_v2 = vld [vmem:[#allocation4] sm:$0x8]  ;;  %v2161_v3 = vld [vmem:[#allocation4 + $0x4] sm:$0xf]  ;;  %v4608_v8 = vld [vmem:[#allocation4 + $0x8] sm:$0xf] }
 0x259   : > { %v2121_v51 = vsel %vm4422_vm10, %v2112_v41, %v2120_v37  ;;  %v2150_v7 = vor.u32 %v2149_v63, %v2146_v55  ;;  %v3352_v32 = vrot.slane %v2160_v2, 11  ;;  %v2191_v9 = vld [vmem:[#allocation4] sm:$0x8]  ;;  %v2172_v10 = vrot.slane %v2161_v3, 7  ;;  %v2193_v12 = vld [vmem:[#allocation4 + $0x8] sm:$0xf] }
 0x25a   : > { %2156 = vst [vmem:[#allocation5 + $0x4] sm:$0xf] %v2121_v51  ;;  %2644 = vmatpush.bf16.msra.mxu2 %v3678_v27  ;;  %v2141_v4 = vsel %vm4422_vm10, %v2132_v48, %v2140_v62  ;;  %v2142_v6 = vrot.slane %v2140_v62, 4  ;;  %v2175_v11 = vrot.slane %v4608_v8, 7  ;;  %v2197_v14 = vshrl.u32 %v2191_v9, 16  ;;  %v3675_v5 = vld [vmem:[#allocation14] sm:$0xff]  ;;  %2719 = vmatpush.bf16.msrb.mxu0 %v3711_v0 }
 0x25b   : > { %2663 = vmatpush.bf16.msra.mxu3 %v3686_v28  ;;  %2158 = vst [vmem:[#allocation5 + $0x2c] sm:$0xf] %v2141_v4  ;;  %v2204_v15 = vrot.slane %v2202_v36, 7  ;;  %v3356_v16 = vld [vmem:[#allocation5] sm:$0xf]  ;;  %v2173_v20 = vsel %vm4406_vm7, %v3352_v32, %v2172_v10  ;;  %v2174_v21 = vrot.slane %v2172_v10, 4  ;;  %3746 = vmatpush.bf16.msrb.mxu1 %v3711_v0 }
 0x25c   : > { %v2151_v13 = vsel %vm4422_vm10, %v2142_v6, %v2150_v7  ;;  %v3667_v18 = vld [vmem:[#allocation5 + $0x10] sm:$0xf0]  ;;  %v2211_v23 = vshrl.u32 %v2193_v12, 16  ;;  %2187 = vst [vmem:[#allocation5 + $0x8] sm:$0xf] %v2173_v20  ;;  %v3353_v17 = vrot.slane %v2197_v14, 11 }
 0x25d   : > { %2159 = vst [vmem:[#allocation5 + $0x40] sm:$0xf] %v2151_v13  ;;  %v3358_v26 = vld [vmem:[#allocation5 + $0x14] sm:$0xf0]  ;;  %v3710_v27 = vld [vmem:[#allocation14 + $0x118] sm:$0xff]  ;;  %v2207_v28 = vor.u32 %v2205_v61, %v2204_v15  ;;  %v2176_v30 = vsel %vm4406_vm7, %v2174_v21, %v2175_v11  ;;  %v2209_v31 = vrot.slane %v2204_v15, 4  ;;  %v3357_v42 = vor.u32 %v3667_v18, %v3356_v16 }
 0x25e   : > { %2645 = vmatpush.bf16.msra.mxu2 %v3677_v58  ;;  %v3683_v29 = vld [vmem:[#allocation14 + $0x40] sm:$0xff]  ;;  %v4617_v37 = vrot.slane %v2211_v23, 7  ;;  %v2214_v38 = vshll.u32 %v2193_v12, 16  ;;  %v3698_v40 = vld [vmem:[#allocation14 + $0xb8] sm:$0xff]  ;;  %2188 = vst [vmem:[#allocation5 + $0x1c] sm:$0xf] %v2176_v30  ;;  %2720 = vmatpush.bf16.msrb.mxu0 %v3710_v27 }
 0x25f   : > { %2664 = vmatpush.bf16.msra.mxu3 %v3685_v59  ;;  %v3706_v25 = vld [vmem:[#allocation14 + $0xf8] sm:$0xff]  ;;  %v2208_v34 = vsel %vm4430_vm11, %v3353_v17, %v2207_v28  ;;  %3747 = vmatpush.bf16.msrb.mxu1 %v3710_v27  ;;  %v3709_v44 = vld [vmem:[#allocation14 + $0x110] sm:$0xff]  ;;  %v2163_v51 = vld [vmem:[#allocation4 + $0xc] sm:$0xf]  ;;  %v2177_v50 = vrot.slane %v2175_v11, 4  ;;  %s2754_s9 = sshll.u32 %s4508_s4, 4  ;;  %s2755_s9 = int_to_ptr.vmem [resolvable:$true] %s2754_s9 }
 0x260   : > { %v2216_v41 = vor.u32 %v2214_v38, %v4617_v37  ;;  %2240 = vst [vmem:[#allocation5 + $0xc] sm:$0xf] %v2208_v34  ;;  %v3697_v46 = vld [vmem:[#allocation14 + $0xb0] sm:$0xff]  ;;  %v2244_v49 = vld [vmem:[#allocation4 + $0x4] sm:$0xf]  ;;  %v3708_v22 = vld [vmem:[#allocation14 + $0x108] sm:$0xff] }
 0x261   : > { %v3665_v19 = vld [vmem:[#allocation5 + $0x4] sm:$0xf]  ;;  %v3705_v48 = vld [vmem:[#allocation14 + $0xf0] sm:$0xff]  ;;  %v2245_v52 = vld [vmem:[#allocation4 + $0x8] sm:$0xf]  ;;  %v2178_v55 = vrot.slane %v2163_v51, 7 }
 0x262   : > { %2646 = vmatpush.bf16.msra.mxu2 %v3676_v47  ;;  %v3361_v43 = vor.u32 %v3665_v19, %v3358_v26  ;;  %v2217_v45 = vsel %vm4430_vm11, %v2209_v31, %v2216_v41  ;;  %2248 = vst [vmem:[#allocation5 + $0x10] sm:$0xf] %v2244_v49  ;;  %v2194_v33 = vld [vmem:[#allocation4 + $0xc] sm:$0xf]  ;;  %2721 = vmatpush.bf16.msrb.mxu0 %v3709_v44  ;;  %v2164_v53 = vld [vmem:[#allocation4 + $0x10] sm:$0x7] }
 0x263   : > { %2665 = vmatpush.bf16.msra.mxu3 %v3684_v1  ;;  %2241 = vst [vmem:[#allocation5 + $0x20] sm:$0xf] %v2217_v45  ;;  %3748 = vmatpush.bf16.msrb.mxu1 %v3709_v44  ;;  %v3696_v54 = vld [vmem:[#allocation14 + $0xa8] sm:$0xff]  ;;  %v2181_v56 = vrot.slane %v2164_v53, 7  ;;  %v2195_v57 = vld [vmem:[#allocation4 + $0x10] sm:$0xf]  ;;  %v2179_v60 = vsel %vm4406_vm7, %v2177_v50, %v2178_v55 }
 0x264   : > { %2249 = vst [vmem:[#allocation5 + $0x24] sm:$0xf] %v2245_v52  ;;  %v3704_v39 = vld [vmem:[#allocation14 + $0xe8] sm:$0xff]  ;;  %v2220_v58 = vshrl.u32 %v2194_v33, 16  ;;  %v2223_v59 = vshll.u32 %v2194_v33, 16  ;;  %v2180_v62 = vrot.slane %v2178_v55, 4 }
 0x265   : > { %v2229_v63 = vshrl.u32 %v2195_v57, 16  ;;  %v2232_v0 = vshll.u32 %v2195_v57, 16  ;;  %v3707_v36 = vld [vmem:[#allocation14 + $0x100] sm:$0xff]  ;;  %2189 = vst [vmem:[#allocation5 + $0x30] sm:$0xf] %v2179_v60  ;;  %v2218_v47 = vrot.slane %v4617_v37, 4 }
 0x266   : > { %2647 = vmatpush.bf16.msra.mxu2 %v3675_v5  ;;  %2722 = vmatpush.bf16.msrb.mxu0 %v3708_v22  ;;  %v2222_v1 = vrot.slane %v2220_v58, 7  ;;  %v3695_v2 = vld [vmem:[#allocation14 + $0xa0] sm:$0xff]  ;;  %v2182_v4 = vsel %vm4406_vm7, %v2180_v62, %v2181_v56  ;;  %v3376_v7 = vld [vmem:[#allocation5 + $0x28] sm:$0xf]  ;;  %v3670_v11 = vld [vmem:[#allocation5 + $0x2c] sm:$0xf] }
 0x267   : > { %2666 = vmatpush.bf16.msra.mxu3 %v3683_v29  ;;  %3749 = vmatpush.bf16.msrb.mxu1 %v3708_v22  ;;  %v3703_v3 = vld [vmem:[#allocation14 + $0xe0] sm:$0xff]  ;;  %v2231_v6 = vrot.slane %v2229_v63, 7  ;;  %2190 = vst [vmem:[#allocation5 + $0x44] sm:$0xf] %v2182_v4  ;;  %v3378_v15 = vld [vmem:[#allocation5 + $0x3c] sm:$0xf0] }
 0x268   : > { %v3672_v8 = vld [vmem:[#allocation5 + $0x38] sm:$0xf0]  ;;  %v2225_v9 = vor.u32 %v2223_v59, %v2222_v1  ;;  %v2227_v10 = vrot.slane %v2222_v1, 4  ;;  %v2246_v14 = vld [vmem:[#allocation4 + $0xc] sm:$0xf]  ;;  %v3694_v16 = vld [vmem:[#allocation14 + $0x98] sm:$0xff]  ;;  %v3381_v21 = vor.u32 %v3670_v11, %v3378_v15 }
 0x269   : > { %2648 = vmatmul.bf16.vlgmr.msra.gmra.mxu2 %v3357_v42  ;;  %v3372_v32 = vld [vmem:[#allocation5 + $0x10] sm:$0xf]  ;;  %v2234_v13 = vor.u32 %v2232_v0, %v2231_v6  ;;  %v2247_v35 = vld [vmem:[#allocation4 + $0x10] sm:$0xf]  ;;  %2250 = vst [vmem:[#allocation5 + $0x38] sm:$0xf] %v2246_v14  ;;  %v3377_v20 = vor.u32 %v3672_v8, %v3376_v7 }
 0x26a   : > { %2678 = vmatpush.bf16.msrb.mxu2 %v3698_v40  ;;  %2667 = vmatmul.bf16.vlgmr.msra.gmra.mxu3 %v3361_v43  ;;  %v2226_v5 = vsel %vm4430_vm11, %v2218_v47, %v2225_v9  ;;  %v3702_v18 = vld [vmem:[#allocation14 + $0xd8] sm:$0xff]  ;;  %2251 = vst [vmem:[#allocation5 + $0x4c] sm:$0xf] %v2247_v35  ;;  %v3693_v23 = vld [vmem:[#allocation14 + $0x90] sm:$0xff]  ;;  %v3692_v17 = vld [vmem:[#allocation14 + $0x88] sm:$0xff]  ;;  %s2756_s22 = sshll.u32 %s2753_s11, 4  ;;  %s2757_s22 = int_to_ptr.hbm [resolvable:$true] %s2756_s22 }
 0x26b   : > { %2697 = vmatpush.bf16.msrb.mxu3 %v3706_v25  ;;  %v3669_v12 = vld [vmem:[#allocation5 + $0x20] sm:$0xf0]  ;;  %2723 = vmatpush.bf16.msrb.mxu0 %v3707_v36  ;;  %v2235_v19 = vsel %vm4430_vm11, %v2227_v10, %v2234_v13  ;;  %2242 = vst [vmem:[#allocation5 + $0x34] sm:$0xf] %v2226_v5  ;;  %v3701_v26 = vld [vmem:[#allocation14 + $0xd0] sm:$0xff]  ;;  %v3691_v30 = vld [vmem:[#allocation14 + $0x80] sm:$0xff] }
 0x26c   : > { %v3373_v61 = vor.u32 %v3669_v12, %v3372_v32  ;;  %3750 = vmatpush.bf16.msrb.mxu1 %v3707_v36  ;;  %2243 = vst [vmem:[#allocation5 + $0x48] sm:$0xf] %v2235_v19  ;;  %v3700_v28 = vld [vmem:[#allocation14 + $0xc8] sm:$0xff]  ;;  %v3699_v31 = vld [vmem:[#allocation14 + $0xc0] sm:$0xff]  ;;  %v3364_v37 = vld [vmem:[#allocation5 + $0x8] sm:$0xf] }
 0x26d   : > { %v3668_v38 = vld [vmem:[#allocation5 + $0x18] sm:$0xf0]  ;;  %v3666_v40 = vld [vmem:[#allocation5 + $0xc] sm:$0xf]  ;;  %v3366_v25 = vld [vmem:[#allocation5 + $0x1c] sm:$0xf0] }
 0x26e   : > { %2679 = vmatpush.bf16.msrb.mxu2 %v3697_v46  ;;  %2724 = vmatmul.bf16.vlgmr.msrb.gmra.mxu0 %v3373_v61  ;;  %v3365_v34 = vor.u32 %v3668_v38, %v3364_v37  ;;  %v3369_v41 = vor.u32 %v3666_v40, %v3366_v25  ;;  %v3384_v42 = vld [vmem:[#allocation5 + $0x30] sm:$0xf]  ;;  %v3673_v43 = vld [vmem:[#allocation5 + $0x40] sm:$0xf0]  ;;  %s2740_s8 = scalar_lea.sflag [#allocation8], %s4368_s23  ;;  %s4060_s16 = sshra.s32 %s2757_s22, 4  ;;  %s4061_s16 = int_to_ptr.hbm [resolvable:$true] %s4060_s16 }
 0x26f   : > { %2698 = vmatpush.bf16.msrb.mxu3 %v3705_v48  ;;  %v3385_v46 = vor.u32 %v3673_v43, %v3384_v42  ;;  %s4062_s20 = scalar_lea.hbm %s4061_s16, 32  ;;  %s4066_s15 = scalar_lea.hbm %s4739_s14, 256 }
 0x270   : > { %v3392_v27 = vld [vmem:[#allocation5 + $0x38] sm:$0xf]  ;;  %p4063_p4 = scmp.ne.s32.totalorder %s4061_s16, %s4062_s20  ;;  %p4067_p11 = scmp.lt.s32.totalorder %s4061_s16, %s4739_s14 }
 0x271   : > { %v3674_v29 = vld [vmem:[#allocation5 + $0x48] sm:$0xf0]  ;;  %p4068_p12 = scmp.lt.s32.totalorder %s4066_s15, %s4062_s20 }
 0x272   : > { %2680 = vmatpush.bf16.msrb.mxu2 %v3696_v54  ;;  %v3393_v24 = vor.u32 %v3674_v29, %v3392_v27  ;;  %v3671_v44 = vld [vmem:[#allocation5 + $0x34] sm:$0xf]  ;;  %p4064_p8 = pnand %p4063_p4, %p4321_p3 }
 0x273   : > { %2699 = vmatpush.bf16.msrb.mxu3 %v3704_v39  ;;  %v3386_v45 = vld [vmem:[#allocation5 + $0x44] sm:$0xf0]  ;;  %v3895_v54 = vld [vmem:[%s4692_s7] ss:$0 sm:$0xff]  ;;  %p4069_p13 = por %p4068_p12, %p4067_p11 }
 0x274   : > { %2729 = vmatmul.bf16.vlgmr.msrb.gmra.mxu1 %v3393_v24  ;;  %v3389_v48 = vor.u32 %v3671_v44, %v3386_v45  ;;  %p4065_p10 = pneg %p4064_p8 }
 0x276   : > { %2681 = vmatpush.bf16.msrb.mxu2 %v3695_v2  ;;  %p4070_p0 = pnand %p4069_p13, %p4065_p10 }
 0x277   : > { %2700 = vmatpush.bf16.msrb.mxu3 %v3703_v3 }
 0x279   : > { %2653 = vmatmul.bf16.gmra.mxu2 %v3377_v20 }
 0x27a   : > { %2682 = vmatpush.bf16.msrb.mxu2 %v3694_v16  ;;  %2672 = vmatmul.bf16.gmra.mxu3 %v3381_v21 }
 0x27b   : > { %2701 = vmatpush.bf16.msrb.mxu3 %v3702_v18 }
 0x27e   : > { %2683 = vmatpush.bf16.msrb.mxu2 %v3693_v23 }
 0x27f   : > { %2702 = vmatpush.bf16.msrb.mxu3 %v3701_v26 }
 0x282   : > { %2684 = vmatpush.bf16.msrb.mxu2 %v3692_v17 }
 0x283   : > { %2703 = vmatpush.bf16.msrb.mxu3 %v3700_v28 }
 0x286   : > { %2685 = vmatpush.bf16.msrb.mxu2 %v3691_v30 }
 0x287   : > { %2704 = vmatpush.bf16.msrb.mxu3 %v3699_v31 }
 0x289   : > { %2686 = vmatmul.bf16.vlgmr.msrb.gmra.mxu2 %v3365_v34 }
 0x28a   : > { %2705 = vmatmul.bf16.vlgmr.msrb.gmra.mxu3 %v3369_v41 }
 0x299   : > { %2691 = vmatmul.bf16.gmra.mxu2 %v3385_v46 }
 0x29a   : > { %2710 = vmatmul.bf16.gmra.mxu3 %v3389_v48 }
 0x2eb   : > { %v2725_v57 = vpop.f32.mrf.mxu0 }
 0x2ec   : > { %v2649_v49 = vpop.f32.mrf.mxu2 }
 0x2ed   : > { %v2668_v52 = vpop.f32.mrf.mxu3  ;;  %v2650_v55 = vadd.f32 %v3895_v54, %v2649_v49 }
 0x2ef   : > { %v2669_v56 = vadd.f32 %v2668_v52, %v2650_v55 }
 0x2f1   : > { %v2730_v11 = vpop.f32.mrf.mxu1 }
 0x2f3   : > { %v2727_v3 = vpop.f32.mrf.mxu0 }
 0x2f4   : > { %v2651_v51 = vpop.f32.mrf.mxu2 }
 0x2f5   : > { %v2670_v33 = vpop.f32.mrf.mxu3  ;;  %v2652_v62 = vadd.f32 %v3895_v54, %v2651_v51 }
 0x2f7   : > { %v2671_v36 = vadd.f32 %v2670_v33, %v2652_v62 }
 0x2f9   : > { %v2732_v18 = vpop.f32.mrf.mxu1 }
 0x2fc   : > { %v2654_v22 = vpop.f32.mrf.mxu2 }
 0x2fd   : > { %v2673_v53 = vpop.f32.mrf.mxu3  ;;  %v2655_v4 = vadd.f32 %v3895_v54, %v2654_v22 }
 0x2ff   : > { %v2674_v8 = vadd.f32 %v2673_v53, %v2655_v4 }
 0x304   : > { %v2656_v39 = vpop.f32.mrf.mxu2 }
 0x305   : > { %v2675_v50 = vpop.f32.mrf.mxu3  ;;  %v2657_v12 = vadd.f32 %v3895_v54, %v2656_v39 }
 0x307   : > { %v2676_v15 = vadd.f32 %v2675_v50, %v2657_v12 }
 0x30c   : > { %v2687_v58 = vpop.f32.mrf.mxu2 }
 0x30d   : > { %v2706_v59 = vpop.f32.mrf.mxu3  ;;  %v2688_v60 = vadd.f32 %v2687_v58, %v2669_v56 }
 0x30f   : > { %v2707_v63 = vadd.f32 %v2706_v59, %v2688_v60 }
 0x311   : > { %v2726_v0 = vadd.f32 %v2725_v57, %v2707_v63 }
 0x313   : > { %2735 = vst [vmem:[%s4508_s4] sm:$0xff] %v2726_v0 }
 0x314   : > { %v2689_v47 = vpop.f32.mrf.mxu2 }
 0x315   : > { %v2708_v1 = vpop.f32.mrf.mxu3  ;;  %v2690_v2 = vadd.f32 %v2689_v47, %v2671_v36 }
 0x317   : > { %v2709_v6 = vadd.f32 %v2708_v1, %v2690_v2 }
 0x319   : > { %v2728_v7 = vadd.f32 %v2727_v3, %v2709_v6 }
 0x31b   : > { %2736 = vst [vmem:[%s4508_s4 + $0x8] sm:$0xff] %v2728_v7 }
 0x31c   : > { %v2692_v32 = vpop.f32.mrf.mxu2 }
 0x31d   : > { %v2711_v9 = vpop.f32.mrf.mxu3  ;;  %v2693_v10 = vadd.f32 %v2692_v32, %v2674_v8 }
 0x31f   : > { %v2712_v13 = vadd.f32 %v2711_v9, %v2693_v10 }
 0x321   : > { %v2731_v14 = vadd.f32 %v2730_v11, %v2712_v13 }
 0x323   : > { %2737 = vst [vmem:[%s4508_s4 + $0x10] sm:$0xff] %v2731_v14 }
 0x324   : > { %v2694_v61 = vpop.f32.mrf.mxu2 }
 0x325   : > { %v2695_v5 = vadd.f32 %v2694_v61, %v2676_v15  ;;  %v2713_v35 = vpop.f32.mrf.mxu3 }
 0x327   : > { %v2714_v16 = vadd.f32 %v2713_v35, %v2695_v5 }
 0x329   : > { %v2733_v19 = vadd.f32 %v2732_v18, %v2714_v16 }
 0x32b   : > { %2738 = vst [vmem:[%s4508_s4 + $0x18] sm:$0xff] %v2733_v19 }
 0x32c   : > { %4073 = shalt.err (!%p4070_p0)
}
 0x32d   : > { %s4165_s23 = smov 128   ;;  %s4166_s4 = smov 8  }
 0x32e   : > { %3767 = dma.vmem_to_hbm [thread:$0]  (%p4321_p3), %s2755_s9, 512, %s2757_s22, %s2740_s8, %s4165_s23, %s4165_s23, %s4166_s4  }
 0x32f PF: > { %s4741_s24 = sld [smem:[#allocation21_spill]]  ;;  %p3797_p5 = scmp.ge.s32.totalorder %s4156_s12, 2 }
 0x331   : > { %p3787_p7 = pnand %p3797_p5, %p4267_p6 }
 0x333   : > { %p3788_p9 = pneg %p3787_p7 }
 0x335   : > { %s2771_s21 = sand.u32 1, %s4741_s24  }
 0x336   : > { %s2772_s27 = scalar_lea.sflag [#allocation8], %s2771_s21 }
 0x337   : > { %4123 = dma.done.wait (%p3788_p9), %s2772_s27, 512  }
 0x338   : > { %4125 = vsyncadd (%p3788_p9), %s2772_s27, 4294966784  ;;  %s28_s12 = sadd.s32 1, %s4156_s12   ;;  %s4743_s2 = sld [smem:[#allocation28_spill]] }
 0x339   : > { %p25_p2 = scmp.ge.s32.totalorder %s28_s12, 10   ;;  %s4744_s30 = sld [smem:[#allocation22_spill]] }
 0x33a   : > { %s4745_s9 = sld [smem:[#allocation23_spill]]  ;;  %s4748_s27 = smov %s4132_s28 }
 0x33b   : > { %s4746_s10 = sld [smem:[#allocation25_spill]]  ;;  %s4749_s28 = smov %s4136_s29 }
 0x33c   : > { %s4747_s11 = sld [smem:[#allocation27_spill]]  ;;  %27 = sbr.rel (!%p25_p2) target bundleno = 15 (0xf), region = 130 }
 0x33e   : > { %s4750_s29 = smov %s4743_s2 }
 0x341   :  { %2778 = vsyncpa [#allocation7], 1 }
 0x342   :  { %2780 = vsyncpa [#allocation7 + $0x1], 1 }
 0x343   :  { %2781 = vsyncpa [#allocation10], 1 }
 0x344   :  { %2783 = vsyncpa [#allocation10 + $0x1], 1 }
 0x345   :  { %2784 = vsyncpa [#allocation13], 1 }
 0x346   :  { %2785 = vsyncpa [#allocation8], 1 }
 0x347   :  { %2787 = vsyncpa [#allocation8 + $0x1], 1 }

// kernel: tpu_custom_call.1
= control target key start
LH: loop header
LB: loop body
LE: loop exit
PB: predicated region body
PF: predicated region fallthrough
CT: control target
= control target key end

     0   :  { %s4685_s0 = inlined_call_operand.hbm [shape: bf16[2,4,32,128], index: 0, kind: input, shape index: {}]   ;;  %s4686_s1 = inlined_call_operand.hbm [shape: bf16[2,128,128], index: 1, kind: input, shape index: {}]   ;;  %s4687_s2 = inlined_call_operand.hbm [shape: bf16[640,128], index: 2, kind: input, shape index: {}]   ;;  %s4688_s3 = inlined_call_operand.vmem [shape: f32[1,128], index: 3, kind: input, shape index: {}]   ;;  %s4689_s4 = inlined_call_operand.hbm [shape: bf16[640,128], index: 4, kind: input, shape index: {}]   ;;  %s4690_s5 = inlined_call_operand.vmem [shape: f32[1,128], index: 5, kind: input, shape index: {}]   ;;  %s4691_s6 = inlined_call_operand.hbm [shape: bf16[640,128], index: 6, kind: input, shape index: {}]   ;;  %s4692_s7 = inlined_call_operand.vmem [shape: f32[1,128], index: 7, kind: input, shape index: {}]   ;;  %s4693_s8 = inlined_call_operand.hbm [shape: f32[2,128,128], index: 8, kind: output, shape index: {}]  }
   0x1   :  { %4707 = sst [smem:[#allocation29_spill]] %s4687_s2 }
   0x2   :  { %4708 = sst [smem:[#allocation30_spill]] %s4689_s4 }
   0x3   :  { %4709 = sst [smem:[#allocation31_spill]] %s4691_s6 }
   0x4   :  { %4710 = sst [smem:[#allocation32_spill]] %s4693_s8 }
   0x5   :  { %13 = vsyncpa [#allocation7], 0 }
   0x6   :  { %15 = vsyncpa [#allocation7 + $0x1], 0 }
   0x7   :  { %16 = vsyncpa [#allocation10], 0 }
   0x8   :  { %18 = vsyncpa [#allocation10 + $0x1], 0 }
   0x9   :  { %19 = vsyncpa [#allocation13], 0 }
   0xa   :  { %20 = vsyncpa [#allocation8], 0 }
   0xb   :  { %22 = vsyncpa [#allocation8 + $0x1], 0  ;;  %s4212_s27 = smov 0   ;;  %s4214_s28 = smov 0  }
   0xc   :  { %s4216_s29 = smov 0   ;;  %s4218_s30 = smov 0  }
   0xd   :  { %s4220_s9 = smov 0   ;;  %s4222_s10 = smov 0  }
   0xe   :  { %s4224_s11 = smov 0   ;;  %s4226_s12 = smov 0  }
   0xf LB: > { %4711 = sst [smem:[#allocation21_spill]] %s4128_s27  ;;  %s4253_s13 = sadd.s32 4294967295, %s4156_s12   ;;  %s4156_s12 = sphi %s4226_s12, %s28_s12   ;;  %s4152_s11 = sphi %s4224_s11, %s4747_s11   ;;  %s4148_s10 = sphi %s4222_s10, %s4746_s10   ;;  %s4144_s9 = sphi %s4220_s9, %s4745_s9   ;;  %s4140_s30 = sphi %s4218_s30, %s4744_s30   ;;  %s4136_s29 = sphi %s4216_s29, %s4750_s29   ;;  %s4132_s28 = sphi %s4214_s28, %s4749_s28   ;;  %s4128_s27 = sphi %s4212_s27, %s4748_s27  }
  0x10   : > { %4712 = sst [smem:[#allocation22_spill]] %s4148_s10  ;;  %s2902_s14 = sadd.s32 4294967294, %s4156_s12  }
  0x11   : > { %4713 = sst [smem:[#allocation23_spill]] %s4152_s11  ;;  %p62_p0 = scmp.ne.s32.totalorder %s4132_s28, %s4128_s27 }
  0x12   : > { %p63_p1 = scmp.eq.s32.totalorder %s4253_s13, 0  ;;  %p242_p2 = scmp.eq.s32.totalorder %s4253_s13, 7 }
  0x13   : > { %p248_p3 = scmp.eq.s32.totalorder %s2902_s14, 7  ;;  %p2903_p5 = scmp.ge.s32.totalorder %s4156_s12, 1 }
  0x14   : > { %p4262_p4 = por %p63_p1, %p62_p0  ;;  %p255_p7 = scmp.lt.s32.totalorder %s4156_s12, 9 }
  0x15   : > { %p4267_p6 = por %p248_p3, %p62_p0  ;;  %s4717_s2 = sld [smem:[#allocation29_spill]] }
  0x16   : > { %p4275_p8 = pnand %p2903_p5, %p255_p7  ;;  %s4158_s21 = smov [#allocation11]  }
  0x17   : > { %s4715_s16 = scalar_select %p4267_p6, 1, 0 }
  0x18   : > { %p3769_p9 = pneg %p4275_p8  ;;  %s268_s22 = sshll.u32 %s4158_s21, 4  ;;  %s269_s22 = int_to_ptr.vmem [resolvable:$true] %s268_s22 }
  0x19   : > { %4716 = sst [smem:[#allocation24_spill]] %s4715_s16  ;;  %s4694_s14 = smov 64  }
  0x1a   : > { %p4283_p10 = pnand %p3769_p9, %p63_p1  ;;  %s4720_s4 = sld [smem:[#allocation30_spill]] }
  0x1b   : > { %s266_s19 = sshll.u32 %s4717_s2, 4  ;;  %s4696_s17 = smov 4   ;;  %s267_s19 = int_to_ptr.hbm [resolvable:$true] %s266_s19 }
  0x1c   : > { %3772 = dma.hbm_to_vmem [thread:$0]  (!%p4283_p10), %s267_s19, 5120, %s269_s22, [#allocation10], %s4694_s14, %s4694_s14, %s4696_s17  }
  0x1d   : > { %s4161_s18 = smov [#allocation12]   ;;  %s4721_s6 = sld [smem:[#allocation31_spill]] }
  0x1e   : > { %s285_s21 = sshll.u32 %s4161_s18, 4  ;;  %s37_s22 = sadd.s32 1, %s4148_s10  ;;  %s286_s21 = int_to_ptr.vmem [resolvable:$true] %s285_s21 }
  0x1f   : > { %p38_p11 = scmp.ge.s32.totalorder %s37_s22, 4  ;;  %s40_s18 = sadd.s32 1, %s4152_s11 }
  0x20   : > { %s283_s26 = sshll.u32 %s4720_s4, 4  ;;  %s4162_s4 = smov [#allocation14]   ;;  %s284_s26 = int_to_ptr.hbm [resolvable:$true] %s283_s26 }
  0x21   : > { %3775 = dma.hbm_to_vmem [thread:$0]  (!%p4283_p10), %s284_s26, 5120, %s286_s21, [#allocation13], %s4694_s14, %s4694_s14, %s4696_s17  }
  0x22   : > { %s302_s19 = sshll.u32 %s4162_s4, 4  ;;  %s49_s24 = sadd.s32 1, %s4136_s29  ;;  %s303_s19 = int_to_ptr.vmem [resolvable:$true] %s302_s19 }
  0x23   : > { %s300_s2 = sshll.u32 %s4721_s6, 4  ;;  %p56_p12 = scmp.ne.s32.totalorder %s4136_s29, %s4132_s28  ;;  %s301_s2 = int_to_ptr.hbm [resolvable:$true] %s300_s2 }
  0x24   : > { %3778 = dma.hbm_to_vmem [thread:$0]  (!%p4283_p10), %s301_s2, 5120, %s303_s19, [#allocation13], %s4694_s14, %s4694_s14, %s4696_s17  }
  0x25   : > { %s4752_s22 = smov (%p38_p11, %s37_s22), 0  ;;  %s4754_s18 = smov (!%p38_p11, %s40_s18), %s4152_s11 }
  0x26   : > { %4722 = sst [smem:[#allocation25_spill]] %s4752_s22  ;;  %s45_s4 = ssub.s32 %s4148_s10, %s4752_s22 }
  0x27   : > { %p57_p13 = scmp.eq.s32.totalorder %s4156_s12, 0  ;;  %p42_p0 = scmp.ge.s32.totalorder %s4754_s18, 2 }
  0x28   : > { %p4321_p3 = por %p242_p2, %p56_p12  ;;  %p3793_p7 = scmp.lt.s32.totalorder %s4156_s12, 8 }
  0x29   : > { %p4325_p5 = por %p57_p13, %p56_p12  ;;  %s4756_s18 = smov (%p42_p0, %s4754_s18), 0 }
  0x2a   : > { %s4723_s23 = scalar_select %p4321_p3, 1, 0 }
  0x2b   : > { %4726 = sst [smem:[#allocation27_spill]] %s4756_s18  ;;  %s319_s26 = sand.u32 1, %s4136_s29  }
  0x2c   : > { %4724 = sst [smem:[#allocation26_spill]] %s4723_s23  ;;  %s2909_s21 = sshll.u32 %s4148_s10, 2 }
  0x2d   : > { %s44_s25 = ssub.s32 %s4152_s11, %s4756_s18  ;;  %s2908_s14 = sshll.u32 %s319_s26, 4 }
  0x2e   : > { %s46_s19 = sor.u32 %s45_s4, %s44_s25  ;;  %s2910_s17 = sshll.u32 %s4152_s11, 4 }
  0x2f   : > { %p47_p9 = scmp.eq.s32.totalorder %s46_s19, 0  ;;  %s323_s6 = scalar_lea.vmem [#allocation6], %s2908_s14 }
  0x30   : > { %s333_s22 = sshll.u32 %s323_s6, 4  ;;  %s328_s27 = sadd.s32 %s2910_s17, %s2909_s21  ;;  %s334_s22 = int_to_ptr.vmem [resolvable:$true] %s333_s22 }
  0x31   : > { %s4338_s16 = scalar_select %p47_p9, %s4136_s29, %s49_s24  }
  0x32   : > { %s2911_s23 = sshll.u32 %s328_s27, 2  ;;  %p4344_p2 = pnand %p3793_p7, %p4325_p5 }
  0x33   : > { %4727 = sst [smem:[#allocation28_spill]] %s4338_s16  ;;  %s330_s4 = scalar_lea.hbm %s4685_s0, %s2911_s23 }
  0x34   : > { %s331_s25 = sshll.u32 %s330_s4, 4  ;;  %s354_s17 = scalar_lea.hbm %s4686_s1, %s2911_s23  ;;  %s332_s25 = int_to_ptr.hbm [resolvable:$true] %s331_s25 }
  0x35   : > { %s320_s21 = scalar_lea.sflag [#allocation7], %s319_s26  ;;  %s4729_s27 = smov 4  }
  0x36   : > { %s4730_s2 = smov 64   ;;  %s355_s19 = sshll.u32 %s354_s17, 4  ;;  %s356_s19 = int_to_ptr.hbm [resolvable:$true] %s355_s19 }
  0x37   : > { %3782 = dma.hbm_to_vmem [thread:$0]  (!%p4344_p2), %s332_s25, 256, %s334_s22, %s320_s21, %s4730_s2, %s4730_s2, %s4729_s27  }
  0x38   : > { %s347_s11 = scalar_lea.vmem [#allocation9], %s2908_s14  ;;  %s343_s10 = sand.u32 1, %s4156_s12  }
  0x39   : > { %s357_s16 = sshll.u32 %s347_s11, 4  ;;  %s344_s18 = scalar_lea.sflag [#allocation10], %s343_s10  ;;  %s358_s16 = int_to_ptr.vmem [resolvable:$true] %s357_s16 }
  0x3a   : > { %3785 = dma.hbm_to_vmem [thread:$0]  (!%p4344_p2), %s356_s19, 256, %s358_s16, %s344_s18, %s4730_s2, %s4730_s2, %s4729_s27  }
  0x3b   : > { %369 = sbr.rel (%p4275_p8) target bundleno = 815 (0x32f), region = 52  ;;  %s4368_s23 = sand.u32 (!%p4275_p8), 1, %s4132_s28  }
  0x3c   : > { %s2917_s14 = sshll.u32 (!%p4275_p8), %s4368_s23, 4  ;;  %s372_s11 = scalar_lea.sflag (!%p4275_p8), [#allocation7], %s4368_s23 }
  0x3d   : > { %s4372_s22 = scalar_lea.vmem (!%p4275_p8), [#allocation6], %s2917_s14 }
  0x40   : > { %4107 = dma.done.wait (%p4262_p4), %s372_s11, 256  }
  0x41   : > { %4109 = vsyncadd (%p4262_p4), %s372_s11, 4294967040  ;;  %s381_s8 = sand.u32 1, %s4253_s13   ;;  %s4379_s20 = scalar_lea.vmem [#allocation9], %s2917_s14 }
  0x42   : > { %s382_s16 = scalar_lea.sflag [#allocation10], %s381_s8 }
  0x43   : > { %4111 = dma.done.wait (%p4262_p4), %s382_s16, 256  }
  0x44   : > { %4113 = vsyncadd (%p4262_p4), %s382_s16, 4294967040 }
  0x45   : > { %4115 = dma.done.wait (%p63_p1), [#allocation10], 5120  }
  0x46   : > { %4117 = vsyncadd (%p63_p1), [#allocation10], 4294962176 }
  0x47   : > { %4119 = dma.done.wait (%p63_p1), [#allocation13], 10240  }
  0x48   : > { %4121 = vsyncadd (%p63_p1), [#allocation13], 4294957056  ;;  %s2922_s26 = sshll.u32 %s4368_s23, 5  ;;  %v443_v0 = vld [vmem:[%s4372_s22] sm:$0xff]   ;;  %v3582_v1 = vld [vmem:[#allocation11 + $0x38] sm:$0xff]  ;;  %vm473_vm0 = vcmask 1041408  }
  0x49   : > { %v3598_v2 = vld [vmem:[#allocation11 + $0xb8] sm:$0xff]  ;;  %447 = vst [vmem:[#allocation2] sm:$0xff] %v443_v0   ;;  %1157 = vmatpush.bf16.msra.mxu0 %v3582_v1  ;;  %v3581_v5 = vld [vmem:[#allocation11 + $0x30] sm:$0xff]  ;;  %v3580_v9 = vld [vmem:[#allocation11 + $0x28] sm:$0xff]  ;;  %vm474_vm1 = vcmask 1045508   ;;  %vm611_vm2 = vcmask 1040384  }
  0x4a   : > { %v3590_v3 = vld [vmem:[#allocation11 + $0x78] sm:$0xff]  ;;  %1205 = vmatpush.bf16.msra.mxu2 %v3598_v2  ;;  %v3597_v6 = vld [vmem:[#allocation11 + $0xb0] sm:$0xff]  ;;  %v3596_v10 = vld [vmem:[#allocation11 + $0xa8] sm:$0xff]  ;;  %vm612_vm3 = vcmask 1044484   ;;  %vm514_vm5 = vsmask.f32 1280 }
  0x4b   : > { %v3606_v4 = vld [vmem:[#allocation11 + $0xf8] sm:$0xff]  ;;  %1181 = vmatpush.bf16.msra.mxu1 %v3590_v3  ;;  %v3589_v7 = vld [vmem:[#allocation11 + $0x70] sm:$0xff]  ;;  %v3588_v11 = vld [vmem:[#allocation11 + $0x68] sm:$0xff]  ;;  %vm515_vm6 = vsmask.f32 5392  ;;  %s4508_s4 = scalar_lea.vmem [#allocation15], %s2922_s26 }
  0x4c   : > { %1229 = vmatpush.bf16.msra.mxu3 %v3606_v4  ;;  %v3605_v8 = vld [vmem:[#allocation11 + $0xf0] sm:$0xff]  ;;  %v3604_v12 = vld [vmem:[#allocation11 + $0xe8] sm:$0xff]  ;;  %v3579_v13 = vld [vmem:[#allocation11 + $0x20] sm:$0xff]  ;;  %vm652_vm8 = vsmask.f32 256  ;;  %p3146_p1 = scmp.ne.s32.totalorder %s4140_s30, 0 }
  0x4d   : > { %1158 = vmatpush.bf16.msra.mxu0 %v3581_v5  ;;  %v3595_v14 = vld [vmem:[#allocation11 + $0xa0] sm:$0xff]  ;;  %v445_v17 = vld [vmem:[%s4372_s22 + $0x8] sm:$0xff]   ;;  %vm4400_vm4 = vmor %vm473_vm0, %vm474_vm1  ;;  %vm653_vm9 = vsmask.f32 4368 }
  0x4e   : > { %1206 = vmatpush.bf16.msra.mxu2 %v3597_v6  ;;  %v3587_v15 = vld [vmem:[#allocation11 + $0x60] sm:$0xff]  ;;  %v3578_v18 = vld [vmem:[#allocation11 + $0x18] sm:$0xff]  ;;  %449 = vst [vmem:[#allocation2 + $0x8] sm:$0xff] %v445_v17   ;;  %v3577_v34 = vld [vmem:[#allocation11 + $0x10] sm:$0xff] }
  0x4f   : > { %1182 = vmatpush.bf16.msra.mxu1 %v3589_v7  ;;  %v3603_v16 = vld [vmem:[#allocation11 + $0xe0] sm:$0xff]  ;;  %v3594_v19 = vld [vmem:[#allocation11 + $0x98] sm:$0xff]  ;;  %vm4406_vm7 = vmor %vm611_vm2, %vm612_vm3 }
  0x50   : > { %1230 = vmatpush.bf16.msra.mxu3 %v3605_v8  ;;  %v507_v20 = vld [vmem:[#allocation2 + $0x4] sm:$0xc]  ;;  %v3586_v21 = vld [vmem:[#allocation11 + $0x58] sm:$0xff]  ;;  %v3593_v37 = vld [vmem:[#allocation11 + $0x90] sm:$0xff] }
  0x51   : > { %1159 = vmatpush.bf16.msra.mxu0 %v3580_v9  ;;  %v3602_v22 = vld [vmem:[#allocation11 + $0xd8] sm:$0xff]  ;;  %v518_v23 = vshrl.u32 %v507_v20, 16  ;;  %v521_v24 = vshll.u32 %v507_v20, 16  ;;  %v645_v25 = vld [vmem:[#allocation2 + $0x4] sm:$0x8]  ;;  %v3585_v38 = vld [vmem:[#allocation11 + $0x50] sm:$0xff] }
  0x52   : > { %1207 = vmatpush.bf16.msra.mxu2 %v3596_v10  ;;  %v459_v26 = vld [vmem:[#allocation2 + $0x4] sm:$0xc]  ;;  %v453_v31 = vld [vmem:[%s4379_s20 + $0x8] sm:$0xff]   ;;  %v656_v33 = vshrl.u32 %v645_v25, 16  ;;  %v3601_v39 = vld [vmem:[#allocation11 + $0xd0] sm:$0xff] }
  0x53   : > { %1183 = vmatpush.bf16.msra.mxu1 %v3588_v11  ;;  %v451_v27 = vld [vmem:[%s4379_s20] sm:$0xff]   ;;  %v520_v29 = vrot.slane %v518_v23, 6  ;;  %v523_v30 = vrot.slane %v521_v24, 7  ;;  %457 = vst [vmem:[#allocation2 + $0x18] sm:$0xff] %v453_v31   ;;  %v2923_v40 = vrot.slane %v459_v26, 10  ;;  %v3576_v45 = vld [vmem:[#allocation11 + $0x8] sm:$0xff]  ;;  %vm4422_vm10 = vmor %vm514_vm5, %vm515_vm6 }
  0x54   : > { %1231 = vmatpush.bf16.msra.mxu3 %v3604_v12  ;;  %v597_v28 = vld [vmem:[#allocation2 + $0x4] sm:$0x8]  ;;  %455 = vst [vmem:[#allocation2 + $0x10] sm:$0xff] %v451_v27   ;;  %v3592_v46 = vld [vmem:[#allocation11 + $0x88] sm:$0xff]  ;;  %v4410_v51 = vrot.slane %v656_v33, 11  ;;  %vm4430_vm11 = vmor %vm652_vm8, %vm653_vm9 }
  0x55   : > { %1160 = vmatpush.bf16.msra.mxu0 %v3579_v13  ;;  %v524_v36 = vor.u32 %v523_v30, %v520_v29  ;;  %v2924_v41 = vrot.slane %v597_v28, 11  ;;  %v460_v42 = vld [vmem:[#allocation2 + $0x8] sm:$0xf]  ;;  %v461_v43 = vld [vmem:[#allocation2 + $0xc] sm:$0xf]  ;;  %v3614_v29 = vld [vmem:[#allocation11 + $0x138] sm:$0xff] }
  0x56   : > { %1208 = vmatpush.bf16.msra.mxu2 %v3595_v14  ;;  %v598_v44 = vld [vmem:[#allocation2 + $0x8] sm:$0xf]  ;;  %v478_v47 = vrot.slane %v460_v42, 6  ;;  %v481_v48 = vrot.slane %v461_v43, 6  ;;  %v599_v49 = vld [vmem:[#allocation2 + $0xc] sm:$0xf] }
  0x57   : > { %1184 = vmatpush.bf16.msra.mxu1 %v3587_v15  ;;  %v616_v50 = vrot.slane %v598_v44, 7  ;;  %v3584_v52 = vld [vmem:[#allocation11 + $0x48] sm:$0xff]  ;;  %v619_v54 = vrot.slane %v599_v49, 7  ;;  %v508_v55 = vld [vmem:[#allocation2 + $0x8] sm:$0xf]  ;;  %v525_v57 = vrot.slane %v524_v36, 4 }
  0x58   : > { %1232 = vmatpush.bf16.msra.mxu3 %v3603_v16  ;;  %v3600_v53 = vld [vmem:[#allocation11 + $0xc8] sm:$0xff]  ;;  %v479_v58 = vsel %vm4400_vm4, %v2923_v40, %v478_v47  ;;  %v480_v59 = vrot.slane %v478_v47, 4  ;;  %v646_v62 = vld [vmem:[#allocation2 + $0x8] sm:$0xf]  ;;  %v527_v0 = vshrl.u32 %v508_v55, 16  ;;  %v530_v1 = vshll.u32 %v508_v55, 16 }
  0x59   : > { %1161 = vmatpush.bf16.msra.mxu0 %v3578_v18  ;;  %v509_v56 = vld [vmem:[#allocation2 + $0xc] sm:$0xf]  ;;  %v617_v60 = vsel %vm4406_vm7, %v2924_v41, %v616_v50  ;;  %v618_v61 = vrot.slane %v616_v50, 4  ;;  %501 = vst [vmem:[#allocation5] sm:$0xf] %v479_v58  ;;  %v3575_v4 = vld [vmem:[#allocation11] sm:$0xff] }
  0x5a   : > { %1209 = vmatpush.bf16.msra.mxu2 %v3594_v19  ;;  %v647_v63 = vld [vmem:[#allocation2 + $0xc] sm:$0xf]  ;;  %v537_v2 = vshrl.u32 %v509_v56, 16  ;;  %v540_v3 = vshll.u32 %v509_v56, 16  ;;  %v3591_v5 = vld [vmem:[#allocation11 + $0x80] sm:$0xff]  ;;  %v482_v6 = vsel %vm4400_vm4, %v480_v59, %v481_v48  ;;  %v661_v8 = vshrl.u32 %v646_v62, 16 }
  0x5b   : > { %1185 = vmatpush.bf16.msra.mxu1 %v3586_v21  ;;  %v620_v7 = vsel %vm4406_vm7, %v618_v61, %v619_v54  ;;  %639 = vst [vmem:[#allocation5 + $0x8] sm:$0xf] %v617_v60  ;;  %v664_v9 = vshll.u32 %v646_v62, 16  ;;  %v462_v10 = vld [vmem:[#allocation2 + $0x10] sm:$0xf]  ;;  %v3583_v11 = vld [vmem:[#allocation11 + $0x40] sm:$0xff] }
  0x5c   : > { %1233 = vmatpush.bf16.msra.mxu3 %v3602_v22  ;;  %v3599_v12 = vld [vmem:[#allocation11 + $0xc0] sm:$0xff]  ;;  %502 = vst [vmem:[#allocation5 + $0x14] sm:$0xf] %v482_v6  ;;  %v529_v13 = vrot.slane %v527_v0, 6  ;;  %v532_v14 = vrot.slane %v530_v1, 7  ;;  %v539_v15 = vrot.slane %v537_v2, 6 }
  0x5d   : > { %1162 = vmatpush.bf16.msra.mxu0 %v3577_v34  ;;  %v542_v16 = vrot.slane %v540_v3, 7  ;;  %640 = vst [vmem:[#allocation5 + $0x1c] sm:$0xf] %v620_v7  ;;  %v663_v18 = vrot.slane %v661_v8, 7  ;;  %v670_v19 = vshrl.u32 %v647_v63, 16  ;;  %v673_v20 = vshll.u32 %v647_v63, 16 }
  0x5e   : > { %1210 = vmatpush.bf16.msra.mxu2 %v3593_v37  ;;  %v483_v21 = vrot.slane %v481_v48, 4  ;;  %v533_v22 = vor.u32 %v532_v14, %v529_v13  ;;  %v4434_v25 = vld [vmem:[#allocation2 + $0x14] sm:$0xf]  ;;  %v484_v26 = vrot.slane %v462_v10, 6  ;;  %v600_v27 = vld [vmem:[#allocation2 + $0x10] sm:$0xf] }
  0x5f   : > { %1186 = vmatpush.bf16.msra.mxu1 %v3585_v38  ;;  %v4426_v23 = vor.u32 %v542_v16, %v539_v15  ;;  %v621_v28 = vrot.slane %v619_v54, 4  ;;  %v666_v30 = vor.u32 %v664_v9, %v663_v18  ;;  %v668_v31 = vrot.slane %v663_v18, 4  ;;  %v4439_v36 = vld [vmem:[#allocation2 + $0x14] sm:$0xf]  ;;  %v510_v40 = vld [vmem:[#allocation2 + $0x10] sm:$0xf] }
  0x60   : > { %1234 = vmatpush.bf16.msra.mxu3 %v3601_v39  ;;  %v4436_v33 = vrot.slane %v670_v19, 7  ;;  %v487_v34 = vrot.slane %v4434_v25, 6  ;;  %v534_v37 = vsel %vm4422_vm10, %v525_v57, %v533_v22  ;;  %v535_v38 = vrot.slane %v533_v22, 4  ;;  %v511_v41 = vld [vmem:[#allocation2 + $0x14] sm:$0xf]  ;;  %v3612_v7 = vld [vmem:[#allocation11 + $0x128] sm:$0xff] }
  0x61   : > { %1163 = vmatpush.bf16.msra.mxu0 %v3576_v45  ;;  %v486_v39 = vrot.slane %v484_v26, 4  ;;  %v2928_v42 = vld [vmem:[#allocation5] sm:$0xf]  ;;  %591 = vst [vmem:[#allocation5 + $0x4] sm:$0xf] %v534_v37  ;;  %v667_v43 = vsel %vm4430_vm11, %v4410_v51, %v666_v30  ;;  %v3613_v45 = vld [vmem:[#allocation11 + $0x130] sm:$0xff]  ;;  %v485_v50 = vsel %vm4400_vm4, %v483_v21, %v484_v26 }
  0x62   : > { %1211 = vmatpush.bf16.msra.mxu2 %v3592_v46  ;;  %v675_v44 = vor.u32 %v673_v20, %v4436_v33  ;;  %v622_v46 = vrot.slane %v600_v27, 7  ;;  %v625_v47 = vrot.slane %v4439_v36, 7  ;;  %v2936_v48 = vld [vmem:[#allocation5 + $0x8] sm:$0xf]  ;;  %v544_v49 = vsel %vm4422_vm10, %v535_v38, %v4426_v23  ;;  %719 = vst [vmem:[#allocation5 + $0xc] sm:$0xf] %v667_v43 }
  0x63   : > { %1187 = vmatpush.bf16.msra.mxu1 %v3584_v52  ;;  %v545_v52 = vrot.slane %v4426_v23, 4  ;;  %v547_v51 = vshrl.u32 %v510_v40, 16  ;;  %592 = vst [vmem:[#allocation5 + $0x18] sm:$0xf] %v544_v49  ;;  %v488_v55 = vsel %vm4400_vm4, %v486_v39, %v487_v34  ;;  %v550_v57 = vshll.u32 %v510_v40, 16  ;;  %v3609_v36 = vld [vmem:[#allocation11 + $0x110] sm:$0xff] }
  0x64   : > { %1235 = vmatpush.bf16.msra.mxu3 %v3600_v53  ;;  %v3562_v53 = vld [vmem:[#allocation5 + $0x10] sm:$0xf0]  ;;  %v676_v54 = vsel %vm4430_vm11, %v668_v31, %v675_v44  ;;  %v624_v56 = vrot.slane %v622_v46, 4  ;;  %v3563_v59 = vld [vmem:[#allocation5 + $0x18] sm:$0xf0]  ;;  %v623_v60 = vsel %vm4406_vm7, %v621_v28, %v622_v46  ;;  %v557_v62 = vshrl.u32 %v511_v41, 16 }
  0x65   : > { %1164 = vmatpush.bf16.msra.mxu0 %v3575_v4  ;;  %v2929_v58 = vor.u32 %v3562_v53, %v2928_v42  ;;  %720 = vst [vmem:[#allocation5 + $0x20] sm:$0xf] %v676_v54  ;;  %v549_v61 = vrot.slane %v547_v51, 6  ;;  %v2937_v63 = vor.u32 %v3563_v59, %v2936_v48  ;;  %v552_v1 = vrot.slane %v550_v57, 7  ;;  %v648_v3 = vld [vmem:[#allocation2 + $0x10] sm:$0xf] }
  0x66   : > { %1212 = vmatpush.bf16.msra.mxu2 %v3591_v5  ;;  %503 = vst [vmem:[#allocation5 + $0x28] sm:$0xf] %v485_v50  ;;  %v626_v0 = vsel %vm4406_vm7, %v624_v56, %v625_v47  ;;  %v560_v2 = vshll.u32 %v511_v41, 16  ;;  %v559_v4 = vrot.slane %v557_v62, 6  ;;  %v649_v5 = vld [vmem:[#allocation2 + $0x14] sm:$0xf] }
  0x67   : > { %1188 = vmatpush.bf16.msra.mxu1 %v3583_v11  ;;  %504 = vst [vmem:[#allocation5 + $0x3c] sm:$0xf] %v488_v55  ;;  %v677_v6 = vrot.slane %v4436_v33, 4  ;;  %v553_v8 = vor.u32 %v552_v1, %v549_v61  ;;  %v679_v10 = vshrl.u32 %v648_v3, 16  ;;  %v682_v11 = vshll.u32 %v648_v3, 16  ;;  %v3611_v31 = vld [vmem:[#allocation11 + $0x120] sm:$0xff] }
  0x68   : > { %1236 = vmatpush.bf16.msra.mxu3 %v3599_v12  ;;  %1165 = vmatmul.bf16.vlgmr.msra.gmra.mxu0 %v2929_v58  ;;  %641 = vst [vmem:[#allocation5 + $0x30] sm:$0xf] %v623_v60  ;;  %v562_v9 = vrot.slane %v560_v2, 7  ;;  %v3560_v12 = vld [vmem:[#allocation5 + $0x4] sm:$0xf]  ;;  %v688_v13 = vshrl.u32 %v649_v5, 16 }
  0x69   : > { %1253 = vmatpush.bf16.msrb.mxu0 %v3614_v29  ;;  %1213 = vmatmul.bf16.vlgmr.msra.gmra.mxu2 %v2937_v63  ;;  %642 = vst [vmem:[#allocation5 + $0x44] sm:$0xf] %v626_v0  ;;  %v691_v14 = vshll.u32 %v649_v5, 16  ;;  %v3561_v15 = vld [vmem:[#allocation5 + $0xc] sm:$0xf]  ;;  %v554_v16 = vsel %vm4422_vm10, %v545_v52, %v553_v8  ;;  %v555_v18 = vrot.slane %v553_v8, 4 }
  0x6a   : > { %v4469_v19 = vor.u32 %v562_v9, %v559_v4  ;;  %v681_v20 = vrot.slane %v679_v10, 7  ;;  %v2930_v21 = vld [vmem:[#allocation5 + $0x14] sm:$0xf0]  ;;  %593 = vst [vmem:[#allocation5 + $0x2c] sm:$0xf] %v554_v16  ;;  %v4471_v22 = vrot.slane %v688_v13, 7 }
  0x6b   : > { %v489_v23 = vrot.slane %v487_v34, 4  ;;  %v2933_v26 = vor.u32 %v3560_v12, %v2930_v21  ;;  %v464_v33 = vld [vmem:[#allocation2 + $0x18] sm:$0xf]  ;;  %v465_v40 = vld [vmem:[#allocation2 + $0x1c] sm:$0x3]  ;;  %v627_v51 = vrot.slane %v625_v47, 4 }
  0x6c   : > { %v2938_v27 = vld [vmem:[#allocation5 + $0x1c] sm:$0xf0]  ;;  %v564_v28 = vsel %vm4422_vm10, %v555_v18, %v4469_v19  ;;  %v684_v29 = vor.u32 %v682_v11, %v681_v20  ;;  %v686_v30 = vrot.slane %v681_v20, 4  ;;  %v693_v39 = vor.u32 %v691_v14, %v4471_v22  ;;  %v3610_v41 = vld [vmem:[#allocation11 + $0x118] sm:$0xff]  ;;  %v602_v44 = vld [vmem:[#allocation2 + $0x18] sm:$0xf] }
  0x6d   : > { %1254 = vmatpush.bf16.msrb.mxu0 %v3613_v45  ;;  %v2941_v37 = vor.u32 %v3561_v15, %v2938_v27  ;;  %v2948_v38 = vld [vmem:[#allocation5 + $0x28] sm:$0xf]  ;;  %594 = vst [vmem:[#allocation5 + $0x40] sm:$0xf] %v564_v28  ;;  %1189 = vmatmul.bf16.vlgmr.msra.gmra.mxu1 %v2933_v26  ;;  %v490_v42 = vrot.slane %v464_v33, 6  ;;  %v493_v43 = vrot.slane %v465_v40, 6 }
  0x6e   : > { %v3567_v25 = vld [vmem:[#allocation5 + $0x38] sm:$0xf0]  ;;  %v685_v34 = vsel %vm4430_vm11, %v677_v6, %v684_v29  ;;  %v694_v46 = vsel %vm4430_vm11, %v686_v30, %v693_v39  ;;  %v603_v48 = vld [vmem:[#allocation2 + $0x1c] sm:$0x7]  ;;  %v628_v53 = vrot.slane %v602_v44, 7  ;;  %v565_v47 = vrot.slane %v4469_v19, 4 }
  0x6f   : > { %1237 = vmatmul.bf16.vlgmr.msra.gmra.mxu3 %v2941_v37  ;;  %v2956_v45 = vld [vmem:[#allocation5 + $0x30] sm:$0xf]  ;;  %721 = vst [vmem:[#allocation5 + $0x34] sm:$0xf] %v685_v34  ;;  %v491_v50 = vsel %vm4400_vm4, %v489_v23, %v490_v42  ;;  %v492_v52 = vrot.slane %v490_v42, 4  ;;  %v631_v54 = vrot.slane %v603_v48, 7  ;;  %v2949_v56 = vor.u32 %v3567_v25, %v2948_v38 }
  0x70   : > { %v3568_v49 = vld [vmem:[#allocation5 + $0x40] sm:$0xf0]  ;;  %722 = vst [vmem:[#allocation5 + $0x48] sm:$0xf] %v694_v46  ;;  %v512_v55 = vld [vmem:[#allocation2 + $0x18] sm:$0xf]  ;;  %v629_v60 = vsel %vm4406_vm7, %v627_v51, %v628_v53 }
  0x71   : > { %1255 = vmatpush.bf16.msrb.mxu0 %v3612_v7  ;;  %505 = vst [vmem:[#allocation5 + $0x50] sm:$0xf] %v491_v50  ;;  %v494_v57 = vsel %vm4400_vm4, %v492_v52, %v493_v43  ;;  %v513_v58 = vld [vmem:[#allocation2 + $0x1c] sm:$0x7]  ;;  %v567_v59 = vshrl.u32 %v512_v55, 16  ;;  %v630_v61 = vrot.slane %v628_v53, 4  ;;  %v2957_v0 = vor.u32 %v3568_v49, %v2956_v45 }
  0x72   : > { %506 = vst [vmem:[#allocation5 + $0x64] sm:$0xf] %v494_v57  ;;  %v570_v62 = vshll.u32 %v512_v55, 16  ;;  %v577_v63 = vshrl.u32 %v513_v58, 16  ;;  %v580_v2 = vshll.u32 %v513_v58, 16  ;;  %v3608_v16 = vld [vmem:[#allocation11 + $0x108] sm:$0xff] }
  0x73   : > { %643 = vst [vmem:[#allocation5 + $0x58] sm:$0xf] %v629_v60  ;;  %v569_v1 = vrot.slane %v567_v59, 6  ;;  %v3565_v3 = vld [vmem:[#allocation5 + $0x2c] sm:$0xf]  ;;  %v632_v4 = vsel %vm4406_vm7, %v630_v61, %v631_v54  ;;  %v695_v20 = vrot.slane %v4471_v22, 4 }
  0x74   : > { %v572_v5 = vrot.slane %v570_v62, 7  ;;  %v579_v6 = vrot.slane %v577_v63, 6  ;;  %v650_v7 = vld [vmem:[#allocation2 + $0x18] sm:$0xf]  ;;  %v651_v8 = vld [vmem:[#allocation2 + $0x1c] sm:$0xf] }
  0x75   : > { %1256 = vmatpush.bf16.msrb.mxu0 %v3611_v31  ;;  %v2950_v9 = vld [vmem:[#allocation5 + $0x3c] sm:$0xf0]  ;;  %644 = vst [vmem:[#allocation5 + $0x6c] sm:$0xf] %v632_v4  ;;  %v582_v10 = vrot.slane %v580_v2, 7  ;;  %v697_v13 = vshrl.u32 %v650_v7, 16 }
  0x76   : > { %v3566_v11 = vld [vmem:[#allocation5 + $0x34] sm:$0xf]  ;;  %v573_v12 = vor.u32 %v572_v5, %v569_v1  ;;  %v700_v14 = vshll.u32 %v650_v7, 16  ;;  %v706_v15 = vshrl.u32 %v651_v8, 16  ;;  %v709_v21 = vshll.u32 %v651_v8, 16  ;;  %v3607_v40 = vld [vmem:[#allocation11 + $0x100] sm:$0xff] }
  0x77   : > { %v2958_v18 = vld [vmem:[#allocation5 + $0x44] sm:$0xf0]  ;;  %v583_v19 = vor.u32 %v582_v10, %v579_v6  ;;  %v725_v23 = vld [vmem:[#allocation2 + $0x8] sm:$0xf]  ;;  %v699_v28 = vrot.slane %v697_v13, 7  ;;  %v2953_v30 = vor.u32 %v3565_v3, %v2950_v9 }
  0x78   : > { %1170 = vmatmul.bf16.gmra.mxu0 %v2949_v56  ;;  %v574_v26 = vsel %vm4422_vm10, %v565_v47, %v573_v12  ;;  %v575_v27 = vrot.slane %v573_v12, 4  ;;  %v708_v29 = vrot.slane %v706_v15, 7  ;;  %v726_v31 = vld [vmem:[#allocation2 + $0xc] sm:$0xf]  ;;  %v2961_v33 = vor.u32 %v3566_v11, %v2958_v18  ;;  %731 = vst [vmem:[#allocation5 + $0x10] sm:$0xf] %v725_v23 }
  0x79   : > { %1257 = vmatpush.bf16.msrb.mxu0 %v3610_v41  ;;  %1218 = vmatmul.bf16.gmra.mxu2 %v2957_v0  ;;  %595 = vst [vmem:[#allocation5 + $0x54] sm:$0xf] %v574_v26  ;;  %v702_v38 = vor.u32 %v700_v14, %v699_v28  ;;  %v704_v39 = vrot.slane %v699_v28, 4  ;;  %v727_v34 = vld [vmem:[#allocation2 + $0x10] sm:$0xf] }
  0x7a   : > { %v584_v37 = vsel %vm4422_vm10, %v575_v27, %v583_v19  ;;  %v711_v22 = vor.u32 %v709_v21, %v708_v29  ;;  %732 = vst [vmem:[#allocation5 + $0x24] sm:$0xf] %v726_v31  ;;  %v728_v42 = vld [vmem:[#allocation2 + $0x14] sm:$0xf]  ;;  %v2968_v43 = vld [vmem:[#allocation5 + $0x50] sm:$0xf] }
  0x7b   : > { %596 = vst [vmem:[#allocation5 + $0x68] sm:$0xf] %v584_v37  ;;  %v703_v25 = vsel %vm4430_vm11, %v695_v20, %v702_v38  ;;  %v3572_v44 = vld [vmem:[#allocation5 + $0x60] sm:$0xf0]  ;;  %v2976_v45 = vld [vmem:[#allocation5 + $0x58] sm:$0xf] }
  0x7c   : > { %v712_v41 = vsel %vm4430_vm11, %v704_v39, %v711_v22  ;;  %723 = vst [vmem:[#allocation5 + $0x5c] sm:$0xf] %v703_v25  ;;  %v3573_v46 = vld [vmem:[#allocation5 + $0x68] sm:$0xf0]  ;;  %v2969_v48 = vor.u32 %v3572_v44, %v2968_v43  ;;  %v730_v53 = vld [vmem:[#allocation2 + $0x1c] sm:$0xf] }
  0x7d   : > { %1258 = vmatpush.bf16.msrb.mxu0 %v3609_v36  ;;  %1194 = vmatmul.bf16.gmra.mxu1 %v2953_v30  ;;  %724 = vst [vmem:[#allocation5 + $0x70] sm:$0xf] %v712_v41  ;;  %v2977_v49 = vor.u32 %v3573_v46, %v2976_v45  ;;  %v729_v51 = vld [vmem:[#allocation2 + $0x18] sm:$0xf]  ;;  %v3871_v9 = vld [vmem:[%s4688_s3] ss:$0 sm:$0xff] }
  0x7e   : > { %733 = vst [vmem:[#allocation5 + $0x38] sm:$0xf] %v727_v34 }
  0x7f   : > { %1242 = vmatmul.bf16.gmra.mxu3 %v2961_v33  ;;  %734 = vst [vmem:[#allocation5 + $0x4c] sm:$0xf] %v728_v42  ;;  %v2944_v58 = vld [vmem:[#allocation5 + $0x10] sm:$0xf] }
  0x80   : > { %v3570_v50 = vld [vmem:[#allocation5 + $0x54] sm:$0xf]  ;;  %735 = vst [vmem:[#allocation5 + $0x60] sm:$0xf] %v729_v51 }
  0x81   : > { %1259 = vmatpush.bf16.msrb.mxu0 %v3608_v16  ;;  %736 = vst [vmem:[#allocation5 + $0x74] sm:$0xf] %v730_v53  ;;  %v3564_v59 = vld [vmem:[#allocation5 + $0x20] sm:$0xf0] }
  0x82   : > { %v2970_v52 = vld [vmem:[#allocation5 + $0x64] sm:$0xf0]  ;;  %v2945_v60 = vor.u32 %v3564_v59, %v2944_v58 }
  0x83   : > { %v3571_v54 = vld [vmem:[#allocation5 + $0x5c] sm:$0xf]  ;;  %v2973_v56 = vor.u32 %v3570_v50, %v2970_v52 }
  0x84   : > { %v2978_v55 = vld [vmem:[#allocation5 + $0x6c] sm:$0xf0] }
  0x85   : > { %1260 = vmatpush.bf16.msrb.mxu0 %v3607_v40  ;;  %v2981_v57 = vor.u32 %v3571_v54, %v2978_v55  ;;  %v2964_v61 = vld [vmem:[#allocation5 + $0x38] sm:$0xf] }
  0x86   : > { %v3569_v62 = vld [vmem:[#allocation5 + $0x48] sm:$0xf0] }
  0x87   : > { %v2965_v63 = vor.u32 %v3569_v62, %v2964_v61  ;;  %v2984_v0 = vld [vmem:[#allocation5 + $0x60] sm:$0xf] }
  0x88   : > { %1175 = vmatmul.bf16.gmra.mxu0 %v2969_v48  ;;  %v3574_v36 = vld [vmem:[#allocation5 + $0x70] sm:$0xf0] }
  0x89   : > { %1223 = vmatmul.bf16.gmra.mxu2 %v2977_v49  ;;  %v2985_v47 = vor.u32 %v3574_v36, %v2984_v0 }
  0x8d   : > { %1199 = vmatmul.bf16.gmra.mxu1 %v2973_v56 }
  0x8f   : > { %1247 = vmatmul.bf16.gmra.mxu3 %v2981_v57 }
  0x98   : > { %1261 = vmatmul.bf16.vlgmr.msrb.gmra.mxu0 %v2945_v60 }
  0xa8   : > { %1266 = vmatmul.bf16.gmra.mxu0 %v2965_v63 }
  0xb8   : > { %1271 = vmatmul.bf16.gmra.mxu0 %v2985_v47 }
  0xe5   : > { %v1166_v1 = vpop.f32.mrf.mxu0 }
  0xe6   : > { %v1167_v13 = vadd.f32 %v3871_v9, %v1166_v1 }
  0xea   : > { %v1190_v5 = vpop.f32.mrf.mxu1 }
  0xeb   : > { %v1191_v16 = vadd.f32 %v1190_v5, %v1167_v13 }
  0xec   : > { %v1214_v6 = vpop.f32.mrf.mxu2 }
  0xed   : > { %v1168_v2 = vpop.f32.mrf.mxu0  ;;  %v1215_v18 = vadd.f32 %v1214_v6, %v1191_v16 }
  0xee   : > { %v1169_v15 = vadd.f32 %v3871_v9, %v1168_v2 }
  0xf2   : > { %v1238_v8 = vpop.f32.mrf.mxu3  ;;  %v1192_v10 = vpop.f32.mrf.mxu1 }
  0xf3   : > { %v1193_v21 = vadd.f32 %v1192_v10, %v1169_v15  ;;  %v1239_v27 = vadd.f32 %v1238_v8, %v1215_v18 }
  0xf4   : > { %v1216_v11 = vpop.f32.mrf.mxu2 }
  0xf5   : > { %v1171_v3 = vpop.f32.mrf.mxu0  ;;  %v1217_v26 = vadd.f32 %v1216_v11, %v1193_v21 }
  0xf6   : > { %v1172_v37 = vadd.f32 %v3871_v9, %v1171_v3 }
  0xfa   : > { %v1240_v14 = vpop.f32.mrf.mxu3  ;;  %v1195_v19 = vpop.f32.mrf.mxu1 }
  0xfb   : > { %v1241_v30 = vadd.f32 %v1240_v14, %v1217_v26  ;;  %v1196_v40 = vadd.f32 %v1195_v19, %v1172_v37 }
  0xfc   : > { %v1219_v23 = vpop.f32.mrf.mxu2 }
  0xfd   : > { %v1173_v4 = vpop.f32.mrf.mxu0  ;;  %v1220_v34 = vadd.f32 %v1219_v23, %v1196_v40 }
  0xfe   : > { %v1174_v22 = vadd.f32 %v3871_v9, %v1173_v4 }
 0x102   : > { %v1243_v28 = vpop.f32.mrf.mxu3  ;;  %v1197_v38 = vpop.f32.mrf.mxu1 }
 0x103   : > { %v1198_v44 = vadd.f32 %v1197_v38, %v1174_v22  ;;  %v1244_v48 = vadd.f32 %v1243_v28, %v1220_v34 }
 0x104   : > { %v1221_v39 = vpop.f32.mrf.mxu2 }
 0x105   : > { %v1176_v7 = vpop.f32.mrf.mxu0  ;;  %v1222_v46 = vadd.f32 %v1221_v39, %v1198_v44 }
 0x106   : > { %v1177_v55 = vadd.f32 %v3871_v9, %v1176_v7 }
 0x10a   : > { %v1245_v41 = vpop.f32.mrf.mxu3  ;;  %v1200_v49 = vpop.f32.mrf.mxu1 }
 0x10b   : > { %v1246_v51 = vadd.f32 %v1245_v41, %v1222_v46  ;;  %v1201_v58 = vadd.f32 %v1200_v49, %v1177_v55 }
 0x10c   : > { %v1224_v50 = vpop.f32.mrf.mxu2 }
 0x10d   : > { %v1178_v12 = vpop.f32.mrf.mxu0  ;;  %v1225_v61 = vadd.f32 %v1224_v50, %v1201_v58 }
 0x10e   : > { %v1179_v57 = vadd.f32 %v3871_v9, %v1178_v12 }
 0x112   : > { %v1248_v56 = vpop.f32.mrf.mxu3  ;;  %v1202_v59 = vpop.f32.mrf.mxu1 }
 0x113   : > { %v1203_v36 = vadd.f32 %v1202_v59, %v1179_v57  ;;  %v1249_v2 = vadd.f32 %v1248_v56, %v1225_v61 }
 0x114   : > { %v1226_v62 = vpop.f32.mrf.mxu2 }
 0x115   : > { %v1262_v20 = vpop.f32.mrf.mxu0  ;;  %v1227_v1 = vadd.f32 %v1226_v62, %v1203_v36 }
 0x116   : > { %v1263_v29 = vadd.f32 %v1262_v20, %v1239_v27 }
 0x118   : > { %3872 = vtanh.f32 %v1263_v29 }
 0x11a   : > { %v1250_v3 = vpop.f32.mrf.mxu3 }
 0x11b   : > { %v1251_v5 = vadd.f32 %v1250_v3, %v1227_v1 }
 0x11d   : > { %v1264_v31 = vpop.f32.mrf.mxu0 }
 0x11e   : > { %v1265_v33 = vadd.f32 %v1264_v31, %v1241_v30  ;;  %v3873_v25 = vpop.eup %3872 }
 0x120   : > { %3874 = vtanh.f32 %v1265_v33 }
 0x125   : > { %v1267_v42 = vpop.f32.mrf.mxu0 }
 0x126   : > { %v3875_v43 = vpop.eup %3874  ;;  %v1268_v52 = vadd.f32 %v1267_v42, %v1244_v48 }
 0x127   : > { %v3718_v45 = vpack.c.bf16 %v3875_v43, %v3873_v25 }
 0x128   : > { %3876 = vtanh.f32 %v1268_v52 }
 0x129   : > { %3719 = vst [vmem:[#allocation3] sm:$0xff] %v3718_v45  }
 0x12d   : > { %v1269_v53 = vpop.f32.mrf.mxu0 }
 0x12e   : > { %v1270_v54 = vadd.f32 %v1269_v53, %v1246_v51  ;;  %v3877_v60 = vpop.eup %3876 }
 0x130   : > { %3878 = vtanh.f32 %v1270_v54 }
 0x135   : > { %v1272_v63 = vpop.f32.mrf.mxu0 }
 0x136   : > { %v3879_v0 = vpop.eup %3878  ;;  %v1273_v4 = vadd.f32 %v1272_v63, %v1249_v2 }
 0x137   : > { %v3723_v47 = vpack.c.bf16 %v3879_v0, %v3877_v60 }
 0x138   : > { %3880 = vtanh.f32 %v1273_v4 }
 0x139   : > { %3740 = vst [vmem:[#allocation3 + $0x8] sm:$0xff] %v3723_v47  }
 0x13d   : > { %v1274_v6 = vpop.f32.mrf.mxu0 }
 0x13e   : > { %v1275_v7 = vadd.f32 %v1274_v6, %v1251_v5  ;;  %v3881_v8 = vpop.eup %3880 }
 0x140   : > { %3882 = vtanh.f32 %v1275_v7 }
 0x145   : > { %1297 = sbr.rel (%p3146_p1) target bundleno = 333 (0x14d), region = 76 }
 0x146   : > { %v3883_v9 = vpop.eup %3882 }
 0x147   : > { %v3728_v10 = vpack.c.bf16 %v3883_v9, %v3881_v8 }
 0x149   : > { %3741 = vst [vmem:[#allocation3 + $0x10] sm:$0xff] %v3728_v10  }
 0x14a   : > { %v4163_v11 = vmov 0  }
 0x14b   : > { %1298 = vst [vmem:[#allocation3] sm:$0xf] %v4163_v11 }
 0x14c   : > { %1299 = vst [vmem:[#allocation3 + $0x4] sm:$0xf] %v4163_v11 }
 0x14d PF: > { %v3632_v12 = vld [vmem:[#allocation12 + $0x38] sm:$0xff]  ;;  %v3631_v15 = vld [vmem:[#allocation12 + $0x30] sm:$0xff]  ;;  %v3630_v21 = vld [vmem:[#allocation12 + $0x28] sm:$0xff] }
 0x14e   : > { %v3640_v13 = vld [vmem:[#allocation12 + $0x78] sm:$0xff]  ;;  %1934 = vmatpush.bf16.msrb.mxu1 %v3632_v12  ;;  %v3639_v16 = vld [vmem:[#allocation12 + $0x70] sm:$0xff]  ;;  %v3638_v23 = vld [vmem:[#allocation12 + $0x68] sm:$0xff] }
 0x14f   : > { %v3648_v14 = vld [vmem:[#allocation12 + $0xb8] sm:$0xff]  ;;  %1957 = vmatpush.bf16.msrb.mxu2 %v3640_v13  ;;  %v3647_v18 = vld [vmem:[#allocation12 + $0xb0] sm:$0xff]  ;;  %v3646_v26 = vld [vmem:[#allocation12 + $0xa8] sm:$0xff] }
 0x150   : > { %1980 = vmatpush.bf16.msrb.mxu3 %v3648_v14  ;;  %v3656_v19 = vld [vmem:[#allocation12 + $0xf8] sm:$0xff]  ;;  %v3655_v20 = vld [vmem:[#allocation12 + $0xf0] sm:$0xff]  ;;  %v3629_v27 = vld [vmem:[#allocation12 + $0x20] sm:$0xff] }
 0x151   : > { %2003 = vmatpush.bf16.msra.mxu0 %v3656_v19  ;;  %v3637_v28 = vld [vmem:[#allocation12 + $0x60] sm:$0xff]  ;;  %v3654_v29 = vld [vmem:[#allocation12 + $0xe8] sm:$0xff]  ;;  %v3628_v25 = vld [vmem:[#allocation12 + $0x18] sm:$0xff] }
 0x152   : > { %1935 = vmatpush.bf16.msrb.mxu1 %v3631_v15  ;;  %v1300_v30 = vld [vmem:[#allocation3] sm:$0xc]  ;;  %v4513_v33 = vld [vmem:[#allocation3 + $0x8] sm:$0xf]  ;;  %v3627_v62 = vld [vmem:[#allocation12 + $0x10] sm:$0xff] }
 0x153   : > { %1958 = vmatpush.bf16.msrb.mxu2 %v3639_v16  ;;  %v1301_v31 = vld [vmem:[#allocation3 + $0x4] sm:$0xf]  ;;  %v3147_v38 = vrot.slane %v1300_v30, 10  ;;  %v1317_v22 = vrot.slane %v4513_v33, 6  ;;  %v1338_v40 = vld [vmem:[#allocation3] sm:$0xc] }
 0x154   : > { %1981 = vmatpush.bf16.msrb.mxu3 %v3647_v18  ;;  %v3645_v37 = vld [vmem:[#allocation12 + $0xa0] sm:$0xff]  ;;  %v1314_v39 = vrot.slane %v1301_v31, 6  ;;  %v3636_v34 = vld [vmem:[#allocation12 + $0x58] sm:$0xff]  ;;  %v1345_v43 = vshrl.u32 %v1338_v40, 16  ;;  %v1348_v44 = vshll.u32 %v1338_v40, 16  ;;  %v3635_v1 = vld [vmem:[#allocation12 + $0x50] sm:$0xff] }
 0x155   : > { %2004 = vmatpush.bf16.msra.mxu0 %v3655_v20  ;;  %v1339_v41 = vld [vmem:[#allocation3 + $0x4] sm:$0xf]  ;;  %v1340_v42 = vld [vmem:[#allocation3 + $0x8] sm:$0xf]  ;;  %v3644_v45 = vld [vmem:[#allocation12 + $0x98] sm:$0xff]  ;;  %v1319_v40 = vrot.slane %v1317_v22, 4 }
 0x156   : > { %1936 = vmatpush.bf16.msrb.mxu1 %v3630_v21  ;;  %v3653_v46 = vld [vmem:[#allocation12 + $0xe0] sm:$0xff]  ;;  %v1315_v48 = vsel %vm4400_vm4, %v3147_v38, %v1314_v39  ;;  %v1316_v49 = vrot.slane %v1314_v39, 4  ;;  %v1354_v50 = vshrl.u32 %v1339_v41, 16  ;;  %v1357_v52 = vshll.u32 %v1339_v41, 16  ;;  %v1412_v51 = vld [vmem:[#allocation3] sm:$0x8] }
 0x157   : > { %1959 = vmatpush.bf16.msrb.mxu2 %v3638_v23  ;;  %1333 = vst [vmem:[#allocation5] sm:$0xf] %v1315_v48  ;;  %v1347_v53 = vrot.slane %v1345_v43, 6  ;;  %v1350_v54 = vrot.slane %v1348_v44, 7  ;;  %v1364_v55 = vshrl.u32 %v1340_v42, 16  ;;  %v1367_v56 = vshll.u32 %v1340_v42, 16 }
 0x158   : > { %1982 = vmatpush.bf16.msrb.mxu3 %v3646_v26  ;;  %v1318_v57 = vsel %vm4400_vm4, %v1316_v49, %v1317_v22  ;;  %v1356_v58 = vrot.slane %v1354_v50, 6  ;;  %v1359_v59 = vrot.slane %v1357_v52, 7  ;;  %v1413_v60 = vld [vmem:[#allocation3 + $0x4] sm:$0xf]  ;;  %v4522_v61 = vld [vmem:[#allocation3 + $0x8] sm:$0xf] }
 0x159   : > { %2005 = vmatpush.bf16.msra.mxu0 %v3654_v29  ;;  %1334 = vst [vmem:[#allocation5 + $0x14] sm:$0xf] %v1318_v57  ;;  %v1351_v63 = vor.u32 %v1350_v54, %v1347_v53  ;;  %v1366_v0 = vrot.slane %v1364_v55, 6  ;;  %v1369_v36 = vrot.slane %v1367_v56, 7  ;;  %v3148_v47 = vrot.slane %v1412_v51, 11  ;;  %v3652_v2 = vld [vmem:[#allocation12 + $0xd8] sm:$0xff] }
 0x15a   : > { %1937 = vmatpush.bf16.msrb.mxu1 %v3629_v27  ;;  %v1360_v3 = vor.u32 %v1359_v59, %v1356_v58  ;;  %v1426_v4 = vrot.slane %v1413_v60, 7  ;;  %v1429_v5 = vrot.slane %v4522_v61, 7  ;;  %v1450_v6 = vld [vmem:[#allocation3] sm:$0x8]  ;;  %v1451_v9 = vld [vmem:[#allocation3 + $0x4] sm:$0xf] }
 0x15b   : > { %1960 = vmatpush.bf16.msrb.mxu2 %v3637_v28  ;;  %v1352_v7 = vrot.slane %v1351_v63, 4  ;;  %v4525_v8 = vor.u32 %v1369_v36, %v1366_v0  ;;  %v1452_v10 = vld [vmem:[#allocation3 + $0x8] sm:$0xf]  ;;  %v1457_v11 = vshrl.u32 %v1450_v6, 16  ;;  %v3643_v12 = vld [vmem:[#allocation12 + $0x90] sm:$0xff]  ;;  %v1462_v16 = vshrl.u32 %v1451_v9, 16 }
 0x15c   : > { %1983 = vmatpush.bf16.msrb.mxu3 %v3645_v37  ;;  %v1362_v13 = vrot.slane %v1360_v3, 4  ;;  %v1427_v14 = vsel %vm4406_vm7, %v3148_v47, %v1426_v4  ;;  %v1428_v15 = vrot.slane %v1426_v4, 4  ;;  %v1303_v18 = vld [vmem:[#allocation3 + $0xc] sm:$0xf]  ;;  %v1465_v23 = vshll.u32 %v1451_v9, 16  ;;  %v3651_v28 = vld [vmem:[#allocation12 + $0xd0] sm:$0xff] }
 0x15d   : > { %2006 = vmatpush.bf16.msra.mxu0 %v3653_v46  ;;  %v3626_v19 = vld [vmem:[#allocation12 + $0x8] sm:$0xff]  ;;  %v1361_v20 = vsel %vm4422_vm10, %v1352_v7, %v1360_v3  ;;  %1445 = vst [vmem:[#allocation5 + $0x8] sm:$0xf] %v1427_v14  ;;  %v3149_v21 = vrot.slane %v1457_v11, 11  ;;  %v1471_v26 = vshrl.u32 %v1452_v10, 16  ;;  %v1464_v31 = vrot.slane %v1462_v16, 7 }
 0x15e   : > { %1938 = vmatpush.bf16.msrb.mxu1 %v3628_v25  ;;  %v3634_v27 = vld [vmem:[#allocation12 + $0x48] sm:$0xff]  ;;  %v1371_v29 = vsel %vm4422_vm10, %v1362_v13, %v4525_v8  ;;  %1407 = vst [vmem:[#allocation5 + $0x4] sm:$0xf] %v1361_v20  ;;  %v1430_v30 = vsel %vm4406_vm7, %v1428_v15, %v1429_v5  ;;  %v1474_v37 = vshll.u32 %v1452_v10, 16  ;;  %v1320_v43 = vrot.slane %v1303_v18, 6  ;;  %v3625_v44 = vld [vmem:[#allocation12] sm:$0xff] }
 0x15f   : > { %1961 = vmatpush.bf16.msrb.mxu2 %v3636_v34  ;;  %1408 = vst [vmem:[#allocation5 + $0x18] sm:$0xf] %v1371_v29  ;;  %v4538_v38 = vrot.slane %v1471_v26, 7  ;;  %v4540_v39 = vld [vmem:[#allocation3 + $0x10] sm:$0xf]  ;;  %v1467_v41 = vor.u32 %v1465_v23, %v1464_v31  ;;  %v1469_v42 = vrot.slane %v1464_v31, 4 }
 0x160   : > { %1984 = vmatpush.bf16.msrb.mxu3 %v3644_v45  ;;  %v3642_v25 = vld [vmem:[#allocation12 + $0x88] sm:$0xff]  ;;  %1446 = vst [vmem:[#allocation5 + $0x1c] sm:$0xf] %v1430_v30  ;;  %v3633_v45 = vld [vmem:[#allocation12 + $0x40] sm:$0xff]  ;;  %v3617_v48 = vld [vmem:[#allocation5 + $0x10] sm:$0xf0]  ;;  %v1321_v54 = vsel %vm4400_vm4, %v1319_v40, %v1320_v43 }
 0x161   : > { %2007 = vmatpush.bf16.msra.mxu0 %v3652_v2  ;;  %v3650_v34 = vld [vmem:[#allocation12 + $0xc8] sm:$0xff]  ;;  %v1476_v49 = vor.u32 %v1474_v37, %v4538_v38  ;;  %v1323_v50 = vrot.slane %v4540_v39, 6  ;;  %v1372_v33 = vrot.slane %v4525_v8, 4  ;;  %v3641_v22 = vld [vmem:[#allocation12 + $0x80] sm:$0xff]  ;;  %v1468_v53 = vsel %vm4430_vm11, %v3149_v21, %v1467_v41  ;;  %v3664_v59 = vld [vmem:[#allocation12 + $0x138] sm:$0xff] }
 0x162   : > { %1939 = vmatpush.bf16.msrb.mxu1 %v3627_v62  ;;  %v3152_v46 = vld [vmem:[#allocation5] sm:$0xf]  ;;  %v1342_v51 = vld [vmem:[#allocation3 + $0x10] sm:$0xf]  ;;  %v1322_v55 = vrot.slane %v1320_v43, 4  ;;  %v1431_v2 = vrot.slane %v1429_v5, 4 }
 0x163   : > { %1962 = vmatpush.bf16.msrb.mxu2 %v3635_v1  ;;  %v1341_v52 = vld [vmem:[#allocation3 + $0xc] sm:$0xf]  ;;  %v4551_v58 = vld [vmem:[#allocation3 + $0x10] sm:$0xf]  ;;  %v1477_v60 = vsel %vm4430_vm11, %v1469_v42, %v1476_v49  ;;  %1510 = vst [vmem:[#allocation5 + $0xc] sm:$0xf] %v1468_v53  ;;  %v3153_v8 = vor.u32 %v3617_v48, %v3152_v46 }
 0x164   : > { %1985 = vmatpush.bf16.msrb.mxu3 %v3643_v12  ;;  %v1374_v56 = vshrl.u32 %v1341_v52, 16  ;;  %v1415_v57 = vld [vmem:[#allocation3 + $0xc] sm:$0xf]  ;;  %v1377_v62 = vshll.u32 %v1341_v52, 16  ;;  %v1384_v63 = vshrl.u32 %v1342_v51, 16  ;;  %v1387_v0 = vshll.u32 %v1342_v51, 16 }
 0x165   : > { %2008 = vmatpush.bf16.msra.mxu0 %v3651_v28  ;;  %v3160_v36 = vld [vmem:[#allocation5 + $0x8] sm:$0xf]  ;;  %1511 = vst [vmem:[#allocation5 + $0x20] sm:$0xf] %v1477_v60  ;;  %v1324_v47 = vsel %vm4400_vm4, %v1322_v55, %v1323_v50  ;;  %v3615_v3 = vld [vmem:[#allocation5 + $0x4] sm:$0xf] }
 0x166   : > { %1940 = vmatpush.bf16.msrb.mxu1 %v3626_v19  ;;  %v1376_v1 = vrot.slane %v1374_v56, 6  ;;  %v3649_v4 = vld [vmem:[#allocation12 + $0xc0] sm:$0xff]  ;;  %1335 = vst [vmem:[#allocation5 + $0x28] sm:$0xf] %v1321_v54  ;;  %v1379_v6 = vrot.slane %v1377_v62, 7  ;;  %v1386_v7 = vrot.slane %v1384_v63, 6 }
 0x167   : > { %1963 = vmatpush.bf16.msrb.mxu2 %v3634_v27  ;;  %v3154_v9 = vld [vmem:[#allocation5 + $0x14] sm:$0xf0]  ;;  %1336 = vst [vmem:[#allocation5 + $0x3c] sm:$0xf] %v1324_v47  ;;  %v1389_v10 = vrot.slane %v1387_v0, 7  ;;  %v1432_v11 = vrot.slane %v1415_v57, 7 }
 0x168   : > { %1986 = vmatpush.bf16.msrb.mxu3 %v3642_v25  ;;  %v3157_v12 = vor.u32 %v3615_v3, %v3154_v9  ;;  %v3618_v13 = vld [vmem:[#allocation5 + $0x18] sm:$0xf0]  ;;  %v1380_v14 = vor.u32 %v1379_v6, %v1376_v1  ;;  %v1435_v15 = vrot.slane %v4551_v58, 7  ;;  %v1453_v61 = vld [vmem:[#allocation3 + $0xc] sm:$0xf]  ;;  %v1478_v5 = vrot.slane %v4538_v38, 4 }
 0x169   : > { %2009 = vmatpush.bf16.msra.mxu0 %v3650_v34  ;;  %v3161_v16 = vor.u32 %v3618_v13, %v3160_v36  ;;  %v3663_v18 = vld [vmem:[#allocation12 + $0x130] sm:$0xff]  ;;  %v4563_v19 = vor.u32 %v1389_v10, %v1386_v7  ;;  %v1433_v20 = vsel %vm4406_vm7, %v1431_v2, %v1432_v11  ;;  %v1434_v21 = vrot.slane %v1432_v11, 4  ;;  %v1454_v23 = vld [vmem:[#allocation3 + $0x10] sm:$0xf]  ;;  %v3661_v57 = vld [vmem:[#allocation12 + $0x120] sm:$0xff] }
 0x16a   : > { %1941 = vmatpush.bf16.msrb.mxu1 %v3625_v44  ;;  %v1305_v26 = vld [vmem:[#allocation3 + $0x14] sm:$0x3]  ;;  %v1381_v27 = vsel %vm4422_vm10, %v1372_v33, %v1380_v14  ;;  %v1382_v28 = vrot.slane %v1380_v14, 4  ;;  %1447 = vst [vmem:[#allocation5 + $0x30] sm:$0xf] %v1433_v20  ;;  %v1480_v29 = vshrl.u32 %v1453_v61, 16 }
 0x16b   : > { %1964 = vmatpush.bf16.msrb.mxu2 %v3633_v45  ;;  %v1483_v30 = vshll.u32 %v1453_v61, 16  ;;  %v3616_v31 = vld [vmem:[#allocation5 + $0xc] sm:$0xf]  ;;  %1409 = vst [vmem:[#allocation5 + $0x2c] sm:$0xf] %v1381_v27  ;;  %v1436_v37 = vsel %vm4406_vm7, %v1434_v21, %v1435_v15  ;;  %v1489_v38 = vshrl.u32 %v1454_v23, 16 }
 0x16c   : > { %1987 = vmatpush.bf16.msrb.mxu3 %v3641_v22  ;;  %v1492_v40 = vshll.u32 %v1454_v23, 16  ;;  %v3162_v25 = vld [vmem:[#allocation5 + $0x1c] sm:$0xf0]  ;;  %v1391_v34 = vsel %vm4422_vm10, %v1382_v28, %v4563_v19  ;;  %1448 = vst [vmem:[#allocation5 + $0x44] sm:$0xf] %v1436_v37  ;;  %v1482_v41 = vrot.slane %v1480_v29, 7 }
 0x16d   : > { %1942 = vmatmul.bf16.vlgmr.msrb.gmra.mxu1 %v3153_v8  ;;  %2010 = vmatpush.bf16.msra.mxu0 %v3649_v4  ;;  %v1325_v42 = vrot.slane %v1323_v50, 4  ;;  %v3165_v43 = vor.u32 %v3616_v31, %v3162_v25  ;;  %v3662_v44 = vld [vmem:[#allocation12 + $0x128] sm:$0xff]  ;;  %1410 = vst [vmem:[#allocation5 + $0x40] sm:$0xf] %v1391_v34  ;;  %v1491_v45 = vrot.slane %v1489_v38, 7  ;;  %v1326_v46 = vrot.slane %v1305_v26, 6 }
 0x16e   : > { %2026 = vmatpush.bf16.msra.mxu1 %v3664_v59  ;;  %1965 = vmatmul.bf16.vlgmr.msrb.gmra.mxu2 %v3157_v12  ;;  %v1485_v48 = vor.u32 %v1483_v30, %v1482_v41  ;;  %v1487_v49 = vrot.slane %v1482_v41, 4  ;;  %v1343_v52 = vld [vmem:[#allocation3 + $0x14] sm:$0x7]  ;;  %v1437_v55 = vrot.slane %v1435_v15, 4  ;;  %v1392_v59 = vrot.slane %v4563_v19, 4  ;;  %v3660_v4 = vld [vmem:[#allocation12 + $0x118] sm:$0xff] }
 0x16f   : > { %1988 = vmatmul.bf16.vlgmr.msrb.gmra.mxu3 %v3161_v16  ;;  %v1494_v51 = vor.u32 %v1492_v40, %v1491_v45  ;;  %v1327_v33 = vsel %vm4400_vm4, %v1325_v42, %v1326_v46  ;;  %v1394_v22 = vshrl.u32 %v1343_v52, 16  ;;  %v1417_v53 = vld [vmem:[#allocation3 + $0x14] sm:$0x7]  ;;  %v1397_v50 = vshll.u32 %v1343_v52, 16  ;;  %v3622_v63 = vld [vmem:[#allocation5 + $0x38] sm:$0xf0] }
 0x170   : > { %2011 = vmatmul.bf16.vlgmr.msra.gmra.mxu0 %v3165_v43  ;;  %v1455_v54 = vld [vmem:[#allocation3 + $0x14] sm:$0xf]  ;;  %v1486_v39 = vsel %vm4430_vm11, %v1478_v5, %v1485_v48  ;;  %1337 = vst [vmem:[#allocation5 + $0x50] sm:$0xf] %v1327_v33  ;;  %v1438_v56 = vrot.slane %v1417_v53, 7  ;;  %v1496_v9 = vrot.slane %v1491_v45, 4 }
 0x171   : > { %v1495_v58 = vsel %vm4430_vm11, %v1487_v49, %v1494_v51  ;;  %1512 = vst [vmem:[#allocation5 + $0x34] sm:$0xf] %v1486_v39  ;;  %v1396_v60 = vrot.slane %v1394_v22, 6  ;;  %v3172_v62 = vld [vmem:[#allocation5 + $0x28] sm:$0xf]  ;;  %v1399_v36 = vrot.slane %v1397_v50, 7 }
 0x172   : > { %2027 = vmatpush.bf16.msra.mxu1 %v3663_v18  ;;  %v3620_v0 = vld [vmem:[#allocation5 + $0x2c] sm:$0xf]  ;;  %1513 = vst [vmem:[#allocation5 + $0x48] sm:$0xf] %v1495_v58  ;;  %v1439_v47 = vsel %vm4406_vm7, %v1437_v55, %v1438_v56  ;;  %v1498_v1 = vshrl.u32 %v1455_v54, 16  ;;  %v1501_v6 = vshll.u32 %v1455_v54, 16  ;;  %v3173_v15 = vor.u32 %v3622_v63, %v3172_v62 }
 0x173   : > { %v3180_v2 = vld [vmem:[#allocation5 + $0x30] sm:$0xf]  ;;  %v3623_v3 = vld [vmem:[#allocation5 + $0x40] sm:$0xf0]  ;;  %1449 = vst [vmem:[#allocation5 + $0x58] sm:$0xf] %v1439_v47  ;;  %v1400_v8 = vor.u32 %v1399_v36, %v1396_v60 }
 0x174   : > { %v3174_v7 = vld [vmem:[#allocation5 + $0x3c] sm:$0xf0]  ;;  %v1500_v10 = vrot.slane %v1498_v1, 7  ;;  %v1515_v11 = vld [vmem:[#allocation3 + $0x4] sm:$0xf]  ;;  %v3181_v5 = vor.u32 %v3623_v3, %v3180_v2  ;;  %v3659_v20 = vld [vmem:[#allocation12 + $0x110] sm:$0xff] }
 0x175   : > { %v1516_v12 = vld [vmem:[#allocation3 + $0x8] sm:$0xf]  ;;  %1520 = vst [vmem:[#allocation5 + $0x10] sm:$0xf] %v1515_v11  ;;  %v1401_v13 = vsel %vm4422_vm10, %v1392_v59, %v1400_v8  ;;  %v3177_v61 = vor.u32 %v3620_v0, %v3174_v7  ;;  %v1517_v23 = vld [vmem:[#allocation3 + $0xc] sm:$0xf] }
 0x176   : > { %2028 = vmatpush.bf16.msra.mxu1 %v3662_v44  ;;  %v1503_v14 = vor.u32 %v1501_v6, %v1500_v10  ;;  %1521 = vst [vmem:[#allocation5 + $0x24] sm:$0xf] %v1516_v12  ;;  %v1518_v26 = vld [vmem:[#allocation3 + $0x10] sm:$0xf]  ;;  %v3657_v30 = vld [vmem:[#allocation12 + $0x100] sm:$0xff] }
 0x177   : > { %1411 = vst [vmem:[#allocation5 + $0x54] sm:$0xf] %v1401_v13  ;;  %v3658_v27 = vld [vmem:[#allocation12 + $0x108] sm:$0xff]  ;;  %v1519_v43 = vld [vmem:[#allocation3 + $0x14] sm:$0xf] }
 0x178   : > { %v3621_v16 = vld [vmem:[#allocation5 + $0x34] sm:$0xf]  ;;  %v1504_v18 = vsel %vm4430_vm11, %v1496_v9, %v1503_v14  ;;  %1522 = vst [vmem:[#allocation5 + $0x38] sm:$0xf] %v1517_v23 }
 0x179   : > { %v3182_v19 = vld [vmem:[#allocation5 + $0x44] sm:$0xf0]  ;;  %1514 = vst [vmem:[#allocation5 + $0x5c] sm:$0xf] %v1504_v18 }
 0x17a   : > { %2029 = vmatpush.bf16.msra.mxu1 %v3661_v57  ;;  %v3185_v21 = vor.u32 %v3621_v16, %v3182_v19  ;;  %1523 = vst [vmem:[#allocation5 + $0x4c] sm:$0xf] %v1518_v26 }
 0x17b   : > { %1524 = vst [vmem:[#allocation5 + $0x60] sm:$0xf] %v1519_v43 }
 0x17c   : > { %v3168_v44 = vld [vmem:[#allocation5 + $0x10] sm:$0xf] }
 0x17d   : > { %1947 = vmatmul.bf16.gmra.mxu1 %v3173_v15  ;;  %v3619_v45 = vld [vmem:[#allocation5 + $0x20] sm:$0xf0] }
 0x17e   : > { %2030 = vmatpush.bf16.msra.mxu1 %v3660_v4  ;;  %1970 = vmatmul.bf16.gmra.mxu2 %v3177_v61  ;;  %v1537_v28 = vld [vmem:[#allocation5 + $0x50] sm:$0xff]  ;;  %v3169_v46 = vor.u32 %v3619_v45, %v3168_v44 }
 0x17f   : > { %1993 = vmatmul.bf16.gmra.mxu3 %v3181_v5  ;;  %v1659_v31 = vunpack.c.l.b16 %v1537_v28  ;;  %v1660_v37 = vunpack.c.h.b16 %v1537_v28  ;;  %v3188_v48 = vld [vmem:[#allocation5 + $0x38] sm:$0xf]  ;;  %v3884_v4 = vld [vmem:[%s4690_s5] ss:$0 sm:$0xff] }
 0x180   : > { %2016 = vmatmul.bf16.gmra.mxu0 %v3185_v21  ;;  %v1538_v29 = vld [vmem:[#allocation5 + $0x58] sm:$0xff] }
 0x181   : > { %v1661_v38 = vunpack.c.l.b16 %v1538_v29  ;;  %v1674_v40 = vpack.c.b16 %v1659_v31, %v1659_v31  ;;  %v1675_v25 = vpack.c.b16 %v1660_v37, %v1660_v37  ;;  %v1662_v34 = vunpack.c.h.b16 %v1538_v29  ;;  %v3624_v49 = vld [vmem:[#allocation5 + $0x48] sm:$0xf0] }
 0x182   : > { %2031 = vmatpush.bf16.msra.mxu1 %v3659_v20  ;;  %v3189_v52 = vor.u32 %v3624_v49, %v3188_v48  ;;  %v1539_v51 = vld [vmem:[#allocation5 + $0x60] sm:$0xf] }
 0x183   : > { %v1676_v41 = vpack.c.b16 %v1661_v38, %v1661_v38  ;;  %v1677_v42 = vpack.c.b16 %v1662_v34, %v1662_v34  ;;  %v1663_v33 = vunpack.c.l.b16 %v1539_v51 }
 0x185   : > { %v1678_v22 = vpack.c.b16 %v1663_v33, %v1663_v33 }
 0x186   : > { %2032 = vmatpush.bf16.msra.mxu1 %v3658_v27 }
 0x18a   : > { %2033 = vmatpush.bf16.msra.mxu1 %v3657_v30 }
 0x18d   : > { %1952 = vmatmul.bf16.gmra.mxu1 %v1674_v40 }
 0x18e   : > { %1975 = vmatmul.bf16.gmra.mxu2 %v1675_v25 }
 0x18f   : > { %1998 = vmatmul.bf16.gmra.mxu3 %v1676_v41 }
 0x190   : > { %2021 = vmatmul.bf16.gmra.mxu0 %v1677_v42 }
 0x19d   : > { %2034 = vmatmul.bf16.vlgmr.msra.gmra.mxu1 %v3169_v46 }
 0x1ad   : > { %2039 = vmatmul.bf16.gmra.mxu1 %v3189_v52 }
 0x1bd   : > { %2044 = vmatmul.bf16.gmra.mxu1 %v1678_v22 }
 0x1ea   : > { %v1943_v53 = vpop.f32.mrf.mxu1 }
 0x1eb   : > { %v1944_v9 = vadd.f32 %v3884_v4, %v1943_v53 }
 0x1ed   : > { %v2012_v54 = vpop.f32.mrf.mxu0 }
 0x1f1   : > { %v1966_v39 = vpop.f32.mrf.mxu2 }
 0x1f2   : > { %v1989_v50 = vpop.f32.mrf.mxu3  ;;  %v1945_v55 = vpop.f32.mrf.mxu1  ;;  %v1967_v10 = vadd.f32 %v1966_v39, %v1944_v9 }
 0x1f3   : > { %v1946_v12 = vadd.f32 %v3884_v4, %v1945_v55 }
 0x1f4   : > { %v1990_v61 = vadd.f32 %v1989_v50, %v1967_v10 }
 0x1f5   : > { %v2014_v56 = vpop.f32.mrf.mxu0 }
 0x1f6   : > { %v2013_v18 = vadd.f32 %v2012_v54, %v1990_v61 }
 0x1f9   : > { %v1968_v57 = vpop.f32.mrf.mxu2 }
 0x1fa   : > { %v1991_v58 = vpop.f32.mrf.mxu3  ;;  %v1948_v59 = vpop.f32.mrf.mxu1  ;;  %v1969_v14 = vadd.f32 %v1968_v57, %v1946_v12 }
 0x1fb   : > { %v1949_v26 = vadd.f32 %v3884_v4, %v1948_v59 }
 0x1fc   : > { %v1992_v16 = vadd.f32 %v1991_v58, %v1969_v14 }
 0x1fd   : > { %v2017_v60 = vpop.f32.mrf.mxu0 }
 0x1fe   : > { %v2015_v20 = vadd.f32 %v2014_v56, %v1992_v16 }
 0x201   : > { %v1971_v62 = vpop.f32.mrf.mxu2 }
 0x202   : > { %v1994_v63 = vpop.f32.mrf.mxu3  ;;  %v1950_v0 = vpop.f32.mrf.mxu1  ;;  %v1972_v27 = vadd.f32 %v1971_v62, %v1949_v26 }
 0x203   : > { %v1951_v28 = vadd.f32 %v3884_v4, %v1950_v0 }
 0x204   : > { %v1995_v31 = vadd.f32 %v1994_v63, %v1972_v27 }
 0x205   : > { %v2019_v36 = vpop.f32.mrf.mxu0 }
 0x206   : > { %v2018_v34 = vadd.f32 %v2017_v60, %v1995_v31 }
 0x209   : > { %v1973_v47 = vpop.f32.mrf.mxu2 }
 0x20a   : > { %v1996_v1 = vpop.f32.mrf.mxu3  ;;  %v1953_v2 = vpop.f32.mrf.mxu1  ;;  %v1974_v29 = vadd.f32 %v1973_v47, %v1951_v28 }
 0x20b   : > { %v1954_v41 = vadd.f32 %v3884_v4, %v1953_v2 }
 0x20c   : > { %v1997_v25 = vadd.f32 %v1996_v1, %v1974_v29 }
 0x20d   : > { %v2022_v3 = vpop.f32.mrf.mxu0 }
 0x20e   : > { %v2020_v43 = vadd.f32 %v2019_v36, %v1997_v25 }
 0x211   : > { %v1976_v6 = vpop.f32.mrf.mxu2 }
 0x212   : > { %v1999_v7 = vpop.f32.mrf.mxu3  ;;  %v1955_v8 = vpop.f32.mrf.mxu1  ;;  %v1977_v44 = vadd.f32 %v1976_v6, %v1954_v41 }
 0x214   : > { %v2000_v48 = vadd.f32 %v1999_v7, %v1977_v44 }
 0x215   : > { %v2024_v11 = vpop.f32.mrf.mxu0 }
 0x216   : > { %v2023_v49 = vadd.f32 %v2022_v3, %v2000_v48 }
 0x219   : > { %v1978_v13 = vpop.f32.mrf.mxu2 }
 0x21a   : > { %v2001_v15 = vpop.f32.mrf.mxu3  ;;  %v2035_v5 = vpop.f32.mrf.mxu1 }
 0x21b   : > { %v2036_v19 = vadd.f32 %v2035_v5, %v2013_v18 }
 0x21d   : > { %3885 = vtanh.f32 %v2036_v19 }
 0x222   : > { %v2037_v21 = vpop.f32.mrf.mxu1 }
 0x223   : > { %v2038_v23 = vadd.f32 %v2037_v21, %v2015_v20  ;;  %v3886_v30 = vpop.eup %3885 }
 0x225   : > { %3887 = vtanh.f32 %v2038_v23 }
 0x22a   : > { %v2040_v37 = vpop.f32.mrf.mxu1 }
 0x22b   : > { %v3888_v38 = vpop.eup %3887  ;;  %v2041_v42 = vadd.f32 %v2040_v37, %v2018_v34 }
 0x22c   : > { %v3733_v40 = vpack.c.bf16 %v3888_v38, %v3886_v30 }
 0x22d   : > { %3889 = vtanh.f32 %v2041_v42 }
 0x22e   : > { %3734 = vst [vmem:[#allocation4] sm:$0xff] %v3733_v40  }
 0x232   : > { %v2042_v45 = vpop.f32.mrf.mxu1 }
 0x233   : > { %v2043_v46 = vadd.f32 %v2042_v45, %v2020_v43  ;;  %v3890_v52 = vpop.eup %3889 }
 0x235   : > { %3891 = vtanh.f32 %v2043_v46 }
 0x23a   : > { %v2045_v51 = vpop.f32.mrf.mxu1 }
 0x23b   : > { %v3892_v33 = vpop.eup %3891  ;;  %v2046_v22 = vadd.f32 %v2045_v51, %v2023_v49 }
 0x23c   : > { %v3738_v53 = vpack.c.bf16 %v3892_v33, %v3890_v52 }
 0x23d   : > { %3893 = vtanh.f32 %v2046_v22 }
 0x23e   : > { %3742 = vst [vmem:[#allocation4 + $0x8] sm:$0xff] %v3738_v53  }
 0x242   : > { %v2047_v54 = vpop.f32.mrf.mxu1  ;;  %2066 = sbr.rel (%p3146_p1) target bundleno = 585 (0x249), region = 80 }
 0x243   : > { %v3894_v39 = vpop.eup %3893 }
 0x244   : > { %v2058_v50 = vpack.c.bf16 %v3894_v39, %v3894_v39 }
 0x246   : > { %2063 = vst [vmem:[#allocation4 + $0x10] sm:$0xf] %v2058_v50 }
 0x247   : > { %v4164_v55 = vmov 0  }
 0x248   : > { %2067 = vst [vmem:[#allocation4] sm:$0xf] %v4164_v55 }
 0x249 PF: > { %v3682_v56 = vld [vmem:[#allocation14 + $0x38] sm:$0xff]  ;;  %v3681_v58 = vld [vmem:[#allocation14 + $0x30] sm:$0xff]  ;;  %v3680_v60 = vld [vmem:[#allocation14 + $0x28] sm:$0xff]  ;;  %s3555_s21 = sshll.u32 %s4140_s30, 2  ;;  %s3556_s27 = sshll.u32 %s4144_s9, 4 }
 0x24a   : > { %v3690_v57 = vld [vmem:[#allocation14 + $0x78] sm:$0xff]  ;;  %2640 = vmatpush.bf16.msra.mxu2 %v3682_v56  ;;  %v3689_v59 = vld [vmem:[#allocation14 + $0x70] sm:$0xff]  ;;  %v3688_v62 = vld [vmem:[#allocation14 + $0x68] sm:$0xff]  ;;  %s2751_s2 = sadd.s32 %s3556_s27, %s3555_s21  ;;  %s4739_s14 = sld [smem:[#allocation32_spill]] }
 0x24b   : > { %2659 = vmatpush.bf16.msra.mxu3 %v3690_v57  ;;  %v2069_v0 = vld [vmem:[#allocation4 + $0x4] sm:$0xf]  ;;  %v2070_v36 = vld [vmem:[#allocation4 + $0x8] sm:$0xf]  ;;  %v3679_v61 = vld [vmem:[#allocation14 + $0x20] sm:$0xff]  ;;  %s3557_s19 = sshll.u32 %s2751_s2, 3 }
 0x24c   : > { %v2080_v1 = vrot.slane %v2069_v0, 6  ;;  %v2083_v3 = vrot.slane %v2070_v36, 6  ;;  %v2100_v4 = vld [vmem:[#allocation4 + $0x4] sm:$0xf]  ;;  %v2101_v6 = vld [vmem:[#allocation4 + $0x8] sm:$0xf] }
 0x24d   : > { %v2114_v11 = vshrl.u32 %v2100_v4, 16  ;;  %v2117_v13 = vshll.u32 %v2100_v4, 16  ;;  %v2124_v14 = vshrl.u32 %v2101_v6, 16  ;;  %v2127_v15 = vshll.u32 %v2101_v6, 16  ;;  %v3687_v5 = vld [vmem:[#allocation14 + $0x60] sm:$0xff]  ;;  %v3714_v26 = vld [vmem:[#allocation14 + $0x138] sm:$0xff] }
 0x24e   : > { %2641 = vmatpush.bf16.msra.mxu2 %v3681_v58  ;;  %v2082_v9 = vrot.slane %v2080_v1, 4  ;;  %v3678_v27 = vld [vmem:[#allocation14 + $0x18] sm:$0xff]  ;;  %v3713_v30 = vld [vmem:[#allocation14 + $0x130] sm:$0xff]  ;;  %v2085_v31 = vrot.slane %v2083_v3, 4  ;;  %2716 = vmatpush.bf16.msrb.mxu0 %v3714_v26  ;;  %v2071_v40 = vld [vmem:[#allocation4 + $0xc] sm:$0xf] }
 0x24f   : > { %v2068_v63 = vld [vmem:[#allocation4] sm:$0xc]  ;;  %2660 = vmatpush.bf16.msra.mxu3 %v3689_v59  ;;  %v2116_v19 = vrot.slane %v2114_v11, 6  ;;  %v2119_v20 = vrot.slane %v2117_v13, 7  ;;  %v2126_v21 = vrot.slane %v2124_v14, 6  ;;  %v2129_v23 = vrot.slane %v2127_v15, 7  ;;  %3743 = vmatpush.bf16.msrb.mxu1 %v3714_v26 }
 0x250   : > { %v3351_v47 = vrot.slane %v2068_v63, 10  ;;  %v2099_v2 = vld [vmem:[#allocation4] sm:$0xc]  ;;  %v2084_v16 = vsel %vm4400_vm4, %v2082_v9, %v2083_v3  ;;  %v3686_v28 = vld [vmem:[#allocation14 + $0x58] sm:$0xff]  ;;  %v2072_v25 = vld [vmem:[#allocation4 + $0x10] sm:$0x3]  ;;  %s2753_s11 = scalar_lea.hbm %s4739_s14, %s3557_s19 }
 0x251   : > { %v2105_v7 = vshrl.u32 %v2099_v2, 16  ;;  %v2108_v10 = vshll.u32 %v2099_v2, 16  ;;  %2096 = vst [vmem:[#allocation5 + $0x14] sm:$0xf] %v2084_v16  ;;  %v2120_v37 = vor.u32 %v2119_v20, %v2116_v19  ;;  %v2130_v38 = vor.u32 %v2129_v23, %v2126_v21  ;;  %v2102_v34 = vld [vmem:[#allocation4 + $0xc] sm:$0xf] }
 0x252   : > { %v2081_v8 = vsel %vm4400_vm4, %v3351_v47, %v2080_v1  ;;  %2642 = vmatpush.bf16.msra.mxu2 %v3680_v60  ;;  %v2086_v42 = vrot.slane %v2071_v40, 6  ;;  %v2089_v43 = vrot.slane %v2072_v25, 6  ;;  %v2103_v44 = vld [vmem:[#allocation4 + $0x10] sm:$0x7]  ;;  %v2134_v45 = vshrl.u32 %v2102_v34, 16  ;;  %2717 = vmatpush.bf16.msrb.mxu0 %v3713_v30  ;;  %v3712_v57 = vld [vmem:[#allocation14 + $0x128] sm:$0xff] }
 0x253   : > { %2095 = vst [vmem:[#allocation5] sm:$0xf] %v2081_v8  ;;  %v2107_v12 = vrot.slane %v2105_v7, 6  ;;  %2661 = vmatpush.bf16.msra.mxu3 %v3688_v62  ;;  %v2110_v18 = vrot.slane %v2108_v10, 7  ;;  %v2122_v46 = vrot.slane %v2120_v37, 4  ;;  %v2132_v48 = vrot.slane %v2130_v38, 4  ;;  %3744 = vmatpush.bf16.msrb.mxu1 %v3713_v30 }
 0x254   : > { %v2137_v49 = vshll.u32 %v2102_v34, 16  ;;  %v2144_v52 = vshrl.u32 %v2103_v44, 16  ;;  %v2087_v33 = vsel %vm4400_vm4, %v2085_v31, %v2086_v42  ;;  %v2088_v22 = vrot.slane %v2086_v42, 4  ;;  %v2192_v54 = vld [vmem:[#allocation4 + $0x4] sm:$0xf]  ;;  %v3677_v58 = vld [vmem:[#allocation14 + $0x10] sm:$0xff] }
 0x255   : > { %v2111_v29 = vor.u32 %v2110_v18, %v2107_v12  ;;  %v2136_v53 = vrot.slane %v2134_v45, 6  ;;  %v2131_v39 = vsel %vm4422_vm10, %v2122_v46, %v2130_v38  ;;  %v2147_v56 = vshll.u32 %v2103_v44, 16  ;;  %v3685_v59 = vld [vmem:[#allocation14 + $0x50] sm:$0xff]  ;;  %2097 = vst [vmem:[#allocation5 + $0x28] sm:$0xf] %v2087_v33  ;;  %v3711_v0 = vld [vmem:[#allocation14 + $0x120] sm:$0xff] }
 0x256   : > { %2643 = vmatpush.bf16.msra.mxu2 %v3679_v61  ;;  %v2139_v50 = vrot.slane %v2137_v49, 7  ;;  %v2146_v55 = vrot.slane %v2144_v52, 6  ;;  %2157 = vst [vmem:[#allocation5 + $0x18] sm:$0xf] %v2131_v39  ;;  %v2090_v60 = vsel %vm4400_vm4, %v2088_v22, %v2089_v43  ;;  %v2202_v36 = vshrl.u32 %v2192_v54, 16  ;;  %v3676_v47 = vld [vmem:[#allocation14 + $0x8] sm:$0xff]  ;;  %2718 = vmatpush.bf16.msrb.mxu0 %v3712_v57 }
 0x257   : > { %2662 = vmatpush.bf16.msra.mxu3 %v3687_v5  ;;  %v2112_v41 = vrot.slane %v2111_v29, 4  ;;  %v2149_v63 = vrot.slane %v2147_v56, 7  ;;  %v3684_v1 = vld [vmem:[#allocation14 + $0x48] sm:$0xff]  ;;  %2098 = vst [vmem:[#allocation5 + $0x3c] sm:$0xf] %v2090_v60  ;;  %3745 = vmatpush.bf16.msrb.mxu1 %v3712_v57  ;;  %v2205_v61 = vshll.u32 %v2192_v54, 16 }
 0x258   : > { %v2140_v62 = vor.u32 %v2139_v50, %v2136_v53  ;;  %v2160_v2 = vld [vmem:[#allocation4] sm:$0x8]  ;;  %v2161_v3 = vld [vmem:[#allocation4 + $0x4] sm:$0xf]  ;;  %v4608_v8 = vld [vmem:[#allocation4 + $0x8] sm:$0xf] }
 0x259   : > { %v2121_v51 = vsel %vm4422_vm10, %v2112_v41, %v2120_v37  ;;  %v2150_v7 = vor.u32 %v2149_v63, %v2146_v55  ;;  %v3352_v32 = vrot.slane %v2160_v2, 11  ;;  %v2191_v9 = vld [vmem:[#allocation4] sm:$0x8]  ;;  %v2172_v10 = vrot.slane %v2161_v3, 7  ;;  %v2193_v12 = vld [vmem:[#allocation4 + $0x8] sm:$0xf] }
 0x25a   : > { %2156 = vst [vmem:[#allocation5 + $0x4] sm:$0xf] %v2121_v51  ;;  %2644 = vmatpush.bf16.msra.mxu2 %v3678_v27  ;;  %v2141_v4 = vsel %vm4422_vm10, %v2132_v48, %v2140_v62  ;;  %v2142_v6 = vrot.slane %v2140_v62, 4  ;;  %v2175_v11 = vrot.slane %v4608_v8, 7  ;;  %v2197_v14 = vshrl.u32 %v2191_v9, 16  ;;  %v3675_v5 = vld [vmem:[#allocation14] sm:$0xff]  ;;  %2719 = vmatpush.bf16.msrb.mxu0 %v3711_v0 }
 0x25b   : > { %2663 = vmatpush.bf16.msra.mxu3 %v3686_v28  ;;  %2158 = vst [vmem:[#allocation5 + $0x2c] sm:$0xf] %v2141_v4  ;;  %v2204_v15 = vrot.slane %v2202_v36, 7  ;;  %v3356_v16 = vld [vmem:[#allocation5] sm:$0xf]  ;;  %v2173_v20 = vsel %vm4406_vm7, %v3352_v32, %v2172_v10  ;;  %v2174_v21 = vrot.slane %v2172_v10, 4  ;;  %3746 = vmatpush.bf16.msrb.mxu1 %v3711_v0 }
 0x25c   : > { %v2151_v13 = vsel %vm4422_vm10, %v2142_v6, %v2150_v7  ;;  %v3667_v18 = vld [vmem:[#allocation5 + $0x10] sm:$0xf0]  ;;  %v2211_v23 = vshrl.u32 %v2193_v12, 16  ;;  %2187 = vst [vmem:[#allocation5 + $0x8] sm:$0xf] %v2173_v20  ;;  %v3353_v17 = vrot.slane %v2197_v14, 11 }
 0x25d   : > { %2159 = vst [vmem:[#allocation5 + $0x40] sm:$0xf] %v2151_v13  ;;  %v3358_v26 = vld [vmem:[#allocation5 + $0x14] sm:$0xf0]  ;;  %v3710_v27 = vld [vmem:[#allocation14 + $0x118] sm:$0xff]  ;;  %v2207_v28 = vor.u32 %v2205_v61, %v2204_v15  ;;  %v2176_v30 = vsel %vm4406_vm7, %v2174_v21, %v2175_v11  ;;  %v2209_v31 = vrot.slane %v2204_v15, 4  ;;  %v3357_v42 = vor.u32 %v3667_v18, %v3356_v16 }
 0x25e   : > { %2645 = vmatpush.bf16.msra.mxu2 %v3677_v58  ;;  %v3683_v29 = vld [vmem:[#allocation14 + $0x40] sm:$0xff]  ;;  %v4617_v37 = vrot.slane %v2211_v23, 7  ;;  %v2214_v38 = vshll.u32 %v2193_v12, 16  ;;  %v3698_v40 = vld [vmem:[#allocation14 + $0xb8] sm:$0xff]  ;;  %2188 = vst [vmem:[#allocation5 + $0x1c] sm:$0xf] %v2176_v30  ;;  %2720 = vmatpush.bf16.msrb.mxu0 %v3710_v27 }
 0x25f   : > { %2664 = vmatpush.bf16.msra.mxu3 %v3685_v59  ;;  %v3706_v25 = vld [vmem:[#allocation14 + $0xf8] sm:$0xff]  ;;  %v2208_v34 = vsel %vm4430_vm11, %v3353_v17, %v2207_v28  ;;  %3747 = vmatpush.bf16.msrb.mxu1 %v3710_v27  ;;  %v3709_v44 = vld [vmem:[#allocation14 + $0x110] sm:$0xff]  ;;  %v2163_v51 = vld [vmem:[#allocation4 + $0xc] sm:$0xf]  ;;  %v2177_v50 = vrot.slane %v2175_v11, 4  ;;  %s2754_s9 = sshll.u32 %s4508_s4, 4  ;;  %s2755_s9 = int_to_ptr.vmem [resolvable:$true] %s2754_s9 }
 0x260   : > { %v2216_v41 = vor.u32 %v2214_v38, %v4617_v37  ;;  %2240 = vst [vmem:[#allocation5 + $0xc] sm:$0xf] %v2208_v34  ;;  %v3697_v46 = vld [vmem:[#allocation14 + $0xb0] sm:$0xff]  ;;  %v2244_v49 = vld [vmem:[#allocation4 + $0x4] sm:$0xf]  ;;  %v3708_v22 = vld [vmem:[#allocation14 + $0x108] sm:$0xff] }
 0x261   : > { %v3665_v19 = vld [vmem:[#allocation5 + $0x4] sm:$0xf]  ;;  %v3705_v48 = vld [vmem:[#allocation14 + $0xf0] sm:$0xff]  ;;  %v2245_v52 = vld [vmem:[#allocation4 + $0x8] sm:$0xf]  ;;  %v2178_v55 = vrot.slane %v2163_v51, 7 }
 0x262   : > { %2646 = vmatpush.bf16.msra.mxu2 %v3676_v47  ;;  %v3361_v43 = vor.u32 %v3665_v19, %v3358_v26  ;;  %v2217_v45 = vsel %vm4430_vm11, %v2209_v31, %v2216_v41  ;;  %2248 = vst [vmem:[#allocation5 + $0x10] sm:$0xf] %v2244_v49  ;;  %v2194_v33 = vld [vmem:[#allocation4 + $0xc] sm:$0xf]  ;;  %2721 = vmatpush.bf16.msrb.mxu0 %v3709_v44  ;;  %v2164_v53 = vld [vmem:[#allocation4 + $0x10] sm:$0x7] }
 0x263   : > { %2665 = vmatpush.bf16.msra.mxu3 %v3684_v1  ;;  %2241 = vst [vmem:[#allocation5 + $0x20] sm:$0xf] %v2217_v45  ;;  %3748 = vmatpush.bf16.msrb.mxu1 %v3709_v44  ;;  %v3696_v54 = vld [vmem:[#allocation14 + $0xa8] sm:$0xff]  ;;  %v2181_v56 = vrot.slane %v2164_v53, 7  ;;  %v2195_v57 = vld [vmem:[#allocation4 + $0x10] sm:$0xf]  ;;  %v2179_v60 = vsel %vm4406_vm7, %v2177_v50, %v2178_v55 }
 0x264   : > { %2249 = vst [vmem:[#allocation5 + $0x24] sm:$0xf] %v2245_v52  ;;  %v3704_v39 = vld [vmem:[#allocation14 + $0xe8] sm:$0xff]  ;;  %v2220_v58 = vshrl.u32 %v2194_v33, 16  ;;  %v2223_v59 = vshll.u32 %v2194_v33, 16  ;;  %v2180_v62 = vrot.slane %v2178_v55, 4 }
 0x265   : > { %v2229_v63 = vshrl.u32 %v2195_v57, 16  ;;  %v2232_v0 = vshll.u32 %v2195_v57, 16  ;;  %v3707_v36 = vld [vmem:[#allocation14 + $0x100] sm:$0xff]  ;;  %2189 = vst [vmem:[#allocation5 + $0x30] sm:$0xf] %v2179_v60  ;;  %v2218_v47 = vrot.slane %v4617_v37, 4 }
 0x266   : > { %2647 = vmatpush.bf16.msra.mxu2 %v3675_v5  ;;  %2722 = vmatpush.bf16.msrb.mxu0 %v3708_v22  ;;  %v2222_v1 = vrot.slane %v2220_v58, 7  ;;  %v3695_v2 = vld [vmem:[#allocation14 + $0xa0] sm:$0xff]  ;;  %v2182_v4 = vsel %vm4406_vm7, %v2180_v62, %v2181_v56  ;;  %v3376_v7 = vld [vmem:[#allocation5 + $0x28] sm:$0xf]  ;;  %v3670_v11 = vld [vmem:[#allocation5 + $0x2c] sm:$0xf] }
 0x267   : > { %2666 = vmatpush.bf16.msra.mxu3 %v3683_v29  ;;  %3749 = vmatpush.bf16.msrb.mxu1 %v3708_v22  ;;  %v3703_v3 = vld [vmem:[#allocation14 + $0xe0] sm:$0xff]  ;;  %v2231_v6 = vrot.slane %v2229_v63, 7  ;;  %2190 = vst [vmem:[#allocation5 + $0x44] sm:$0xf] %v2182_v4  ;;  %v3378_v15 = vld [vmem:[#allocation5 + $0x3c] sm:$0xf0] }
 0x268   : > { %v3672_v8 = vld [vmem:[#allocation5 + $0x38] sm:$0xf0]  ;;  %v2225_v9 = vor.u32 %v2223_v59, %v2222_v1  ;;  %v2227_v10 = vrot.slane %v2222_v1, 4  ;;  %v2246_v14 = vld [vmem:[#allocation4 + $0xc] sm:$0xf]  ;;  %v3694_v16 = vld [vmem:[#allocation14 + $0x98] sm:$0xff]  ;;  %v3381_v21 = vor.u32 %v3670_v11, %v3378_v15 }
 0x269   : > { %2648 = vmatmul.bf16.vlgmr.msra.gmra.mxu2 %v3357_v42  ;;  %v3372_v32 = vld [vmem:[#allocation5 + $0x10] sm:$0xf]  ;;  %v2234_v13 = vor.u32 %v2232_v0, %v2231_v6  ;;  %v2247_v35 = vld [vmem:[#allocation4 + $0x10] sm:$0xf]  ;;  %2250 = vst [vmem:[#allocation5 + $0x38] sm:$0xf] %v2246_v14  ;;  %v3377_v20 = vor.u32 %v3672_v8, %v3376_v7 }
 0x26a   : > { %2678 = vmatpush.bf16.msrb.mxu2 %v3698_v40  ;;  %2667 = vmatmul.bf16.vlgmr.msra.gmra.mxu3 %v3361_v43  ;;  %v2226_v5 = vsel %vm4430_vm11, %v2218_v47, %v2225_v9  ;;  %v3702_v18 = vld [vmem:[#allocation14 + $0xd8] sm:$0xff]  ;;  %2251 = vst [vmem:[#allocation5 + $0x4c] sm:$0xf] %v2247_v35  ;;  %v3693_v23 = vld [vmem:[#allocation14 + $0x90] sm:$0xff]  ;;  %v3692_v17 = vld [vmem:[#allocation14 + $0x88] sm:$0xff]  ;;  %s2756_s22 = sshll.u32 %s2753_s11, 4  ;;  %s2757_s22 = int_to_ptr.hbm [resolvable:$true] %s2756_s22 }
 0x26b   : > { %2697 = vmatpush.bf16.msrb.mxu3 %v3706_v25  ;;  %v3669_v12 = vld [vmem:[#allocation5 + $0x20] sm:$0xf0]  ;;  %2723 = vmatpush.bf16.msrb.mxu0 %v3707_v36  ;;  %v2235_v19 = vsel %vm4430_vm11, %v2227_v10, %v2234_v13  ;;  %2242 = vst [vmem:[#allocation5 + $0x34] sm:$0xf] %v2226_v5  ;;  %v3701_v26 = vld [vmem:[#allocation14 + $0xd0] sm:$0xff]  ;;  %v3691_v30 = vld [vmem:[#allocation14 + $0x80] sm:$0xff] }
 0x26c   : > { %v3373_v61 = vor.u32 %v3669_v12, %v3372_v32  ;;  %3750 = vmatpush.bf16.msrb.mxu1 %v3707_v36  ;;  %2243 = vst [vmem:[#allocation5 + $0x48] sm:$0xf] %v2235_v19  ;;  %v3700_v28 = vld [vmem:[#allocation14 + $0xc8] sm:$0xff]  ;;  %v3699_v31 = vld [vmem:[#allocation14 + $0xc0] sm:$0xff]  ;;  %v3364_v37 = vld [vmem:[#allocation5 + $0x8] sm:$0xf] }
 0x26d   : > { %v3668_v38 = vld [vmem:[#allocation5 + $0x18] sm:$0xf0]  ;;  %v3666_v40 = vld [vmem:[#allocation5 + $0xc] sm:$0xf]  ;;  %v3366_v25 = vld [vmem:[#allocation5 + $0x1c] sm:$0xf0] }
 0x26e   : > { %2679 = vmatpush.bf16.msrb.mxu2 %v3697_v46  ;;  %2724 = vmatmul.bf16.vlgmr.msrb.gmra.mxu0 %v3373_v61  ;;  %v3365_v34 = vor.u32 %v3668_v38, %v3364_v37  ;;  %v3369_v41 = vor.u32 %v3666_v40, %v3366_v25  ;;  %v3384_v42 = vld [vmem:[#allocation5 + $0x30] sm:$0xf]  ;;  %v3673_v43 = vld [vmem:[#allocation5 + $0x40] sm:$0xf0]  ;;  %s2740_s8 = scalar_lea.sflag [#allocation8], %s4368_s23  ;;  %s4060_s16 = sshra.s32 %s2757_s22, 4  ;;  %s4061_s16 = int_to_ptr.hbm [resolvable:$true] %s4060_s16 }
 0x26f   : > { %2698 = vmatpush.bf16.msrb.mxu3 %v3705_v48  ;;  %v3385_v46 = vor.u32 %v3673_v43, %v3384_v42  ;;  %s4062_s20 = scalar_lea.hbm %s4061_s16, 32  ;;  %s4066_s15 = scalar_lea.hbm %s4739_s14, 256 }
 0x270   : > { %v3392_v27 = vld [vmem:[#allocation5 + $0x38] sm:$0xf]  ;;  %p4063_p4 = scmp.ne.s32.totalorder %s4061_s16, %s4062_s20  ;;  %p4067_p11 = scmp.lt.s32.totalorder %s4061_s16, %s4739_s14 }
 0x271   : > { %v3674_v29 = vld [vmem:[#allocation5 + $0x48] sm:$0xf0]  ;;  %p4068_p12 = scmp.lt.s32.totalorder %s4066_s15, %s4062_s20 }
 0x272   : > { %2680 = vmatpush.bf16.msrb.mxu2 %v3696_v54  ;;  %v3393_v24 = vor.u32 %v3674_v29, %v3392_v27  ;;  %v3671_v44 = vld [vmem:[#allocation5 + $0x34] sm:$0xf]  ;;  %p4064_p8 = pnand %p4063_p4, %p4321_p3 }
 0x273   : > { %2699 = vmatpush.bf16.msrb.mxu3 %v3704_v39  ;;  %v3386_v45 = vld [vmem:[#allocation5 + $0x44] sm:$0xf0]  ;;  %v3895_v54 = vld [vmem:[%s4692_s7] ss:$0 sm:$0xff]  ;;  %p4069_p13 = por %p4068_p12, %p4067_p11 }
 0x274   : > { %2729 = vmatmul.bf16.vlgmr.msrb.gmra.mxu1 %v3393_v24  ;;  %v3389_v48 = vor.u32 %v3671_v44, %v3386_v45  ;;  %p4065_p10 = pneg %p4064_p8 }
 0x276   : > { %2681 = vmatpush.bf16.msrb.mxu2 %v3695_v2  ;;  %p4070_p0 = pnand %p4069_p13, %p4065_p10 }
 0x277   : > { %2700 = vmatpush.bf16.msrb.mxu3 %v3703_v3 }
 0x279   : > { %2653 = vmatmul.bf16.gmra.mxu2 %v3377_v20 }
 0x27a   : > { %2682 = vmatpush.bf16.msrb.mxu2 %v3694_v16  ;;  %2672 = vmatmul.bf16.gmra.mxu3 %v3381_v21 }
 0x27b   : > { %2701 = vmatpush.bf16.msrb.mxu3 %v3702_v18 }
 0x27e   : > { %2683 = vmatpush.bf16.msrb.mxu2 %v3693_v23 }
 0x27f   : > { %2702 = vmatpush.bf16.msrb.mxu3 %v3701_v26 }
 0x282   : > { %2684 = vmatpush.bf16.msrb.mxu2 %v3692_v17 }
 0x283   : > { %2703 = vmatpush.bf16.msrb.mxu3 %v3700_v28 }
 0x286   : > { %2685 = vmatpush.bf16.msrb.mxu2 %v3691_v30 }
 0x287   : > { %2704 = vmatpush.bf16.msrb.mxu3 %v3699_v31 }
 0x289   : > { %2686 = vmatmul.bf16.vlgmr.msrb.gmra.mxu2 %v3365_v34 }
 0x28a   : > { %2705 = vmatmul.bf16.vlgmr.msrb.gmra.mxu3 %v3369_v41 }
 0x299   : > { %2691 = vmatmul.bf16.gmra.mxu2 %v3385_v46 }
 0x29a   : > { %2710 = vmatmul.bf16.gmra.mxu3 %v3389_v48 }
 0x2eb   : > { %v2725_v57 = vpop.f32.mrf.mxu0 }
 0x2ec   : > { %v2649_v49 = vpop.f32.mrf.mxu2 }
 0x2ed   : > { %v2668_v52 = vpop.f32.mrf.mxu3  ;;  %v2650_v55 = vadd.f32 %v3895_v54, %v2649_v49 }
 0x2ef   : > { %v2669_v56 = vadd.f32 %v2668_v52, %v2650_v55 }
 0x2f1   : > { %v2730_v11 = vpop.f32.mrf.mxu1 }
 0x2f3   : > { %v2727_v3 = vpop.f32.mrf.mxu0 }
 0x2f4   : > { %v2651_v51 = vpop.f32.mrf.mxu2 }
 0x2f5   : > { %v2670_v33 = vpop.f32.mrf.mxu3  ;;  %v2652_v62 = vadd.f32 %v3895_v54, %v2651_v51 }
 0x2f7   : > { %v2671_v36 = vadd.f32 %v2670_v33, %v2652_v62 }
 0x2f9   : > { %v2732_v18 = vpop.f32.mrf.mxu1 }
 0x2fc   : > { %v2654_v22 = vpop.f32.mrf.mxu2 }
 0x2fd   : > { %v2673_v53 = vpop.f32.mrf.mxu3  ;;  %v2655_v4 = vadd.f32 %v3895_v54, %v2654_v22 }
 0x2ff   : > { %v2674_v8 = vadd.f32 %v2673_v53, %v2655_v4 }
 0x304   : > { %v2656_v39 = vpop.f32.mrf.mxu2 }
 0x305   : > { %v2675_v50 = vpop.f32.mrf.mxu3  ;;  %v2657_v12 = vadd.f32 %v3895_v54, %v2656_v39 }
 0x307   : > { %v2676_v15 = vadd.f32 %v2675_v50, %v2657_v12 }
 0x30c   : > { %v2687_v58 = vpop.f32.mrf.mxu2 }
 0x30d   : > { %v2706_v59 = vpop.f32.mrf.mxu3  ;;  %v2688_v60 = vadd.f32 %v2687_v58, %v2669_v56 }
 0x30f   : > { %v2707_v63 = vadd.f32 %v2706_v59, %v2688_v60 }
 0x311   : > { %v2726_v0 = vadd.f32 %v2725_v57, %v2707_v63 }
 0x313   : > { %2735 = vst [vmem:[%s4508_s4] sm:$0xff] %v2726_v0 }
 0x314   : > { %v2689_v47 = vpop.f32.mrf.mxu2 }
 0x315   : > { %v2708_v1 = vpop.f32.mrf.mxu3  ;;  %v2690_v2 = vadd.f32 %v2689_v47, %v2671_v36 }
 0x317   : > { %v2709_v6 = vadd.f32 %v2708_v1, %v2690_v2 }
 0x319   : > { %v2728_v7 = vadd.f32 %v2727_v3, %v2709_v6 }
 0x31b   : > { %2736 = vst [vmem:[%s4508_s4 + $0x8] sm:$0xff] %v2728_v7 }
 0x31c   : > { %v2692_v32 = vpop.f32.mrf.mxu2 }
 0x31d   : > { %v2711_v9 = vpop.f32.mrf.mxu3  ;;  %v2693_v10 = vadd.f32 %v2692_v32, %v2674_v8 }
 0x31f   : > { %v2712_v13 = vadd.f32 %v2711_v9, %v2693_v10 }
 0x321   : > { %v2731_v14 = vadd.f32 %v2730_v11, %v2712_v13 }
 0x323   : > { %2737 = vst [vmem:[%s4508_s4 + $0x10] sm:$0xff] %v2731_v14 }
 0x324   : > { %v2694_v61 = vpop.f32.mrf.mxu2 }
 0x325   : > { %v2695_v5 = vadd.f32 %v2694_v61, %v2676_v15  ;;  %v2713_v35 = vpop.f32.mrf.mxu3 }
 0x327   : > { %v2714_v16 = vadd.f32 %v2713_v35, %v2695_v5 }
 0x329   : > { %v2733_v19 = vadd.f32 %v2732_v18, %v2714_v16 }
 0x32b   : > { %2738 = vst [vmem:[%s4508_s4 + $0x18] sm:$0xff] %v2733_v19 }
 0x32c   : > { %4073 = shalt.err (!%p4070_p0)
}
 0x32d   : > { %s4165_s23 = smov 128   ;;  %s4166_s4 = smov 8  }
 0x32e   : > { %3767 = dma.vmem_to_hbm [thread:$0]  (%p4321_p3), %s2755_s9, 512, %s2757_s22, %s2740_s8, %s4165_s23, %s4165_s23, %s4166_s4  }
 0x32f PF: > { %s4741_s24 = sld [smem:[#allocation21_spill]]  ;;  %p3797_p5 = scmp.ge.s32.totalorder %s4156_s12, 2 }
 0x331   : > { %p3787_p7 = pnand %p3797_p5, %p4267_p6 }
 0x333   : > { %p3788_p9 = pneg %p3787_p7 }
 0x335   : > { %s2771_s21 = sand.u32 1, %s4741_s24  }
 0x336   : > { %s2772_s27 = scalar_lea.sflag [#allocation8], %s2771_s21 }
 0x337   : > { %4123 = dma.done.wait (%p3788_p9), %s2772_s27, 512  }
 0x338   : > { %4125 = vsyncadd (%p3788_p9), %s2772_s27, 4294966784  ;;  %s28_s12 = sadd.s32 1, %s4156_s12   ;;  %s4743_s2 = sld [smem:[#allocation28_spill]] }
 0x339   : > { %p25_p2 = scmp.ge.s32.totalorder %s28_s12, 10   ;;  %s4744_s30 = sld [smem:[#allocation22_spill]] }
 0x33a   : > { %s4745_s9 = sld [smem:[#allocation23_spill]]  ;;  %s4748_s27 = smov %s4132_s28 }
 0x33b   : > { %s4746_s10 = sld [smem:[#allocation25_spill]]  ;;  %s4749_s28 = smov %s4136_s29 }
 0x33c   : > { %s4747_s11 = sld [smem:[#allocation27_spill]]  ;;  %27 = sbr.rel (!%p25_p2) target bundleno = 15 (0xf), region = 130 }
 0x33e   : > { %s4750_s29 = smov %s4743_s2 }
 0x341   :  { %2778 = vsyncpa [#allocation7], 1 }
 0x342   :  { %2780 = vsyncpa [#allocation7 + $0x1], 1 }
 0x343   :  { %2781 = vsyncpa [#allocation10], 1 }
 0x344   :  { %2783 = vsyncpa [#allocation10 + $0x1], 1 }
 0x345   :  { %2784 = vsyncpa [#allocation13], 1 }
 0x346   :  { %2785 = vsyncpa [#allocation8], 1 }
 0x347   :  { %2787 = vsyncpa [#allocation8 + $0x1], 1 }

</bundles_post_ra>
